<compile_context>
chip_gen: v7x
topology: tpu7x:2x2x1
jax: 0.10.0
libtpu: 0.0.40
codegen_flags: <defaults>
</compile_context>

<pallas_src>
import functools

import jax
import jax.numpy as jnp
from jax import lax
from jax.experimental import pallas as pl
from jax.experimental.pallas import tpu as pltpu

_BN_EPS = 1e-5
_LANES = 128

# Matmul input dtype. float32 keeps the numerical check tight on every chip;
# flip to jnp.bfloat16 on v6e/v7x for ~2x MXU throughput and half the weight
# bytes (BN/ReLU vector math stays f32 either way, which also suits v5e).
_MATMUL_DTYPE = jnp.float32


def _round_up(n, m):
    return ((n + m - 1) // m) * m


def _vmem_spec():
    return pl.BlockSpec(memory_space=pltpu.MemorySpace.VMEM)


# ------------------------------ fused kernel -------------------------------

def _make_block_kernel(B, H, W, CP, stride, has_skip_conv, eps=_BN_EPS):
    """Builds the fused ResNet-block kernel for static shapes/stride."""
    Ho = (H - 1) // stride + 1
    Wo = (W - 1) // stride + 1
    P = B * Ho * Wo

    def conv3x3(src_ref, w_ref, s):
        # src_ref: (B, Hs+2, Ws+2, CP) zero-padded activation in VMEM scratch.
        # w_ref:   (9, CP, CP) weights, tap-major.
        # Returns (P, CP) f32 accumulator (9 shifted MXU dots, no patch matrix).
        acc = None
        for di in range(3):
            for dj in range(3):
                if s == 1:
                    sl = src_ref[:, pl.ds(di, Ho), pl.ds(dj, Wo), :]
                else:
                    sl = src_ref[:, pl.ds(di, Ho, stride=s),
                                 pl.ds(dj, Wo, stride=s), :]
                lhs = sl.reshape(P, CP).astype(_MATMUL_DTYPE)
                rhs = w_ref[di * 3 + dj].astype(_MATMUL_DTYPE)
                t = jnp.dot(lhs, rhs, preferred_element_type=jnp.float32)
                acc = t if acc is None else acc + t
        return acc

    def bn(y, g, b):
        # Training-mode BatchNorm over the B*Ho*Wo rows, single pass.
        inv_p = jnp.float32(1.0 / P)
        mean = jnp.sum(y, axis=0, keepdims=True) * inv_p
        var = jnp.sum(y * y, axis=0, keepdims=True) * inv_p - mean * mean
        return (y - mean) * lax.rsqrt(var + eps) * g + b

    def body(x_ref, w1_ref, g1_ref, b1_ref, w2_ref, g2_ref, b2_ref,
             skip_refs, o_ref, xpad_ref, h1pad_ref):
        # Zero-padded input in VMEM scratch (padding=1 handled in-kernel).
        xpad_ref[...] = jnp.zeros(xpad_ref.shape, xpad_ref.dtype)
        xpad_ref[:, 1:H + 1, 1:W + 1, :] = x_ref[...]

        # conv1 + BN1 + ReLU   (conv bias omitted: cancels in batch-stat BN)
        h1 = jnp.maximum(
            bn(conv3x3(xpad_ref, w1_ref, stride), g1_ref[...], b1_ref[...]),
            0.0)
        h1pad_ref[...] = jnp.zeros(h1pad_ref.shape, h1pad_ref.dtype)
        h1pad_ref[:, 1:Ho + 1, 1:Wo + 1, :] = h1.reshape(B, Ho, Wo, CP)

        # conv2 + BN2
        y = bn(conv3x3(h1pad_ref, w2_ref, 1), g2_ref[...], b2_ref[...])

        # skip path
        if stride == 1:
            xs = xpad_ref[:, pl.ds(1, Ho), pl.ds(1, Wo), :]
        else:
            xs = xpad_ref[:, pl.ds(1, Ho, stride=stride),
                          pl.ds(1, Wo, stride=stride), :]
        xs = xs.reshape(P, CP)
        if skip_refs is not None:
            ws_ref, gs_ref, bs_ref = skip_refs
            sk = jnp.dot(xs.astype(_MATMUL_DTYPE),
                         ws_ref[...].astype(_MATMUL_DTYPE),
                         preferred_element_type=jnp.float32)
            sk = bn(sk, gs_ref[...], bs_ref[...])
        else:
            sk = xs  # identity skip (requires stride == 1, cin == cout)

        # residual add + final ReLU, one lane-dense store.
        o_ref[...] = jnp.maximum(y + sk, 0.0).reshape(B, Ho, Wo, CP)

    if has_skip_conv:
        def kernel(x_ref, w1_ref, g1_ref, b1_ref, w2_ref, g2_ref, b2_ref,
                   ws_ref, gs_ref, bs_ref, o_ref, xpad_ref, h1pad_ref):
            body(x_ref, w1_ref, g1_ref, b1_ref, w2_ref, g2_ref, b2_ref,
                 (ws_ref, gs_ref, bs_ref), o_ref, xpad_ref, h1pad_ref)
    else:
        def kernel(x_ref, w1_ref, g1_ref, b1_ref, w2_ref, g2_ref, b2_ref,
                   o_ref, xpad_ref, h1pad_ref):
            body(x_ref, w1_ref, g1_ref, b1_ref, w2_ref, g2_ref, b2_ref,
                 None, o_ref, xpad_ref, h1pad_ref)
    return kernel


# ------------------------------ forward pass -------------------------------

@functools.partial(jax.jit, static_argnames=("stride", "has_skip_conv", "cout"))
def resnet_block_forward(kp, x_nchw, *, stride, has_skip_conv, cout):
    """x_nchw: (B, Cin, H, W) float32, exactly like the PyTorch module."""
    x = jnp.transpose(x_nchw, (0, 2, 3, 1)).astype(jnp.float32)     # NHWC
    B, H, W, cin = x.shape
    CP = kp["w1"].shape[1]                                          # padded lanes
    x = jnp.pad(x, ((0, 0), (0, 0), (0, 0), (0, CP - cin)))
    Ho = (H - 1) // stride + 1
    Wo = (W - 1) // stride + 1

    args = [x, kp["w1"], kp["g1"], kp["b1"], kp["w2"], kp["g2"], kp["b2"]]
    if has_skip_conv:
        args += [kp["ws"], kp["gs"], kp["bs"]]

    kernel = _make_block_kernel(B, H, W, CP, stride, has_skip_conv)
    out = pl.pallas_call(
        kernel,
        out_shape=jax.ShapeDtypeStruct((B, Ho, Wo, CP), jnp.float32),
        in_specs=[_vmem_spec()] * len(args),
        out_specs=_vmem_spec(),
        scratch_shapes=[pltpu.VMEM((B, H + 2, W + 2, CP), jnp.float32),
                        pltpu.VMEM((B, Ho + 2, Wo + 2, CP), jnp.float32)],
    )(*args)

    out = out[..., :cout]                         # drop zero-padded lanes
    return jnp.transpose(out, (0, 3, 1, 2))       # back to NCHW


# ------------------------- parameter initialization ------------------------

def init_torch_params(key, cin, cout):
    """PyTorch-default-style parameters in torch layouts (OIHW conv weights)."""
    def conv_init(k, co, ci, ksz):
        k1, k2 = jax.random.split(k)
        bound = 1.0 / float(ci * ksz * ksz) ** 0.5
        w = jax.random.uniform(k1, (co, ci, ksz, ksz), jnp.float32, -bound, bound)
        b = jax.random.uniform(k2, (co,), jnp.float32, -bound, bound)
        return w, b

    def bn_init(k, c):
        # PyTorch default is gamma=1, beta=0; randomized here so the check
        # actually exercises the affine path.
        k1, k2 = jax.random.split(k)
        return (jax.random.uniform(k1, (c,), jnp.float32, 0.5, 1.5),
                jax.random.uniform(k2, (c,), jnp.float32, -0.5, 0.5))

    keys = jax.random.split(key, 6)
    w1, bias1 = conv_init(keys[0], cout, cin, 3)
    g1, b1 = bn_init(keys[1], cout)
    w2, bias2 = conv_init(keys[2], cout, cout, 3)
    g2, b2 = bn_init(keys[3], cout)
    tp = {"w1": w1, "bias1": bias1, "g1": g1, "b1": b1,
          "w2": w2, "bias2": bias2, "g2": g2, "b2": b2}
    if cin != cout:
        ws, biass = conv_init(keys[4], cout, cin, 1)
        gs, bs = bn_init(keys[5], cout)
        tp.update({"ws": ws, "biass": biass, "gs": gs, "bs": bs})
    return tp


def prepare_kernel_params(tp, cin, cout):
    """One-time (outside jit) layout transform + 128-lane zero padding."""
    CP = _round_up(max(cin, cout), _LANES)

    def conv3x3_to_mat(w):       # (co, ci, 3, 3) -> (9, CP, CP), tap-major
        co, ci = w.shape[0], w.shape[1]
        m = jnp.transpose(w, (2, 3, 1, 0)).reshape(9, ci, co)
        return jnp.pad(m, ((0, 0), (0, CP - ci), (0, CP - co))).astype(jnp.float32)

    def vec(v):                  # (c,) -> (1, CP), zero padded (keeps pad lanes 0)
        return jnp.pad(v, (0, CP - v.shape[0])).reshape(1, CP).astype(jnp.float32)

    kp = {"w1": conv3x3_to_mat(tp["w1"]), "g1": vec(tp["g1"]), "b1": vec(tp["b1"]),
          "w2": conv3x3_to_mat(tp["w2"]), "g2": vec(tp["g2"]), "b2": vec(tp["b2"])}
    if "ws" in tp:
        ws = tp["ws"][:, :, 0, 0]                      # (co, ci)
        kp["ws"] = jnp.pad(ws.T, ((0, CP - cin), (0, CP - cout))).astype(jnp.float32)
        kp["gs"] = vec(tp["gs"])
        kp["bs"] = vec(tp["bs"])
    # Conv biases are intentionally NOT passed: bias before batch-stat BN
    # cancels exactly in the mean subtraction (the reference keeps them).
    return kp


# ------------------------------- reference ---------------------------------

def _reference_forward(tp, x, stride):
    # Pure-JAX reference (training-mode BN, conv biases included).
    def conv(x, w, b, s, pad):
        y = lax.conv_general_dilated(
            x, w, (s, s), [(pad, pad), (pad, pad)],
            dimension_numbers=("NCHW", "OIHW", "NCHW"),
            precision=lax.Precision.HIGHEST)
        return y + b.reshape(1, -1, 1, 1)

    def bn(x, g, b):
        mean = jnp.mean(x, axis=(0, 2, 3), keepdims=True)
        var = jnp.var(x, axis=(0, 2, 3), keepdims=True)
        xn = (x - mean) / jnp.sqrt(var + _BN_EPS)
        return xn * g.reshape(1, -1, 1, 1) + b.reshape(1, -1, 1, 1)

    h = jnp.maximum(bn(conv(x, tp["w1"], tp["bias1"], stride, 1),
                       tp["g1"], tp["b1"]), 0.0)
    y = bn(conv(h, tp["w2"], tp["bias2"], 1, 1), tp["g2"], tp["b2"])
    if "ws" in tp:
        sk = bn(conv(x, tp["ws"], tp["biass"], stride, 0), tp["gs"], tp["bs"])
    else:
        sk = x
    return jnp.maximum(y + sk, 0.0)


# ----------------------------------- main -----------------------------------

if __name__ == "__main__":
    key = jax.random.PRNGKey(0)

    # (cin, cout, first_stride, input shape):
    #   case 1: channel expansion + downsample -> conv1x1/BN skip path
    #   case 2: cin == cout, stride 1          -> identity skip path
    cases = [
        (4, 8, 2, (2, 4, 16, 16)),
        (8, 8, 1, (2, 8, 16, 16)),
    ]

    for cin, cout, stride, xshape in cases:
        key, pkey, xkey = jax.random.split(key, 3)
        has_skip_conv = cin != cout
        assert has_skip_conv or stride == 1, "identity skip needs stride == 1"

        tp = init_torch_params(pkey, cin, cout)
        kp = prepare_kernel_params(tp, cin, cout)
        x = jax.random.normal(xkey, xshape, jnp.float32)

        out = jax.block_until_ready(
            resnet_block_forward(kp, x, stride=stride,
                                 has_skip_conv=has_skip_conv, cout=cout))
        ref = _reference_forward(tp, x, stride)

        assert out.shape == ref.shape, (out.shape, ref.shape)
        assert bool(jnp.all(jnp.isfinite(out)))
        assert jnp.allclose(out, ref, atol=3e-2, rtol=3e-2), (
            float(jnp.max(jnp.abs(out - ref))))

    print("KERNEL_OK")
</pallas_src>

<mosaic_0001>
module attributes {stable_mosaic.version = 11 : i64} {
  func.func @kernel(%arg0: memref<2x16x16x128xf32, #tpu.memory_space<vmem>>, %arg1: memref<9x128x128xf32, #tpu.memory_space<vmem>>, %arg2: memref<1x128xf32, #tpu.memory_space<vmem>>, %arg3: memref<1x128xf32, #tpu.memory_space<vmem>>, %arg4: memref<9x128x128xf32, #tpu.memory_space<vmem>>, %arg5: memref<1x128xf32, #tpu.memory_space<vmem>>, %arg6: memref<1x128xf32, #tpu.memory_space<vmem>>, %arg7: memref<128x128xf32, #tpu.memory_space<vmem>>, %arg8: memref<1x128xf32, #tpu.memory_space<vmem>>, %arg9: memref<1x128xf32, #tpu.memory_space<vmem>>, %arg10: memref<2x8x8x128xf32, #tpu.memory_space<vmem>>, %arg11: memref<2x18x18x128xf32, #tpu.memory_space<vmem>>, %arg12: memref<2x10x10x128xf32, #tpu.memory_space<vmem>>) attributes {dimension_semantics = [], scalar_prefetch = 0 : i64, scratch_operands = 2 : i64, tpu.core_type = #tpu.core_type<tc>} {
    %cst = arith.constant 0.000000e+00 : f32
    %0 = vector.broadcast %cst : f32 to vector<2x18x18x128xf32>
    %c0 = arith.constant 0 : index
    %c0_0 = arith.constant 0 : index
    %c0_1 = arith.constant 0 : index
    %c0_2 = arith.constant 0 : index
    %1 = vector.load %arg11[%c0, %c0_0, %c0_1, %c0_2] : memref<2x18x18x128xf32, #tpu.memory_space<vmem>>, vector<2x18x18x128xf32>
    tpu.vector_store %arg11[%c0, %c0_0, %c0_1, %c0_2], %0 {strides = array<i32>} : memref<2x18x18x128xf32, #tpu.memory_space<vmem>>, vector<2x18x18x128xf32>,
    %c0_3 = arith.constant 0 : index
    %c0_4 = arith.constant 0 : index
    %c0_5 = arith.constant 0 : index
    %c0_6 = arith.constant 0 : index
    %2 = vector.load %arg0[%c0_3, %c0_4, %c0_5, %c0_6] : memref<2x16x16x128xf32, #tpu.memory_space<vmem>>, vector<2x16x16x128xf32>
    %c0_7 = arith.constant 0 : index
    %c1 = arith.constant 1 : index
    %c1_8 = arith.constant 1 : index
    %c0_9 = arith.constant 0 : index
    %3 = vector.load %arg11[%c0_7, %c1, %c1_8, %c0_9] : memref<2x18x18x128xf32, #tpu.memory_space<vmem>>, vector<2x16x16x128xf32>
    tpu.vector_store %arg11[%c0_7, %c1, %c1_8, %c0_9], %2 {strides = array<i32>} : memref<2x18x18x128xf32, #tpu.memory_space<vmem>>, vector<2x16x16x128xf32>,
    %c0_10 = arith.constant 0 : index
    %c0_11 = arith.constant 0 : index
    %c0_12 = arith.constant 0 : index
    %c0_13 = arith.constant 0 : index
    %4 = tpu.strided_load %arg11[%c0_10, %c0_11, %c0_12, %c0_13] {strides = array<i32: 1, 2, 2, 1>} : memref<2x18x18x128xf32, #tpu.memory_space<vmem>>, vector<2x8x8x128xf32>
    %5 = vector.shape_cast %4 : vector<2x8x8x128xf32> to vector<128x128xf32>
    %c0_14 = arith.constant 0 : index
    %c0_15 = arith.constant 0 : index
    %c0_16 = arith.constant 0 : index
    %6 = vector.load %arg1[%c0_14, %c0_15, %c0_16] : memref<9x128x128xf32, #tpu.memory_space<vmem>>, vector<1x128x128xf32>
    %7 = vector.shape_cast %6 : vector<1x128x128xf32> to vector<128x128xf32>
    %cst_17 = arith.constant dense<0.000000e+00> : vector<128x128xf32>
    %8 = tpu.matmul %5, %7, %cst_17 {dimension_numbers = #tpu.dot_dimension_numbers<[1], [0], [0], [1], [0, 0, 1, 1], [], []>} : vector<128x128xf32>, vector<128x128xf32>, vector<128x128xf32> -> vector<128x128xf32>
    %c0_18 = arith.constant 0 : index
    %c0_19 = arith.constant 0 : index
    %c1_20 = arith.constant 1 : index
    %c0_21 = arith.constant 0 : index
    %9 = tpu.strided_load %arg11[%c0_18, %c0_19, %c1_20, %c0_21] {strides = array<i32: 1, 2, 2, 1>} : memref<2x18x18x128xf32, #tpu.memory_space<vmem>>, vector<2x8x8x128xf32>
    %10 = vector.shape_cast %9 : vector<2x8x8x128xf32> to vector<128x128xf32>
    %c1_22 = arith.constant 1 : index
    %c0_23 = arith.constant 0 : index
    %c0_24 = arith.constant 0 : index
    %11 = vector.load %arg1[%c1_22, %c0_23, %c0_24] : memref<9x128x128xf32, #tpu.memory_space<vmem>>, vector<1x128x128xf32>
    %12 = vector.shape_cast %11 : vector<1x128x128xf32> to vector<128x128xf32>
    %cst_25 = arith.constant dense<0.000000e+00> : vector<128x128xf32>
    %13 = tpu.matmul %10, %12, %cst_25 {dimension_numbers = #tpu.dot_dimension_numbers<[1], [0], [0], [1], [0, 0, 1, 1], [], []>} : vector<128x128xf32>, vector<128x128xf32>, vector<128x128xf32> -> vector<128x128xf32>
    %14 = arith.addf %8, %13 : vector<128x128xf32>
    %c0_26 = arith.constant 0 : index
    %c0_27 = arith.constant 0 : index
    %c2 = arith.constant 2 : index
    %c0_28 = arith.constant 0 : index
    %15 = tpu.strided_load %arg11[%c0_26, %c0_27, %c2, %c0_28] {strides = array<i32: 1, 2, 2, 1>} : memref<2x18x18x128xf32, #tpu.memory_space<vmem>>, vector<2x8x8x128xf32>
    %16 = vector.shape_cast %15 : vector<2x8x8x128xf32> to vector<128x128xf32>
    %c2_29 = arith.constant 2 : index
    %c0_30 = arith.constant 0 : index
    %c0_31 = arith.constant 0 : index
    %17 = vector.load %arg1[%c2_29, %c0_30, %c0_31] : memref<9x128x128xf32, #tpu.memory_space<vmem>>, vector<1x128x128xf32>
    %18 = vector.shape_cast %17 : vector<1x128x128xf32> to vector<128x128xf32>
    %cst_32 = arith.constant dense<0.000000e+00> : vector<128x128xf32>
    %19 = tpu.matmul %16, %18, %cst_32 {dimension_numbers = #tpu.dot_dimension_numbers<[1], [0], [0], [1], [0, 0, 1, 1], [], []>} : vector<128x128xf32>, vector<128x128xf32>, vector<128x128xf32> -> vector<128x128xf32>
    %20 = arith.addf %14, %19 : vector<128x128xf32>
    %c0_33 = arith.constant 0 : index
    %c1_34 = arith.constant 1 : index
    %c0_35 = arith.constant 0 : index
    %c0_36 = arith.constant 0 : index
    %21 = tpu.strided_load %arg11[%c0_33, %c1_34, %c0_35, %c0_36] {strides = array<i32: 1, 2, 2, 1>} : memref<2x18x18x128xf32, #tpu.memory_space<vmem>>, vector<2x8x8x128xf32>
    %22 = vector.shape_cast %21 : vector<2x8x8x128xf32> to vector<128x128xf32>
    %c3 = arith.constant 3 : index
    %c0_37 = arith.constant 0 : index
    %c0_38 = arith.constant 0 : index
    %23 = vector.load %arg1[%c3, %c0_37, %c0_38] : memref<9x128x128xf32, #tpu.memory_space<vmem>>, vector<1x128x128xf32>
    %24 = vector.shape_cast %23 : vector<1x128x128xf32> to vector<128x128xf32>
    %cst_39 = arith.constant dense<0.000000e+00> : vector<128x128xf32>
    %25 = tpu.matmul %22, %24, %cst_39 {dimension_numbers = #tpu.dot_dimension_numbers<[1], [0], [0], [1], [0, 0, 1, 1], [], []>} : vector<128x128xf32>, vector<128x128xf32>, vector<128x128xf32> -> vector<128x128xf32>
    %26 = arith.addf %20, %25 : vector<128x128xf32>
    %c0_40 = arith.constant 0 : index
    %c1_41 = arith.constant 1 : index
    %c1_42 = arith.constant 1 : index
    %c0_43 = arith.constant 0 : index
    %27 = tpu.strided_load %arg11[%c0_40, %c1_41, %c1_42, %c0_43] {strides = array<i32: 1, 2, 2, 1>} : memref<2x18x18x128xf32, #tpu.memory_space<vmem>>, vector<2x8x8x128xf32>
    %28 = vector.shape_cast %27 : vector<2x8x8x128xf32> to vector<128x128xf32>
    %c4 = arith.constant 4 : index
    %c0_44 = arith.constant 0 : index
    %c0_45 = arith.constant 0 : index
    %29 = vector.load %arg1[%c4, %c0_44, %c0_45] : memref<9x128x128xf32, #tpu.memory_space<vmem>>, vector<1x128x128xf32>
    %30 = vector.shape_cast %29 : vector<1x128x128xf32> to vector<128x128xf32>
    %cst_46 = arith.constant dense<0.000000e+00> : vector<128x128xf32>
    %31 = tpu.matmul %28, %30, %cst_46 {dimension_numbers = #tpu.dot_dimension_numbers<[1], [0], [0], [1], [0, 0, 1, 1], [], []>} : vector<128x128xf32>, vector<128x128xf32>, vector<128x128xf32> -> vector<128x128xf32>
    %32 = arith.addf %26, %31 : vector<128x128xf32>
    %c0_47 = arith.constant 0 : index
    %c1_48 = arith.constant 1 : index
    %c2_49 = arith.constant 2 : index
    %c0_50 = arith.constant 0 : index
    %33 = tpu.strided_load %arg11[%c0_47, %c1_48, %c2_49, %c0_50] {strides = array<i32: 1, 2, 2, 1>} : memref<2x18x18x128xf32, #tpu.memory_space<vmem>>, vector<2x8x8x128xf32>
    %34 = vector.shape_cast %33 : vector<2x8x8x128xf32> to vector<128x128xf32>
    %c5 = arith.constant 5 : index
    %c0_51 = arith.constant 0 : index
    %c0_52 = arith.constant 0 : index
    %35 = vector.load %arg1[%c5, %c0_51, %c0_52] : memref<9x128x128xf32, #tpu.memory_space<vmem>>, vector<1x128x128xf32>
    %36 = vector.shape_cast %35 : vector<1x128x128xf32> to vector<128x128xf32>
    %cst_53 = arith.constant dense<0.000000e+00> : vector<128x128xf32>
    %37 = tpu.matmul %34, %36, %cst_53 {dimension_numbers = #tpu.dot_dimension_numbers<[1], [0], [0], [1], [0, 0, 1, 1], [], []>} : vector<128x128xf32>, vector<128x128xf32>, vector<128x128xf32> -> vector<128x128xf32>
    %38 = arith.addf %32, %37 : vector<128x128xf32>
    %c0_54 = arith.constant 0 : index
    %c2_55 = arith.constant 2 : index
    %c0_56 = arith.constant 0 : index
    %c0_57 = arith.constant 0 : index
    %39 = tpu.strided_load %arg11[%c0_54, %c2_55, %c0_56, %c0_57] {strides = array<i32: 1, 2, 2, 1>} : memref<2x18x18x128xf32, #tpu.memory_space<vmem>>, vector<2x8x8x128xf32>
    %40 = vector.shape_cast %39 : vector<2x8x8x128xf32> to vector<128x128xf32>
    %c6 = arith.constant 6 : index
    %c0_58 = arith.constant 0 : index
    %c0_59 = arith.constant 0 : index
    %41 = vector.load %arg1[%c6, %c0_58, %c0_59] : memref<9x128x128xf32, #tpu.memory_space<vmem>>, vector<1x128x128xf32>
    %42 = vector.shape_cast %41 : vector<1x128x128xf32> to vector<128x128xf32>
    %cst_60 = arith.constant dense<0.000000e+00> : vector<128x128xf32>
    %43 = tpu.matmul %40, %42, %cst_60 {dimension_numbers = #tpu.dot_dimension_numbers<[1], [0], [0], [1], [0, 0, 1, 1], [], []>} : vector<128x128xf32>, vector<128x128xf32>, vector<128x128xf32> -> vector<128x128xf32>
    %44 = arith.addf %38, %43 : vector<128x128xf32>
    %c0_61 = arith.constant 0 : index
    %c2_62 = arith.constant 2 : index
    %c1_63 = arith.constant 1 : index
    %c0_64 = arith.constant 0 : index
    %45 = tpu.strided_load %arg11[%c0_61, %c2_62, %c1_63, %c0_64] {strides = array<i32: 1, 2, 2, 1>} : memref<2x18x18x128xf32, #tpu.memory_space<vmem>>, vector<2x8x8x128xf32>
    %46 = vector.shape_cast %45 : vector<2x8x8x128xf32> to vector<128x128xf32>
    %c7 = arith.constant 7 : index
    %c0_65 = arith.constant 0 : index
    %c0_66 = arith.constant 0 : index
    %47 = vector.load %arg1[%c7, %c0_65, %c0_66] : memref<9x128x128xf32, #tpu.memory_space<vmem>>, vector<1x128x128xf32>
    %48 = vector.shape_cast %47 : vector<1x128x128xf32> to vector<128x128xf32>
    %cst_67 = arith.constant dense<0.000000e+00> : vector<128x128xf32>
    %49 = tpu.matmul %46, %48, %cst_67 {dimension_numbers = #tpu.dot_dimension_numbers<[1], [0], [0], [1], [0, 0, 1, 1], [], []>} : vector<128x128xf32>, vector<128x128xf32>, vector<128x128xf32> -> vector<128x128xf32>
    %50 = arith.addf %44, %49 : vector<128x128xf32>
    %c0_68 = arith.constant 0 : index
    %c2_69 = arith.constant 2 : index
    %c2_70 = arith.constant 2 : index
    %c0_71 = arith.constant 0 : index
    %51 = tpu.strided_load %arg11[%c0_68, %c2_69, %c2_70, %c0_71] {strides = array<i32: 1, 2, 2, 1>} : memref<2x18x18x128xf32, #tpu.memory_space<vmem>>, vector<2x8x8x128xf32>
    %52 = vector.shape_cast %51 : vector<2x8x8x128xf32> to vector<128x128xf32>
    %c8 = arith.constant 8 : index
    %c0_72 = arith.constant 0 : index
    %c0_73 = arith.constant 0 : index
    %53 = vector.load %arg1[%c8, %c0_72, %c0_73] : memref<9x128x128xf32, #tpu.memory_space<vmem>>, vector<1x128x128xf32>
    %54 = vector.shape_cast %53 : vector<1x128x128xf32> to vector<128x128xf32>
    %cst_74 = arith.constant dense<0.000000e+00> : vector<128x128xf32>
    %55 = tpu.matmul %52, %54, %cst_74 {dimension_numbers = #tpu.dot_dimension_numbers<[1], [0], [0], [1], [0, 0, 1, 1], [], []>} : vector<128x128xf32>, vector<128x128xf32>, vector<128x128xf32> -> vector<128x128xf32>
    %56 = arith.addf %50, %55 : vector<128x128xf32>
    %c0_75 = arith.constant 0 : index
    %c0_76 = arith.constant 0 : index
    %57 = vector.load %arg2[%c0_75, %c0_76] : memref<1x128xf32, #tpu.memory_space<vmem>>, vector<1x128xf32>
    %c0_77 = arith.constant 0 : index
    %c0_78 = arith.constant 0 : index
    %58 = vector.load %arg3[%c0_77, %c0_78] : memref<1x128xf32, #tpu.memory_space<vmem>>, vector<1x128xf32>
    %cst_79 = arith.constant dense<0.000000e+00> : vector<128xf32>
    %59 = vector.multi_reduction <add>, %56, %cst_79 [0] : vector<128x128xf32> to vector<128xf32>
    %60 = vector.shape_cast %59 : vector<128xf32> to vector<1x128xf32>
    %cst_80 = arith.constant 7.812500e-03 : f32
    %61 = vector.broadcast %cst_80 : f32 to vector<1x128xf32>
    %62 = arith.mulf %60, %61 : vector<1x128xf32>
    %63 = arith.mulf %56, %56 : vector<128x128xf32>
    %cst_81 = arith.constant dense<0.000000e+00> : vector<128xf32>
    %64 = vector.multi_reduction <add>, %63, %cst_81 [0] : vector<128x128xf32> to vector<128xf32>
    %65 = vector.shape_cast %64 : vector<128xf32> to vector<1x128xf32>
    %cst_82 = arith.constant 7.812500e-03 : f32
    %66 = vector.broadcast %cst_82 : f32 to vector<1x128xf32>
    %67 = arith.mulf %65, %66 : vector<1x128xf32>
    %68 = arith.mulf %62, %62 : vector<1x128xf32>
    %69 = arith.subf %67, %68 : vector<1x128xf32>
    %70 = vector.broadcast %62 : vector<1x128xf32> to vector<128x128xf32>
    %71 = arith.subf %56, %70 : vector<128x128xf32>
    %cst_83 = arith.constant 9.99999974E-6 : f32
    %72 = vector.broadcast %cst_83 : f32 to vector<1x128xf32>
    %73 = arith.addf %69, %72 : vector<1x128xf32>
    %74 = math.rsqrt %73 : vector<1x128xf32>
    %75 = vector.broadcast %74 : vector<1x128xf32> to vector<128x128xf32>
    %76 = arith.mulf %71, %75 : vector<128x128xf32>
    %77 = vector.broadcast %57 : vector<1x128xf32> to vector<128x128xf32>
    %78 = arith.mulf %76, %77 : vector<128x128xf32>
    %79 = vector.broadcast %58 : vector<1x128xf32> to vector<128x128xf32>
    %80 = arith.addf %78, %79 : vector<128x128xf32>
    %cst_84 = arith.constant 0.000000e+00 : f32
    %81 = vector.broadcast %cst_84 : f32 to vector<128x128xf32>
    %82 = arith.maximumf %80, %81 : vector<128x128xf32>
    %cst_85 = arith.constant 0.000000e+00 : f32
    %83 = vector.broadcast %cst_85 : f32 to vector<2x10x10x128xf32>
    %c0_86 = arith.constant 0 : index
    %c0_87 = arith.constant 0 : index
    %c0_88 = arith.constant 0 : index
    %c0_89 = arith.constant 0 : index
    %84 = vector.load %arg12[%c0_86, %c0_87, %c0_88, %c0_89] : memref<2x10x10x128xf32, #tpu.memory_space<vmem>>, vector<2x10x10x128xf32>
    tpu.vector_store %arg12[%c0_86, %c0_87, %c0_88, %c0_89], %83 {strides = array<i32>} : memref<2x10x10x128xf32, #tpu.memory_space<vmem>>, vector<2x10x10x128xf32>,
    %85 = vector.shape_cast %82 : vector<128x128xf32> to vector<2x8x8x128xf32>
    %c0_90 = arith.constant 0 : index
    %c1_91 = arith.constant 1 : index
    %c1_92 = arith.constant 1 : index
    %c0_93 = arith.constant 0 : index
    %86 = vector.load %arg12[%c0_90, %c1_91, %c1_92, %c0_93] : memref<2x10x10x128xf32, #tpu.memory_space<vmem>>, vector<2x8x8x128xf32>
    tpu.vector_store %arg12[%c0_90, %c1_91, %c1_92, %c0_93], %85 {strides = array<i32>} : memref<2x10x10x128xf32, #tpu.memory_space<vmem>>, vector<2x8x8x128xf32>,
    %c0_94 = arith.constant 0 : index
    %c0_95 = arith.constant 0 : index
    %c0_96 = arith.constant 0 : index
    %c0_97 = arith.constant 0 : index
    %87 = vector.load %arg12[%c0_94, %c0_95, %c0_96, %c0_97] : memref<2x10x10x128xf32, #tpu.memory_space<vmem>>, vector<2x8x8x128xf32>
    %88 = vector.shape_cast %87 : vector<2x8x8x128xf32> to vector<128x128xf32>
    %c0_98 = arith.constant 0 : index
    %c0_99 = arith.constant 0 : index
    %c0_100 = arith.constant 0 : index
    %89 = vector.load %arg4[%c0_98, %c0_99, %c0_100] : memref<9x128x128xf32, #tpu.memory_space<vmem>>, vector<1x128x128xf32>
    %90 = vector.shape_cast %89 : vector<1x128x128xf32> to vector<128x128xf32>
    %cst_101 = arith.constant dense<0.000000e+00> : vector<128x128xf32>
    %91 = tpu.matmul %88, %90, %cst_101 {dimension_numbers = #tpu.dot_dimension_numbers<[1], [0], [0], [1], [0, 0, 1, 1], [], []>} : vector<128x128xf32>, vector<128x128xf32>, vector<128x128xf32> -> vector<128x128xf32>
    %c0_102 = arith.constant 0 : index
    %c0_103 = arith.constant 0 : index
    %c1_104 = arith.constant 1 : index
    %c0_105 = arith.constant 0 : index
    %92 = vector.load %arg12[%c0_102, %c0_103, %c1_104, %c0_105] : memref<2x10x10x128xf32, #tpu.memory_space<vmem>>, vector<2x8x8x128xf32>
    %93 = vector.shape_cast %92 : vector<2x8x8x128xf32> to vector<128x128xf32>
    %c1_106 = arith.constant 1 : index
    %c0_107 = arith.constant 0 : index
    %c0_108 = arith.constant 0 : index
    %94 = vector.load %arg4[%c1_106, %c0_107, %c0_108] : memref<9x128x128xf32, #tpu.memory_space<vmem>>, vector<1x128x128xf32>
    %95 = vector.shape_cast %94 : vector<1x128x128xf32> to vector<128x128xf32>
    %cst_109 = arith.constant dense<0.000000e+00> : vector<128x128xf32>
    %96 = tpu.matmul %93, %95, %cst_109 {dimension_numbers = #tpu.dot_dimension_numbers<[1], [0], [0], [1], [0, 0, 1, 1], [], []>} : vector<128x128xf32>, vector<128x128xf32>, vector<128x128xf32> -> vector<128x128xf32>
    %97 = arith.addf %91, %96 : vector<128x128xf32>
    %c0_110 = arith.constant 0 : index
    %c0_111 = arith.constant 0 : index
    %c2_112 = arith.constant 2 : index
    %c0_113 = arith.constant 0 : index
    %98 = vector.load %arg12[%c0_110, %c0_111, %c2_112, %c0_113] : memref<2x10x10x128xf32, #tpu.memory_space<vmem>>, vector<2x8x8x128xf32>
    %99 = vector.shape_cast %98 : vector<2x8x8x128xf32> to vector<128x128xf32>
    %c2_114 = arith.constant 2 : index
    %c0_115 = arith.constant 0 : index
    %c0_116 = arith.constant 0 : index
    %100 = vector.load %arg4[%c2_114, %c0_115, %c0_116] : memref<9x128x128xf32, #tpu.memory_space<vmem>>, vector<1x128x128xf32>
    %101 = vector.shape_cast %100 : vector<1x128x128xf32> to vector<128x128xf32>
    %cst_117 = arith.constant dense<0.000000e+00> : vector<128x128xf32>
    %102 = tpu.matmul %99, %101, %cst_117 {dimension_numbers = #tpu.dot_dimension_numbers<[1], [0], [0], [1], [0, 0, 1, 1], [], []>} : vector<128x128xf32>, vector<128x128xf32>, vector<128x128xf32> -> vector<128x128xf32>
    %103 = arith.addf %97, %102 : vector<128x128xf32>
    %c0_118 = arith.constant 0 : index
    %c1_119 = arith.constant 1 : index
    %c0_120 = arith.constant 0 : index
    %c0_121 = arith.constant 0 : index
    %104 = vector.load %arg12[%c0_118, %c1_119, %c0_120, %c0_121] : memref<2x10x10x128xf32, #tpu.memory_space<vmem>>, vector<2x8x8x128xf32>
    %105 = vector.shape_cast %104 : vector<2x8x8x128xf32> to vector<128x128xf32>
    %c3_122 = arith.constant 3 : index
    %c0_123 = arith.constant 0 : index
    %c0_124 = arith.constant 0 : index
    %106 = vector.load %arg4[%c3_122, %c0_123, %c0_124] : memref<9x128x128xf32, #tpu.memory_space<vmem>>, vector<1x128x128xf32>
    %107 = vector.shape_cast %106 : vector<1x128x128xf32> to vector<128x128xf32>
    %cst_125 = arith.constant dense<0.000000e+00> : vector<128x128xf32>
    %108 = tpu.matmul %105, %107, %cst_125 {dimension_numbers = #tpu.dot_dimension_numbers<[1], [0], [0], [1], [0, 0, 1, 1], [], []>} : vector<128x128xf32>, vector<128x128xf32>, vector<128x128xf32> -> vector<128x128xf32>
    %109 = arith.addf %103, %108 : vector<128x128xf32>
    %c0_126 = arith.constant 0 : index
    %c1_127 = arith.constant 1 : index
    %c1_128 = arith.constant 1 : index
    %c0_129 = arith.constant 0 : index
    %110 = vector.load %arg12[%c0_126, %c1_127, %c1_128, %c0_129] : memref<2x10x10x128xf32, #tpu.memory_space<vmem>>, vector<2x8x8x128xf32>
    %111 = vector.shape_cast %110 : vector<2x8x8x128xf32> to vector<128x128xf32>
    %c4_130 = arith.constant 4 : index
    %c0_131 = arith.constant 0 : index
    %c0_132 = arith.constant 0 : index
    %112 = vector.load %arg4[%c4_130, %c0_131, %c0_132] : memref<9x128x128xf32, #tpu.memory_space<vmem>>, vector<1x128x128xf32>
    %113 = vector.shape_cast %112 : vector<1x128x128xf32> to vector<128x128xf32>
    %cst_133 = arith.constant dense<0.000000e+00> : vector<128x128xf32>
    %114 = tpu.matmul %111, %113, %cst_133 {dimension_numbers = #tpu.dot_dimension_numbers<[1], [0], [0], [1], [0, 0, 1, 1], [], []>} : vector<128x128xf32>, vector<128x128xf32>, vector<128x128xf32> -> vector<128x128xf32>
    %115 = arith.addf %109, %114 : vector<128x128xf32>
    %c0_134 = arith.constant 0 : index
    %c1_135 = arith.constant 1 : index
    %c2_136 = arith.constant 2 : index
    %c0_137 = arith.constant 0 : index
    %116 = vector.load %arg12[%c0_134, %c1_135, %c2_136, %c0_137] : memref<2x10x10x128xf32, #tpu.memory_space<vmem>>, vector<2x8x8x128xf32>
    %117 = vector.shape_cast %116 : vector<2x8x8x128xf32> to vector<128x128xf32>
    %c5_138 = arith.constant 5 : index
    %c0_139 = arith.constant 0 : index
    %c0_140 = arith.constant 0 : index
    %118 = vector.load %arg4[%c5_138, %c0_139, %c0_140] : memref<9x128x128xf32, #tpu.memory_space<vmem>>, vector<1x128x128xf32>
    %119 = vector.shape_cast %118 : vector<1x128x128xf32> to vector<128x128xf32>
    %cst_141 = arith.constant dense<0.000000e+00> : vector<128x128xf32>
    %120 = tpu.matmul %117, %119, %cst_141 {dimension_numbers = #tpu.dot_dimension_numbers<[1], [0], [0], [1], [0, 0, 1, 1], [], []>} : vector<128x128xf32>, vector<128x128xf32>, vector<128x128xf32> -> vector<128x128xf32>
    %121 = arith.addf %115, %120 : vector<128x128xf32>
    %c0_142 = arith.constant 0 : index
    %c2_143 = arith.constant 2 : index
    %c0_144 = arith.constant 0 : index
    %c0_145 = arith.constant 0 : index
    %122 = vector.load %arg12[%c0_142, %c2_143, %c0_144, %c0_145] : memref<2x10x10x128xf32, #tpu.memory_space<vmem>>, vector<2x8x8x128xf32>
    %123 = vector.shape_cast %122 : vector<2x8x8x128xf32> to vector<128x128xf32>
    %c6_146 = arith.constant 6 : index
    %c0_147 = arith.constant 0 : index
    %c0_148 = arith.constant 0 : index
    %124 = vector.load %arg4[%c6_146, %c0_147, %c0_148] : memref<9x128x128xf32, #tpu.memory_space<vmem>>, vector<1x128x128xf32>
    %125 = vector.shape_cast %124 : vector<1x128x128xf32> to vector<128x128xf32>
    %cst_149 = arith.constant dense<0.000000e+00> : vector<128x128xf32>
    %126 = tpu.matmul %123, %125, %cst_149 {dimension_numbers = #tpu.dot_dimension_numbers<[1], [0], [0], [1], [0, 0, 1, 1], [], []>} : vector<128x128xf32>, vector<128x128xf32>, vector<128x128xf32> -> vector<128x128xf32>
    %127 = arith.addf %121, %126 : vector<128x128xf32>
    %c0_150 = arith.constant 0 : index
    %c2_151 = arith.constant 2 : index
    %c1_152 = arith.constant 1 : index
    %c0_153 = arith.constant 0 : index
    %128 = vector.load %arg12[%c0_150, %c2_151, %c1_152, %c0_153] : memref<2x10x10x128xf32, #tpu.memory_space<vmem>>, vector<2x8x8x128xf32>
    %129 = vector.shape_cast %128 : vector<2x8x8x128xf32> to vector<128x128xf32>
    %c7_154 = arith.constant 7 : index
    %c0_155 = arith.constant 0 : index
    %c0_156 = arith.constant 0 : index
    %130 = vector.load %arg4[%c7_154, %c0_155, %c0_156] : memref<9x128x128xf32, #tpu.memory_space<vmem>>, vector<1x128x128xf32>
    %131 = vector.shape_cast %130 : vector<1x128x128xf32> to vector<128x128xf32>
    %cst_157 = arith.constant dense<0.000000e+00> : vector<128x128xf32>
    %132 = tpu.matmul %129, %131, %cst_157 {dimension_numbers = #tpu.dot_dimension_numbers<[1], [0], [0], [1], [0, 0, 1, 1], [], []>} : vector<128x128xf32>, vector<128x128xf32>, vector<128x128xf32> -> vector<128x128xf32>
    %133 = arith.addf %127, %132 : vector<128x128xf32>
    %c0_158 = arith.constant 0 : index
    %c2_159 = arith.constant 2 : index
    %c2_160 = arith.constant 2 : index
    %c0_161 = arith.constant 0 : index
    %134 = vector.load %arg12[%c0_158, %c2_159, %c2_160, %c0_161] : memref<2x10x10x128xf32, #tpu.memory_space<vmem>>, vector<2x8x8x128xf32>
    %135 = vector.shape_cast %134 : vector<2x8x8x128xf32> to vector<128x128xf32>
    %c8_162 = arith.constant 8 : index
    %c0_163 = arith.constant 0 : index
    %c0_164 = arith.constant 0 : index
    %136 = vector.load %arg4[%c8_162, %c0_163, %c0_164] : memref<9x128x128xf32, #tpu.memory_space<vmem>>, vector<1x128x128xf32>
    %137 = vector.shape_cast %136 : vector<1x128x128xf32> to vector<128x128xf32>
    %cst_165 = arith.constant dense<0.000000e+00> : vector<128x128xf32>
    %138 = tpu.matmul %135, %137, %cst_165 {dimension_numbers = #tpu.dot_dimension_numbers<[1], [0], [0], [1], [0, 0, 1, 1], [], []>} : vector<128x128xf32>, vector<128x128xf32>, vector<128x128xf32> -> vector<128x128xf32>
    %139 = arith.addf %133, %138 : vector<128x128xf32>
    %c0_166 = arith.constant 0 : index
    %c0_167 = arith.constant 0 : index
    %140 = vector.load %arg5[%c0_166, %c0_167] : memref<1x128xf32, #tpu.memory_space<vmem>>, vector<1x128xf32>
    %c0_168 = arith.constant 0 : index
    %c0_169 = arith.constant 0 : index
    %141 = vector.load %arg6[%c0_168, %c0_169] : memref<1x128xf32, #tpu.memory_space<vmem>>, vector<1x128xf32>
    %cst_170 = arith.constant dense<0.000000e+00> : vector<128xf32>
    %142 = vector.multi_reduction <add>, %139, %cst_170 [0] : vector<128x128xf32> to vector<128xf32>
    %143 = vector.shape_cast %142 : vector<128xf32> to vector<1x128xf32>
    %cst_171 = arith.constant 7.812500e-03 : f32
    %144 = vector.broadcast %cst_171 : f32 to vector<1x128xf32>
    %145 = arith.mulf %143, %144 : vector<1x128xf32>
    %146 = arith.mulf %139, %139 : vector<128x128xf32>
    %cst_172 = arith.constant dense<0.000000e+00> : vector<128xf32>
    %147 = vector.multi_reduction <add>, %146, %cst_172 [0] : vector<128x128xf32> to vector<128xf32>
    %148 = vector.shape_cast %147 : vector<128xf32> to vector<1x128xf32>
    %cst_173 = arith.constant 7.812500e-03 : f32
    %149 = vector.broadcast %cst_173 : f32 to vector<1x128xf32>
    %150 = arith.mulf %148, %149 : vector<1x128xf32>
    %151 = arith.mulf %145, %145 : vector<1x128xf32>
    %152 = arith.subf %150, %151 : vector<1x128xf32>
    %153 = vector.broadcast %145 : vector<1x128xf32> to vector<128x128xf32>
    %154 = arith.subf %139, %153 : vector<128x128xf32>
    %cst_174 = arith.constant 9.99999974E-6 : f32
    %155 = vector.broadcast %cst_174 : f32 to vector<1x128xf32>
    %156 = arith.addf %152, %155 : vector<1x128xf32>
    %157 = math.rsqrt %156 : vector<1x128xf32>
    %158 = vector.broadcast %157 : vector<1x128xf32> to vector<128x128xf32>
    %159 = arith.mulf %154, %158 : vector<128x128xf32>
    %160 = vector.broadcast %140 : vector<1x128xf32> to vector<128x128xf32>
    %161 = arith.mulf %159, %160 : vector<128x128xf32>
    %162 = vector.broadcast %141 : vector<1x128xf32> to vector<128x128xf32>
    %163 = arith.addf %161, %162 : vector<128x128xf32>
    %c0_175 = arith.constant 0 : index
    %c1_176 = arith.constant 1 : index
    %c1_177 = arith.constant 1 : index
    %c0_178 = arith.constant 0 : index
    %164 = tpu.strided_load %arg11[%c0_175, %c1_176, %c1_177, %c0_178] {strides = array<i32: 1, 2, 2, 1>} : memref<2x18x18x128xf32, #tpu.memory_space<vmem>>, vector<2x8x8x128xf32>
    %165 = vector.shape_cast %164 : vector<2x8x8x128xf32> to vector<128x128xf32>
    %c0_179 = arith.constant 0 : index
    %c0_180 = arith.constant 0 : index
    %166 = vector.load %arg7[%c0_179, %c0_180] : memref<128x128xf32, #tpu.memory_space<vmem>>, vector<128x128xf32>
    %cst_181 = arith.constant dense<0.000000e+00> : vector<128x128xf32>
    %167 = tpu.matmul %165, %166, %cst_181 {dimension_numbers = #tpu.dot_dimension_numbers<[1], [0], [0], [1], [0, 0, 1, 1], [], []>} : vector<128x128xf32>, vector<128x128xf32>, vector<128x128xf32> -> vector<128x128xf32>
    %c0_182 = arith.constant 0 : index
    %c0_183 = arith.constant 0 : index
    %168 = vector.load %arg8[%c0_182, %c0_183] : memref<1x128xf32, #tpu.memory_space<vmem>>, vector<1x128xf32>
    %c0_184 = arith.constant 0 : index
    %c0_185 = arith.constant 0 : index
    %169 = vector.load %arg9[%c0_184, %c0_185] : memref<1x128xf32, #tpu.memory_space<vmem>>, vector<1x128xf32>
    %cst_186 = arith.constant dense<0.000000e+00> : vector<128xf32>
    %170 = vector.multi_reduction <add>, %167, %cst_186 [0] : vector<128x128xf32> to vector<128xf32>
    %171 = vector.shape_cast %170 : vector<128xf32> to vector<1x128xf32>
    %cst_187 = arith.constant 7.812500e-03 : f32
    %172 = vector.broadcast %cst_187 : f32 to vector<1x128xf32>
    %173 = arith.mulf %171, %172 : vector<1x128xf32>
    %174 = arith.mulf %167, %167 : vector<128x128xf32>
    %cst_188 = arith.constant dense<0.000000e+00> : vector<128xf32>
    %175 = vector.multi_reduction <add>, %174, %cst_188 [0] : vector<128x128xf32> to vector<128xf32>
    %176 = vector.shape_cast %175 : vector<128xf32> to vector<1x128xf32>
    %cst_189 = arith.constant 7.812500e-03 : f32
    %177 = vector.broadcast %cst_189 : f32 to vector<1x128xf32>
    %178 = arith.mulf %176, %177 : vector<1x128xf32>
    %179 = arith.mulf %173, %173 : vector<1x128xf32>
    %180 = arith.subf %178, %179 : vector<1x128xf32>
    %181 = vector.broadcast %173 : vector<1x128xf32> to vector<128x128xf32>
    %182 = arith.subf %167, %181 : vector<128x128xf32>
    %cst_190 = arith.constant 9.99999974E-6 : f32
    %183 = vector.broadcast %cst_190 : f32 to vector<1x128xf32>
    %184 = arith.addf %180, %183 : vector<1x128xf32>
    %185 = math.rsqrt %184 : vector<1x128xf32>
    %186 = vector.broadcast %185 : vector<1x128xf32> to vector<128x128xf32>
    %187 = arith.mulf %182, %186 : vector<128x128xf32>
    %188 = vector.broadcast %168 : vector<1x128xf32> to vector<128x128xf32>
    %189 = arith.mulf %187, %188 : vector<128x128xf32>
    %190 = vector.broadcast %169 : vector<1x128xf32> to vector<128x128xf32>
    %191 = arith.addf %189, %190 : vector<128x128xf32>
    %192 = arith.addf %163, %191 : vector<128x128xf32>
    %cst_191 = arith.constant 0.000000e+00 : f32
    %193 = vector.broadcast %cst_191 : f32 to vector<128x128xf32>
    %194 = arith.maximumf %192, %193 : vector<128x128xf32>
    %195 = vector.shape_cast %194 : vector<128x128xf32> to vector<2x8x8x128xf32>
    %c0_192 = arith.constant 0 : index
    %c0_193 = arith.constant 0 : index
    %c0_194 = arith.constant 0 : index
    %c0_195 = arith.constant 0 : index
    %196 = vector.load %arg10[%c0_192, %c0_193, %c0_194, %c0_195] : memref<2x8x8x128xf32, #tpu.memory_space<vmem>>, vector<2x8x8x128xf32>
    tpu.vector_store %arg10[%c0_192, %c0_193, %c0_194, %c0_195], %195 {strides = array<i32>} : memref<2x8x8x128xf32, #tpu.memory_space<vmem>>, vector<2x8x8x128xf32>,
    return
  }
}

</mosaic_0001>

<bundles_post_ra>
// kernel: resnet_block_forward.1
= control target key start
LH: loop header
LB: loop body
LE: loop exit
PB: predicated region body
PF: predicated region fallthrough
CT: control target
= control target key end

     0   :  { %15 = vsyncpa [#allocation5], 0  ;;  %s7399_s13 = smov [#allocation4]   ;;  %s9091_s0 = inlined_call_operand.vmem [shape: f32[2,16,16,128], index: 0, kind: input, shape index: {}]   ;;  %s9092_s1 = inlined_call_operand.vmem [shape: f32[9,128,128], index: 1, kind: input, shape index: {}]   ;;  %s9093_s2 = inlined_call_operand.vmem [shape: f32[1,128], index: 2, kind: input, shape index: {}]   ;;  %s9094_s3 = inlined_call_operand.vmem [shape: f32[1,128], index: 3, kind: input, shape index: {}]   ;;  %s9095_s4 = inlined_call_operand.hbm [shape: f32[9,128,128], index: 4, kind: input, shape index: {}]   ;;  %s9096_s5 = inlined_call_operand.vmem [shape: f32[1,128], index: 5, kind: input, shape index: {}]   ;;  %s9097_s6 = inlined_call_operand.vmem [shape: f32[1,128], index: 6, kind: input, shape index: {}]   ;;  %s9098_s7 = inlined_call_operand.vmem [shape: f32[128,128], index: 7, kind: input, shape index: {}]   ;;  %s9099_s8 = inlined_call_operand.vmem [shape: f32[1,128], index: 8, kind: input, shape index: {}]   ;;  %s9100_s9 = inlined_call_operand.vmem [shape: f32[1,128], index: 9, kind: input, shape index: {}]   ;;  %s9101_s10 = inlined_call_operand.vmem [shape: f32[2,8,8,128], index: 10, kind: output, shape index: {}]  }
   0x1   :  { %s29_s14 = sshll.u32 %s7399_s13, 4  ;;  %s7375_s17 = scalar_lea.hbm %s9095_s4, 18432  ;;  %s30_s14 = int_to_ptr.vmem [resolvable:$true] %s29_s14 }
   0x2   :  { %p7376_p0 = scmp.ne.s32.totalorder %s9095_s4, %s7375_s17  ;;  %p7379_p1 = scmp.lt.u32.totalorder %s7375_s17, %s9095_s4 }
   0x4   :  { %p7381_p2 = pnand %p7379_p1, %p7376_p0 }
   0x6   :  { %7384 = shalt.err (!%p7381_p2)
}
   0x7   :  { %s7385_s22 = scalar_lea.vmem %s30_s14, 18432  ;;  %p7390_p4 = scmp.lt.s32.totalorder %s30_s14, %s30_s14 }
   0x8   :  { %p7386_p3 = scmp.ne.s32.totalorder %s30_s14, %s7385_s22  ;;  %p7391_p5 = scmp.lt.s32.totalorder %s7385_s22, %s7385_s22 }
   0xa   :  { %p7392_p6 = por %p7391_p5, %p7390_p4 }
   0xc   :  { %p7393_p7 = pnand %p7392_p6, %p7386_p3 }
   0xe   :  { %7396 = shalt.err (!%p7393_p7)
}
   0xf   :  { %s7400_s23 = smov 128   ;;  %s7401_s24 = smov 8  }
  0x10   :  { %35 = dma.hbm_to_vmem [thread:$0]  %s9095_s4, 18432, %s30_s14, [#allocation5], %s7400_s23, %s7400_s23, %s7401_s24  }
  0x11   :  { %7397 = dma.done.wait [#allocation5], 18432  }
  0x12   :  { %7398 = vsyncadd [#allocation5], 4294948864  ;;  %v7402_v0 = vmov 0.0   ;;  %v4678_v1 = vld [vmem:[%s9092_s1 + $0x80] sm:$0xff]  ;;  %v4679_v2 = vld [vmem:[%s9092_s1 + $0x88] sm:$0xff] }
  0x13   :  { %100 = vst [vmem:[#allocation2 + $0x198] sm:$0xff] %v7402_v0  ;;  %49 = vst [vmem:[#allocation2] sm:$0xff] %v7402_v0  ;;  %v4680_v3 = vld [vmem:[%s9092_s1 + $0x90] sm:$0xff]  ;;  %v6484_v4 = vpack.c.bf16 %v4679_v2, %v4678_v1  ;;  %v4681_v5 = vld [vmem:[%s9092_s1 + $0x98] sm:$0xff] }
  0x14   :  { %50 = vst [vmem:[#allocation2 + $0x8] sm:$0xff] %v7402_v0  ;;  %51 = vst [vmem:[#allocation2 + $0x10] sm:$0x3] %v7402_v0  ;;  %v6488_v6 = vpack.c.bf16 %v4681_v5, %v4680_v3  ;;  %v4682_v7 = vld [vmem:[%s9092_s1 + $0xa0] sm:$0xff]  ;;  %v4683_v8 = vld [vmem:[%s9092_s1 + $0xa8] sm:$0xff] }
  0x15   :  { %52 = vst [vmem:[#allocation2 + $0x18] sm:$0xff] %v7402_v0  ;;  %53 = vst [vmem:[#allocation2 + $0x20] sm:$0xff] %v7402_v0  ;;  %6485 = vmatprep.subr.bf16.mxu0 %v6484_v4  ;;  %v6492_v9 = vpack.c.bf16 %v4683_v8, %v4682_v7  ;;  %v159_v11 = vld [vmem:[%s9091_s0 + $0x10] sm:$0xff]  ;;  %v4685_v13 = vld [vmem:[%s9092_s1 + $0xb8] sm:$0xff] }
  0x16   :  { %54 = vst [vmem:[#allocation2 + $0x28] sm:$0x3] %v7402_v0  ;;  %55 = vst [vmem:[#allocation2 + $0x30] sm:$0xff] %v7402_v0  ;;  %6487 = vmatpush3.bf16.msra.mxu0 %v6484_v4  ;;  %v4684_v12 = vld [vmem:[%s9092_s1 + $0xb0] sm:$0xff]  ;;  %v160_v14 = vld [vmem:[%s9091_s0 + $0x18] sm:$0xff] }
  0x17   :  { %56 = vst [vmem:[#allocation2 + $0x38] sm:$0xff] %v7402_v0  ;;  %57 = vst [vmem:[#allocation2 + $0x40] sm:$0x3] %v7402_v0  ;;  %6489 = vmatprep.subr.bf16.mxu0 %v6488_v6  ;;  %v163_v15 = vld [vmem:[%s9091_s0 + $0x30] sm:$0xff]  ;;  %v164_v16 = vld [vmem:[%s9091_s0 + $0x38] sm:$0xff]  ;;  %v6496_v19 = vpack.c.bf16 %v4685_v13, %v4684_v12 }
  0x18   :  { %58 = vst [vmem:[#allocation2 + $0x48] sm:$0xff] %v7402_v0  ;;  %59 = vst [vmem:[#allocation2 + $0x50] sm:$0xff] %v7402_v0  ;;  %v167_v17 = vld [vmem:[%s9091_s0 + $0x50] sm:$0xff]  ;;  %v168_v18 = vld [vmem:[%s9091_s0 + $0x58] sm:$0xff] }
  0x19   :  { %60 = vst [vmem:[#allocation2 + $0x58] sm:$0x3] %v7402_v0  ;;  %61 = vst [vmem:[#allocation2 + $0x60] sm:$0xff] %v7402_v0  ;;  %v171_v20 = vld [vmem:[%s9091_s0 + $0x70] sm:$0xff]  ;;  %v172_v21 = vld [vmem:[%s9091_s0 + $0x78] sm:$0xff] }
  0x1a   :  { %62 = vst [vmem:[#allocation2 + $0x68] sm:$0xff] %v7402_v0  ;;  %63 = vst [vmem:[#allocation2 + $0x70] sm:$0x3] %v7402_v0  ;;  %6491 = vmatpush3.bf16.msra.mxu0 %v6488_v6  ;;  %v175_v22 = vld [vmem:[%s9091_s0 + $0x90] sm:$0xff]  ;;  %v4686_v23 = vld [vmem:[%s9092_s1 + $0xc0] sm:$0xff] }
  0x1b   :  { %64 = vst [vmem:[#allocation2 + $0x78] sm:$0xff] %v7402_v0  ;;  %65 = vst [vmem:[#allocation2 + $0x80] sm:$0xff] %v7402_v0  ;;  %v334_v10 = vld [vmem:[#allocation2 + $0x1] ss:$2 sm:$0xff]  ;;  %6493 = vmatprep.subr.bf16.mxu0 %v6492_v9  ;;  %v176_v25 = vld [vmem:[%s9091_s0 + $0x98] sm:$0xff] }
  0x1c   :  { %66 = vst [vmem:[#allocation2 + $0x88] sm:$0x3] %v7402_v0  ;;  %67 = vst [vmem:[#allocation2 + $0x90] sm:$0xff] %v7402_v0  ;;  %5452 = vmatprep.mubr.f32.mxu0 %v334_v10  ;;  %v4687_v24 = vld [vmem:[%s9092_s1 + $0xc8] sm:$0xff]  ;;  %v179_v26 = vld [vmem:[%s9091_s0 + $0xb0] sm:$0xff] }
  0x1d   :  { %68 = vst [vmem:[#allocation2 + $0x98] sm:$0xff] %v7402_v0  ;;  %69 = vst [vmem:[#allocation2 + $0xa0] sm:$0x3] %v7402_v0  ;;  %v180_v27 = vld [vmem:[%s9091_s0 + $0xb8] sm:$0xff]  ;;  %v183_v28 = vld [vmem:[%s9091_s0 + $0xd0] sm:$0xff]  ;;  %v6500_v30 = vpack.c.bf16 %v4687_v24, %v4686_v23 }
  0x1e   :  { %70 = vst [vmem:[#allocation2 + $0xa8] sm:$0xff] %v7402_v0  ;;  %71 = vst [vmem:[#allocation2 + $0xb0] sm:$0xff] %v7402_v0  ;;  %6495 = vmatpush3.bf16.msra.mxu0 %v6492_v9  ;;  %v184_v29 = vld [vmem:[%s9091_s0 + $0xd8] sm:$0xff]  ;;  %v191_v31 = vld [vmem:[%s9091_s0 + $0x110] sm:$0xff] }
  0x1f   :  { %72 = vst [vmem:[#allocation2 + $0xb8] sm:$0x3] %v7402_v0  ;;  %73 = vst [vmem:[#allocation2 + $0xc0] sm:$0xff] %v7402_v0  ;;  %6497 = vmatprep.subr.bf16.mxu0 %v6496_v19  ;;  %v192_v32 = vld [vmem:[%s9091_s0 + $0x118] sm:$0xff]  ;;  %v4688_v33 = vld [vmem:[%s9092_s1 + $0xd0] sm:$0xff] }
  0x20   :  { %74 = vst [vmem:[#allocation2 + $0xc8] sm:$0xff] %v7402_v0  ;;  %75 = vst [vmem:[#allocation2 + $0xd0] sm:$0x3] %v7402_v0  ;;  %v4689_v34 = vld [vmem:[%s9092_s1 + $0xd8] sm:$0xff]  ;;  %v195_v35 = vld [vmem:[%s9091_s0 + $0x130] sm:$0xff] }
  0x21   :  { %76 = vst [vmem:[#allocation2 + $0xd8] sm:$0xff] %v7402_v0  ;;  %77 = vst [vmem:[#allocation2 + $0xe0] sm:$0xff] %v7402_v0  ;;  %v196_v36 = vld [vmem:[%s9091_s0 + $0x138] sm:$0xff]  ;;  %v199_v37 = vld [vmem:[%s9091_s0 + $0x150] sm:$0xff]  ;;  %v6504_v39 = vpack.c.bf16 %v4689_v34, %v4688_v33 }
  0x22   :  { %78 = vst [vmem:[#allocation2 + $0xe8] sm:$0x3] %v7402_v0  ;;  %79 = vst [vmem:[#allocation2 + $0xf0] sm:$0xff] %v7402_v0  ;;  %6499 = vmatpush3.bf16.msra.mxu0 %v6496_v19  ;;  %v200_v38 = vld [vmem:[%s9091_s0 + $0x158] sm:$0xff]  ;;  %v4690_v40 = vld [vmem:[%s9092_s1 + $0xe0] sm:$0xff] }
  0x23   :  { %80 = vst [vmem:[#allocation2 + $0xf8] sm:$0xff] %v7402_v0  ;;  %81 = vst [vmem:[#allocation2 + $0x100] sm:$0x3] %v7402_v0  ;;  %6501 = vmatprep.subr.bf16.mxu0 %v6500_v30  ;;  %v4691_v41 = vld [vmem:[%s9092_s1 + $0xe8] sm:$0xff]  ;;  %v203_v42 = vld [vmem:[%s9091_s0 + $0x170] sm:$0xff] }
  0x24   :  { %82 = vst [vmem:[#allocation2 + $0x108] sm:$0xff] %v7402_v0  ;;  %83 = vst [vmem:[#allocation2 + $0x110] sm:$0xff] %v7402_v0  ;;  %v204_v43 = vld [vmem:[%s9091_s0 + $0x178] sm:$0xff]  ;;  %v207_v44 = vld [vmem:[%s9091_s0 + $0x190] sm:$0xff]  ;;  %v6508_v46 = vpack.c.bf16 %v4691_v41, %v4690_v40 }
  0x25   :  { %84 = vst [vmem:[#allocation2 + $0x118] sm:$0x3] %v7402_v0  ;;  %85 = vst [vmem:[#allocation2 + $0x120] sm:$0xff] %v7402_v0  ;;  %v208_v45 = vld [vmem:[%s9091_s0 + $0x198] sm:$0xff]  ;;  %v4692_v47 = vld [vmem:[%s9092_s1 + $0xf0] sm:$0xff] }
  0x26   :  { %86 = vst [vmem:[#allocation2 + $0x128] sm:$0xff] %v7402_v0  ;;  %87 = vst [vmem:[#allocation2 + $0x130] sm:$0x3] %v7402_v0  ;;  %6503 = vmatpush3.bf16.msra.mxu0 %v6500_v30  ;;  %v211_v48 = vld [vmem:[%s9091_s0 + $0x1b0] sm:$0xff]  ;;  %v212_v49 = vld [vmem:[%s9091_s0 + $0x1b8] sm:$0xff] }
  0x27   :  { %88 = vst [vmem:[#allocation2 + $0x138] sm:$0xff] %v7402_v0  ;;  %89 = vst [vmem:[#allocation2 + $0x140] sm:$0xff] %v7402_v0  ;;  %6505 = vmatprep.subr.bf16.mxu0 %v6504_v39  ;;  %v4693_v50 = vld [vmem:[%s9092_s1 + $0xf8] sm:$0xff]  ;;  %v215_v51 = vld [vmem:[%s9091_s0 + $0x1d0] sm:$0xff] }
  0x28   :  { %90 = vst [vmem:[#allocation2 + $0x148] sm:$0x3] %v7402_v0  ;;  %91 = vst [vmem:[#allocation2 + $0x150] sm:$0xff] %v7402_v0  ;;  %v216_v52 = vld [vmem:[%s9091_s0 + $0x1d8] sm:$0xff]  ;;  %v6512_v53 = vpack.c.bf16 %v4693_v50, %v4692_v47  ;;  %v317_v54 = vld [vmem:[%s9092_s1] sm:$0xff] }
  0x29   :  { %92 = vst [vmem:[#allocation2 + $0x158] sm:$0xff] %v7402_v0  ;;  %93 = vst [vmem:[#allocation2 + $0x160] sm:$0x3] %v7402_v0  ;;  %v318_v55 = vld [vmem:[%s9092_s1 + $0x8] sm:$0xff]  ;;  %v319_v57 = vld [vmem:[%s9092_s1 + $0x10] sm:$0xff] }
  0x2a   :  { %94 = vst [vmem:[#allocation2 + $0x168] sm:$0xff] %v7402_v0  ;;  %95 = vst [vmem:[#allocation2 + $0x170] sm:$0xff] %v7402_v0  ;;  %6507 = vmatpush3.bf16.msra.mxu0 %v6504_v39  ;;  %v6516_v56 = vpack.c.bf16 %v318_v55, %v317_v54  ;;  %v320_v58 = vld [vmem:[%s9092_s1 + $0x18] sm:$0xff]  ;;  %v321_v62 = vld [vmem:[%s9092_s1 + $0x20] sm:$0xff] }
  0x2b   :  { %96 = vst [vmem:[#allocation2 + $0x178] sm:$0x3] %v7402_v0  ;;  %97 = vst [vmem:[#allocation2 + $0x180] sm:$0xff] %v7402_v0  ;;  %6509 = vmatprep.subr.bf16.mxu0 %v6508_v46  ;;  %v6520_v61 = vpack.c.bf16 %v320_v58, %v319_v57  ;;  %v322_v63 = vld [vmem:[%s9092_s1 + $0x28] sm:$0xff]  ;;  %v323_v3 = vld [vmem:[%s9092_s1 + $0x30] sm:$0xff] }
  0x2c   :  { %98 = vst [vmem:[#allocation2 + $0x188] sm:$0xff] %v7402_v0  ;;  %99 = vst [vmem:[#allocation2 + $0x190] sm:$0x3] %v7402_v0  ;;  %v6524_v2 = vpack.c.bf16 %v322_v63, %v321_v62  ;;  %v324_v4 = vld [vmem:[%s9092_s1 + $0x38] sm:$0xff]  ;;  %v325_v8 = vld [vmem:[%s9092_s1 + $0x40] sm:$0xff] }
  0x2d   :  { %103 = vst [vmem:[#allocation2 + $0x1b0] sm:$0xff] %v7402_v0  ;;  %104 = vst [vmem:[#allocation2 + $0x1b8] sm:$0xff] %v7402_v0  ;;  %v6528_v7 = vpack.c.bf16 %v324_v4, %v323_v3  ;;  %v326_v9 = vld [vmem:[%s9092_s1 + $0x48] sm:$0xff]  ;;  %v327_v13 = vld [vmem:[%s9092_s1 + $0x50] sm:$0xff] }
  0x2e   :  { %105 = vst [vmem:[#allocation2 + $0x1c0] sm:$0x3] %v7402_v0  ;;  %106 = vst [vmem:[#allocation2 + $0x1c8] sm:$0xff] %v7402_v0  ;;  %6511 = vmatpush3.bf16.msra.mxu0 %v6508_v46  ;;  %v6532_v12 = vpack.c.bf16 %v326_v9, %v325_v8  ;;  %v166_v23 = vld [vmem:[%s9091_s0 + $0x48] sm:$0xff]  ;;  %v169_v24 = vld [vmem:[%s9091_s0 + $0x60] sm:$0xff] }
  0x2f   :  { %107 = vst [vmem:[#allocation2 + $0x1d0] sm:$0xff] %v7402_v0  ;;  %108 = vst [vmem:[#allocation2 + $0x1d8] sm:$0x3] %v7402_v0  ;;  %6513 = vmatprep.subr.bf16.mxu0 %v6512_v53  ;;  %v177_v30 = vld [vmem:[%s9091_s0 + $0xa0] sm:$0xff]  ;;  %v331_v39 = vld [vmem:[%s9092_s1 + $0x70] sm:$0xff] }
  0x30   :  { %109 = vst [vmem:[#allocation2 + $0x1e0] sm:$0xff] %v7402_v0  ;;  %110 = vst [vmem:[#allocation2 + $0x1e8] sm:$0xff] %v7402_v0  ;;  %v181_v34 = vld [vmem:[%s9091_s0 + $0xc0] sm:$0xff]  ;;  %v332_v40 = vld [vmem:[%s9092_s1 + $0x78] sm:$0xff] }
  0x31   :  { %111 = vst [vmem:[#allocation2 + $0x1f0] sm:$0x3] %v7402_v0  ;;  %112 = vst [vmem:[#allocation2 + $0x1f8] sm:$0xff] %v7402_v0  ;;  %v189_v41 = vld [vmem:[%s9091_s0 + $0x100] sm:$0xff]  ;;  %v6544_v47 = vpack.c.bf16 %v332_v40, %v331_v39  ;;  %v4696_v58 = vld [vmem:[%s9092_s1 + $0x110] sm:$0xff] }
  0x32   :  { %113 = vst [vmem:[#allocation2 + $0x200] sm:$0xff] %v7402_v0  ;;  %114 = vst [vmem:[#allocation2 + $0x208] sm:$0x3] %v7402_v0  ;;  %6515 = vmatpush3.bf16.msra.mxu0 %v6512_v53  ;;  %v197_v50 = vld [vmem:[%s9091_s0 + $0x140] sm:$0xff]  ;;  %v202_v53 = vld [vmem:[%s9091_s0 + $0x168] sm:$0xff] }
  0x33   :  { %115 = vst [vmem:[#allocation2 + $0x210] sm:$0xff] %v7402_v0  ;;  %116 = vst [vmem:[#allocation2 + $0x218] sm:$0xff] %v7402_v0  ;;  %6517 = vmatprep.subr.bf16.mxu0 %v6516_v56  ;;  %v205_v55 = vld [vmem:[%s9091_s0 + $0x180] sm:$0xff]  ;;  %v210_v62 = vld [vmem:[%s9091_s0 + $0x1a8] sm:$0xff] }
  0x34   :  { %117 = vst [vmem:[#allocation2 + $0x220] sm:$0x3] %v7402_v0  ;;  %118 = vst [vmem:[#allocation2 + $0x228] sm:$0xff] %v7402_v0  ;;  %v213_v63 = vld [vmem:[%s9091_s0 + $0x1c0] sm:$0xff] }
  0x35   :  { %119 = vst [vmem:[#allocation2 + $0x230] sm:$0xff] %v7402_v0  ;;  %120 = vst [vmem:[#allocation2 + $0x238] sm:$0x3] %v7402_v0  ;;  %v673_v39 = vld [vmem:[#allocation2 + $0x2] ss:$2 sm:$0xff] }
  0x36   :  { %121 = vst [vmem:[#allocation2 + $0x240] sm:$0xff] %v7402_v0  ;;  %122 = vst [vmem:[#allocation2 + $0x248] sm:$0xff] %v7402_v0 }
  0x37   :  { %123 = vst [vmem:[#allocation2 + $0x250] sm:$0x3] %v7402_v0  ;;  %124 = vst [vmem:[#allocation2 + $0x258] sm:$0xff] %v7402_v0 }
  0x38   :  { %125 = vst [vmem:[#allocation2 + $0x260] sm:$0xff] %v7402_v0  ;;  %126 = vst [vmem:[#allocation2 + $0x268] sm:$0x3] %v7402_v0 }
  0x39   :  { %127 = vst [vmem:[#allocation2 + $0x270] sm:$0xff] %v7402_v0  ;;  %128 = vst [vmem:[#allocation2 + $0x278] sm:$0xff] %v7402_v0 }
  0x3a   :  { %129 = vst [vmem:[#allocation2 + $0x280] sm:$0x3] %v7402_v0  ;;  %130 = vst [vmem:[#allocation2 + $0x288] sm:$0xff] %v7402_v0 }
  0x3b   :  { %131 = vst [vmem:[#allocation2 + $0x290] sm:$0xff] %v7402_v0  ;;  %132 = vst [vmem:[#allocation2 + $0x298] sm:$0x3] %v7402_v0 }
  0x3c   :  { %133 = vst [vmem:[#allocation2 + $0x2a0] sm:$0xff] %v7402_v0  ;;  %134 = vst [vmem:[#allocation2 + $0x2a8] sm:$0xff] %v7402_v0 }
  0x3d   :  { %135 = vst [vmem:[#allocation2 + $0x2b0] sm:$0x3] %v7402_v0  ;;  %136 = vst [vmem:[#allocation2 + $0x2b8] sm:$0xff] %v7402_v0 }
  0x3e   :  { %137 = vst [vmem:[#allocation2 + $0x2c0] sm:$0xff] %v7402_v0  ;;  %138 = vst [vmem:[#allocation2 + $0x2c8] sm:$0x3] %v7402_v0 }
  0x3f   :  { %139 = vst [vmem:[#allocation2 + $0x2d0] sm:$0xff] %v7402_v0  ;;  %140 = vst [vmem:[#allocation2 + $0x2d8] sm:$0xff] %v7402_v0 }
  0x40   :  { %141 = vst [vmem:[#allocation2 + $0x2e0] sm:$0x3] %v7402_v0  ;;  %142 = vst [vmem:[#allocation2 + $0x2e8] sm:$0xff] %v7402_v0 }
  0x41   :  { %143 = vst [vmem:[#allocation2 + $0x2f0] sm:$0xff] %v7402_v0  ;;  %144 = vst [vmem:[#allocation2 + $0x2f8] sm:$0x3] %v7402_v0 }
  0x42   :  { %145 = vst [vmem:[#allocation2 + $0x300] sm:$0xff] %v7402_v0  ;;  %146 = vst [vmem:[#allocation2 + $0x308] sm:$0xff] %v7402_v0 }
  0x43   :  { %147 = vst [vmem:[#allocation2 + $0x310] sm:$0x3] %v7402_v0  ;;  %148 = vst [vmem:[#allocation2 + $0x318] sm:$0xff] %v7402_v0 }
  0x44   :  { %149 = vst [vmem:[#allocation2 + $0x320] sm:$0xff] %v7402_v0  ;;  %150 = vst [vmem:[#allocation2 + $0x328] sm:$0x3] %v7402_v0 }
  0x45   :  { %151 = vst [vmem:[#allocation2 + $0x330] sm:$0xff] %v7402_v0  ;;  %152 = vst [vmem:[#allocation2 + $0x338] sm:$0xff] %v7402_v0 }
  0x46   :  { %153 = vst [vmem:[#allocation2 + $0x340] sm:$0x3] %v7402_v0  ;;  %2299 = vst [vmem:[#allocation3] sm:$0xff] %v7402_v0 }
  0x47   :  { %2300 = vst [vmem:[#allocation3 + $0x8] sm:$0x3] %v7402_v0  ;;  %2301 = vst [vmem:[#allocation3 + $0x10] sm:$0xff] %v7402_v0 }
  0x48   :  { %2302 = vst [vmem:[#allocation3 + $0x18] sm:$0x3] %v7402_v0  ;;  %2303 = vst [vmem:[#allocation3 + $0x20] sm:$0xff] %v7402_v0 }
  0x49   :  { %2304 = vst [vmem:[#allocation3 + $0x28] sm:$0x3] %v7402_v0  ;;  %2305 = vst [vmem:[#allocation3 + $0x30] sm:$0xff] %v7402_v0 }
  0x4a   :  { %2306 = vst [vmem:[#allocation3 + $0x38] sm:$0x3] %v7402_v0  ;;  %2307 = vst [vmem:[#allocation3 + $0x40] sm:$0xff] %v7402_v0 }
  0x4b   :  { %2308 = vst [vmem:[#allocation3 + $0x48] sm:$0x3] %v7402_v0  ;;  %2309 = vst [vmem:[#allocation3 + $0x50] sm:$0xff] %v7402_v0 }
  0x4c   :  { %2310 = vst [vmem:[#allocation3 + $0x58] sm:$0x3] %v7402_v0  ;;  %2311 = vst [vmem:[#allocation3 + $0x60] sm:$0xff] %v7402_v0 }
  0x4d   :  { %2312 = vst [vmem:[#allocation3 + $0x68] sm:$0x3] %v7402_v0  ;;  %2313 = vst [vmem:[#allocation3 + $0x70] sm:$0xff] %v7402_v0 }
  0x4e   :  { %2314 = vst [vmem:[#allocation3 + $0x78] sm:$0x3] %v7402_v0  ;;  %2315 = vst [vmem:[#allocation3 + $0x80] sm:$0xff] %v7402_v0 }
  0x4f   :  { %2316 = vst [vmem:[#allocation3 + $0x88] sm:$0x3] %v7402_v0  ;;  %2317 = vst [vmem:[#allocation3 + $0x90] sm:$0xff] %v7402_v0 }
  0x50   :  { %2318 = vst [vmem:[#allocation3 + $0x98] sm:$0x3] %v7402_v0  ;;  %2319 = vst [vmem:[#allocation3 + $0xa0] sm:$0xff] %v7402_v0 }
  0x51   :  { %2320 = vst [vmem:[#allocation3 + $0xa8] sm:$0x3] %v7402_v0  ;;  %2321 = vst [vmem:[#allocation3 + $0xb0] sm:$0xff] %v7402_v0 }
  0x52   :  { %2322 = vst [vmem:[#allocation3 + $0xb8] sm:$0x3] %v7402_v0  ;;  %2323 = vst [vmem:[#allocation3 + $0xc0] sm:$0xff] %v7402_v0 }
  0x53   :  { %2324 = vst [vmem:[#allocation3 + $0xc8] sm:$0x3] %v7402_v0  ;;  %2325 = vst [vmem:[#allocation3 + $0xd0] sm:$0xff] %v7402_v0 }
  0x54   :  { %2326 = vst [vmem:[#allocation3 + $0xd8] sm:$0x3] %v7402_v0  ;;  %2327 = vst [vmem:[#allocation3 + $0xe0] sm:$0xff] %v7402_v0 }
  0x55   :  { %2328 = vst [vmem:[#allocation3 + $0xe8] sm:$0x3] %v7402_v0  ;;  %2329 = vst [vmem:[#allocation3 + $0xf0] sm:$0xff] %v7402_v0 }
  0x56   :  { %2330 = vst [vmem:[#allocation3 + $0xf8] sm:$0x3] %v7402_v0  ;;  %2331 = vst [vmem:[#allocation3 + $0x100] sm:$0xff] %v7402_v0 }
  0x57   :  { %2332 = vst [vmem:[#allocation3 + $0x108] sm:$0x3] %v7402_v0  ;;  %2333 = vst [vmem:[#allocation3 + $0x110] sm:$0xff] %v7402_v0 }
  0x58   :  { %2334 = vst [vmem:[#allocation3 + $0x118] sm:$0x3] %v7402_v0  ;;  %2335 = vst [vmem:[#allocation3 + $0x120] sm:$0xff] %v7402_v0 }
  0x59   :  { %2336 = vst [vmem:[#allocation3 + $0x128] sm:$0x3] %v7402_v0  ;;  %2337 = vst [vmem:[#allocation3 + $0x130] sm:$0xff] %v7402_v0 }
  0x5a   :  { %2338 = vst [vmem:[#allocation3 + $0x138] sm:$0x3] %v7402_v0  ;;  %224 = vst [vmem:[#allocation2 + $0x31] sm:$0xff] %v159_v11  ;;  %v350_v11 = vld [vmem:[#allocation2 + $0x1b1] ss:$2 sm:$0xff] }
  0x5b   :  { %225 = vst [vmem:[#allocation2 + $0x39] sm:$0xff] %v160_v14  ;;  %228 = vst [vmem:[#allocation2 + $0x61] sm:$0xff] %v163_v15  ;;  %v328_v14 = vld [vmem:[%s9092_s1 + $0x58] sm:$0xff]  ;;  %v157_v15 = vld [vmem:[%s9091_s0] sm:$0xff] }
  0x5c   :  { %229 = vst [vmem:[#allocation2 + $0x69] sm:$0xff] %v164_v16  ;;  %232 = vst [vmem:[#allocation2 + $0x91] sm:$0xff] %v167_v17  ;;  %v158_v16 = vld [vmem:[%s9091_s0 + $0x8] sm:$0xff]  ;;  %v161_v17 = vld [vmem:[%s9091_s0 + $0x20] sm:$0xff] }
  0x5d   :  { %233 = vst [vmem:[#allocation2 + $0x99] sm:$0xff] %v168_v18  ;;  %236 = vst [vmem:[#allocation2 + $0xc1] sm:$0xff] %v171_v20  ;;  %v162_v18 = vld [vmem:[%s9091_s0 + $0x28] sm:$0xff] }
  0x5e   :  { %237 = vst [vmem:[#allocation2 + $0xc9] sm:$0xff] %v172_v21  ;;  %240 = vst [vmem:[#allocation2 + $0xf1] sm:$0xff] %v175_v22  ;;  %v165_v21 = vld [vmem:[%s9091_s0 + $0x40] sm:$0xff]  ;;  %v6536_v22 = vpack.c.bf16 %v328_v14, %v327_v13 }
  0x5f   :  { %241 = vst [vmem:[#allocation2 + $0xf9] sm:$0xff] %v176_v25  ;;  %244 = vst [vmem:[#allocation2 + $0x121] sm:$0xff] %v179_v26  ;;  %v170_v25 = vld [vmem:[%s9091_s0 + $0x68] sm:$0xff]  ;;  %v329_v26 = vld [vmem:[%s9092_s1 + $0x60] sm:$0xff] }
  0x60   :  { %245 = vst [vmem:[#allocation2 + $0x129] sm:$0xff] %v180_v27  ;;  %248 = vst [vmem:[#allocation2 + $0x151] sm:$0xff] %v183_v28  ;;  %v330_v27 = vld [vmem:[%s9092_s1 + $0x68] sm:$0xff]  ;;  %v173_v28 = vld [vmem:[%s9091_s0 + $0x80] sm:$0xff] }
  0x61   :  { %249 = vst [vmem:[#allocation2 + $0x159] sm:$0xff] %v184_v29  ;;  %256 = vst [vmem:[#allocation2 + $0x1e1] sm:$0xff] %v191_v31  ;;  %v174_v29 = vld [vmem:[%s9091_s0 + $0x88] sm:$0xff] }
  0x62   :  { %257 = vst [vmem:[#allocation2 + $0x1e9] sm:$0xff] %v192_v32  ;;  %260 = vst [vmem:[#allocation2 + $0x211] sm:$0xff] %v195_v35  ;;  %v336_v59 = vld [vmem:[#allocation2 + $0x31] ss:$2 sm:$0xff]  ;;  %v178_v31 = vld [vmem:[%s9091_s0 + $0xa8] sm:$0xff]  ;;  %v6540_v35 = vpack.c.bf16 %v330_v27, %v329_v26 }
  0x63   :  { %261 = vst [vmem:[#allocation2 + $0x219] sm:$0xff] %v196_v36  ;;  %264 = vst [vmem:[#allocation2 + $0x241] sm:$0xff] %v199_v37  ;;  %v338_v60 = vld [vmem:[#allocation2 + $0x61] ss:$2 sm:$0xff]  ;;  %5453 = vmatmul.mubr.f32.vlgmr.msra.gmra.mrb[0].mxu0 %v336_v59  ;;  %v290_v3 = vld [vmem:[#allocation2 + $0x60] ss:$2 sm:$0xff] }
  0x64   :  { %265 = vst [vmem:[#allocation2 + $0x249] sm:$0xff] %v200_v38  ;;  %268 = vst [vmem:[#allocation2 + $0x271] sm:$0xff] %v203_v42  ;;  %6519 = vmatpush3.bf16.msra.mxu0 %v6516_v56  ;;  %5455 = vmatprep.mubr.f32.mxu0 %v338_v60  ;;  %v340_v0 = vld [vmem:[#allocation2 + $0x91] ss:$2 sm:$0xff]  ;;  %v182_v36 = vld [vmem:[%s9091_s0 + $0xc8] sm:$0xff] }
  0x65   :  { %269 = vst [vmem:[#allocation2 + $0x279] sm:$0xff] %v204_v43  ;;  %272 = vst [vmem:[#allocation2 + $0x2a1] sm:$0xff] %v207_v44  ;;  %6521 = vmatprep.subr.bf16.mxu0 %v6520_v61  ;;  %v342_v1 = vld [vmem:[#allocation2 + $0xc1] ss:$2 sm:$0xff]  ;;  %v286_v56 = vld [vmem:[#allocation2] ss:$2 sm:$0xff] }
  0x66   :  { %273 = vst [vmem:[#allocation2 + $0x2a9] sm:$0xff] %v208_v45  ;;  %276 = vst [vmem:[#allocation2 + $0x2d1] sm:$0xff] %v211_v48  ;;  %v344_v5 = vld [vmem:[#allocation2 + $0xf1] ss:$2 sm:$0xff]  ;;  %v185_v37 = vld [vmem:[%s9091_s0 + $0xe0] sm:$0xff] }
  0x67   :  { %277 = vst [vmem:[#allocation2 + $0x2d9] sm:$0xff] %v212_v49  ;;  %280 = vst [vmem:[#allocation2 + $0x301] sm:$0xff] %v215_v51  ;;  %5456 = vmatmul.mubr.f32.gmra.mrb[2].mxu0 %v340_v0  ;;  %v346_v6 = vld [vmem:[#allocation2 + $0x121] ss:$2 sm:$0xff]  ;;  %v4697_v60 = vld [vmem:[%s9092_s1 + $0x118] sm:$0xff] }
  0x68   :  { %281 = vst [vmem:[#allocation2 + $0x309] sm:$0xff] %v216_v52  ;;  %6523 = vmatpush3.bf16.msra.mxu0 %v6520_v61  ;;  %5458 = vmatprep.mubr.f32.mxu0 %v342_v1  ;;  %v348_v10 = vld [vmem:[#allocation2 + $0x151] ss:$2 sm:$0xff]  ;;  %222 = vst [vmem:[#allocation2 + $0x19] sm:$0xff] %v157_v15  ;;  %v186_v38 = vld [vmem:[%s9091_s0 + $0xe8] sm:$0xff]  ;;  %v6552_v4 = vpack.c.bf16 %v4697_v60, %v4696_v58 }
  0x69   :  { %6525 = vmatprep.subr.bf16.mxu0 %v6524_v2  ;;  %v352_v19 = vld [vmem:[#allocation2 + $0x1e1] ss:$2 sm:$0xff]  ;;  %223 = vst [vmem:[#allocation2 + $0x21] sm:$0xff] %v158_v16  ;;  %226 = vst [vmem:[#allocation2 + $0x49] sm:$0xff] %v161_v17  ;;  %v288_v0 = vld [vmem:[#allocation2 + $0x30] ss:$2 sm:$0xff] }
  0x6a   :  { %v354_v20 = vld [vmem:[#allocation2 + $0x211] ss:$2 sm:$0xff]  ;;  %227 = vst [vmem:[#allocation2 + $0x51] sm:$0xff] %v162_v18  ;;  %230 = vst [vmem:[#allocation2 + $0x79] sm:$0xff] %v165_v21  ;;  %v190_v42 = vld [vmem:[%s9091_s0 + $0x108] sm:$0xff] }
  0x6b   :  { %5459 = vmatmul.mubr.f32.gmra.mrb[4].mxu0 %v344_v5  ;;  %231 = vst [vmem:[#allocation2 + $0x81] sm:$0xff] %v166_v23  ;;  %234 = vst [vmem:[#allocation2 + $0xa9] sm:$0xff] %v169_v24  ;;  %v356_v32 = vld [vmem:[#allocation2 + $0x241] ss:$2 sm:$0xff]  ;;  %v292_v8 = vld [vmem:[#allocation2 + $0x90] ss:$2 sm:$0xff] }
  0x6c   :  { %6527 = vmatpush3.bf16.msra.mxu0 %v6524_v2  ;;  %5461 = vmatprep.mubr.f32.mxu0 %v346_v6  ;;  %235 = vst [vmem:[#allocation2 + $0xb1] sm:$0xff] %v170_v25  ;;  %238 = vst [vmem:[#allocation2 + $0xd9] sm:$0xff] %v173_v28  ;;  %v358_v33 = vld [vmem:[#allocation2 + $0x271] ss:$2 sm:$0xff]  ;;  %v193_v44 = vld [vmem:[%s9091_s0 + $0x120] sm:$0xff] }
  0x6d   :  { %6529 = vmatprep.subr.bf16.mxu0 %v6528_v7  ;;  %239 = vst [vmem:[#allocation2 + $0xe1] sm:$0xff] %v174_v29  ;;  %242 = vst [vmem:[#allocation2 + $0x109] sm:$0xff] %v177_v30  ;;  %v360_v43 = vld [vmem:[#allocation2 + $0x2a1] ss:$2 sm:$0xff]  ;;  %v294_v9 = vld [vmem:[#allocation2 + $0xc0] ss:$2 sm:$0xff] }
  0x6e   :  { %243 = vst [vmem:[#allocation2 + $0x111] sm:$0xff] %v178_v31  ;;  %246 = vst [vmem:[#allocation2 + $0x139] sm:$0xff] %v181_v34  ;;  %v194_v45 = vld [vmem:[%s9091_s0 + $0x128] sm:$0xff]  ;;  %v362_v46 = vld [vmem:[#allocation2 + $0x2d1] ss:$2 sm:$0xff] }
  0x6f   :  { %5462 = vmatmul.mubr.f32.gmra.mrb[6].mxu0 %v348_v10  ;;  %247 = vst [vmem:[#allocation2 + $0x141] sm:$0xff] %v182_v36  ;;  %250 = vst [vmem:[#allocation2 + $0x169] sm:$0xff] %v185_v37  ;;  %v4694_v48 = vld [vmem:[%s9092_s1 + $0x100] sm:$0xff]  ;;  %v4695_v49 = vld [vmem:[%s9092_s1 + $0x108] sm:$0xff] }
  0x70   :  { %6531 = vmatpush3.bf16.msra.mxu0 %v6528_v7  ;;  %5464 = vmatprep.mubr.f32.mxu0 %v350_v11  ;;  %251 = vst [vmem:[#allocation2 + $0x171] sm:$0xff] %v186_v38  ;;  %254 = vst [vmem:[#allocation2 + $0x1c9] sm:$0xff] %v189_v41  ;;  %v198_v51 = vld [vmem:[%s9091_s0 + $0x148] sm:$0xff]  ;;  %v201_v52 = vld [vmem:[%s9091_s0 + $0x160] sm:$0xff]  ;;  %v6548_v57 = vpack.c.bf16 %v4695_v49, %v4694_v48 }
  0x71   :  { %6533 = vmatprep.subr.bf16.mxu0 %v6532_v12  ;;  %255 = vst [vmem:[#allocation2 + $0x1d1] sm:$0xff] %v190_v42  ;;  %258 = vst [vmem:[#allocation2 + $0x1f9] sm:$0xff] %v193_v44  ;;  %v364_v54 = vld [vmem:[#allocation2 + $0x301] ss:$2 sm:$0xff]  ;;  %v4700_v11 = vld [vmem:[%s9092_s1 + $0x130] sm:$0xff] }
  0x72   :  { %259 = vst [vmem:[#allocation2 + $0x201] sm:$0xff] %v194_v45  ;;  %262 = vst [vmem:[#allocation2 + $0x229] sm:$0xff] %v197_v50  ;;  %v206_v59 = vld [vmem:[%s9091_s0 + $0x188] sm:$0xff]  ;;  %v209_v61 = vld [vmem:[%s9091_s0 + $0x1a0] sm:$0xff] }
  0x73   :  { %5465 = vmatmul.mubr.f32.gmra.mrb[8].mxu0 %v352_v19  ;;  %263 = vst [vmem:[#allocation2 + $0x231] sm:$0xff] %v198_v51  ;;  %266 = vst [vmem:[#allocation2 + $0x259] sm:$0xff] %v201_v52  ;;  %v214_v1 = vld [vmem:[%s9091_s0 + $0x1c8] sm:$0xff]  ;;  %v217_v2 = vld [vmem:[%s9091_s0 + $0x1e0] sm:$0xff] }
  0x74   :  { %6535 = vmatpush3.bf16.msra.mxu0 %v6532_v12  ;;  %5467 = vmatprep.mubr.f32.mxu0 %v354_v20  ;;  %267 = vst [vmem:[#allocation2 + $0x261] sm:$0xff] %v202_v53  ;;  %270 = vst [vmem:[#allocation2 + $0x289] sm:$0xff] %v205_v55  ;;  %v218_v5 = vld [vmem:[%s9091_s0 + $0x1e8] sm:$0xff]  ;;  %v4698_v6 = vld [vmem:[%s9092_s1 + $0x120] sm:$0xff] }
  0x75   :  { %6537 = vmatprep.subr.bf16.mxu0 %v6536_v22  ;;  %271 = vst [vmem:[#allocation2 + $0x291] sm:$0xff] %v206_v59  ;;  %274 = vst [vmem:[#allocation2 + $0x2b9] sm:$0xff] %v209_v61  ;;  %v4699_v7 = vld [vmem:[%s9092_s1 + $0x128] sm:$0xff]  ;;  %v4701_v12 = vld [vmem:[%s9092_s1 + $0x138] sm:$0xff] }
  0x76   :  { %275 = vst [vmem:[#allocation2 + $0x2c1] sm:$0xff] %v210_v62  ;;  %278 = vst [vmem:[#allocation2 + $0x2e9] sm:$0xff] %v213_v63  ;;  %v6556_v10 = vpack.c.bf16 %v4699_v7, %v4698_v6  ;;  %v296_v13 = vld [vmem:[#allocation2 + $0xf0] ss:$2 sm:$0xff]  ;;  %v298_v14 = vld [vmem:[#allocation2 + $0x120] ss:$2 sm:$0xff]  ;;  %v6560_v15 = vpack.c.bf16 %v4701_v12, %v4700_v11 }
  0x77   :  { %5468 = vmatmul.mubr.f32.gmra.mrb[10].mxu0 %v356_v32  ;;  %279 = vst [vmem:[#allocation2 + $0x2f1] sm:$0xff] %v214_v1  ;;  %282 = vst [vmem:[#allocation2 + $0x319] sm:$0xff] %v217_v2  ;;  %v4702_v16 = vld [vmem:[%s9092_s1 + $0x140] sm:$0xff]  ;;  %v4703_v17 = vld [vmem:[%s9092_s1 + $0x148] sm:$0xff] }
  0x78   :  { %6539 = vmatpush3.bf16.msra.mxu0 %v6536_v22  ;;  %5470 = vmatprep.mubr.f32.mxu0 %v358_v33  ;;  %283 = vst [vmem:[#allocation2 + $0x321] sm:$0xff] %v218_v5  ;;  %v300_v18 = vld [vmem:[#allocation2 + $0x150] ss:$2 sm:$0xff]  ;;  %v6564_v20 = vpack.c.bf16 %v4703_v17, %v4702_v16  ;;  %v304_v23 = vld [vmem:[#allocation2 + $0x1e0] ss:$2 sm:$0xff] }
  0x79   :  { %6541 = vmatprep.subr.bf16.mxu0 %v6540_v35  ;;  %v302_v19 = vld [vmem:[#allocation2 + $0x1b0] ss:$2 sm:$0xff]  ;;  %v4706_v26 = vld [vmem:[%s9092_s1 + $0x160] sm:$0xff]  ;;  %v4707_v27 = vld [vmem:[%s9092_s1 + $0x168] sm:$0xff] }
  0x7a   :  { %v4704_v21 = vld [vmem:[%s9092_s1 + $0x150] sm:$0xff]  ;;  %v4705_v22 = vld [vmem:[%s9092_s1 + $0x158] sm:$0xff]  ;;  %v308_v28 = vld [vmem:[#allocation2 + $0x240] ss:$2 sm:$0xff]  ;;  %v6572_v30 = vpack.c.bf16 %v4707_v27, %v4706_v26 }
  0x7b   :  { %5471 = vmatmul.mubr.f32.gmra.mrb[12].mxu0 %v360_v43  ;;  %v306_v24 = vld [vmem:[#allocation2 + $0x210] ss:$2 sm:$0xff]  ;;  %v6568_v25 = vpack.c.bf16 %v4705_v22, %v4704_v21  ;;  %v312_v33 = vld [vmem:[#allocation2 + $0x2a0] ss:$2 sm:$0xff] }
  0x7c   :  { %6543 = vmatpush3.bf16.msra.mxu0 %v6540_v35  ;;  %5473 = vmatprep.mubr.f32.mxu0 %v362_v46  ;;  %v310_v29 = vld [vmem:[#allocation2 + $0x270] ss:$2 sm:$0xff]  ;;  %v4710_v36 = vld [vmem:[%s9092_s1 + $0x180] sm:$0xff]  ;;  %v4711_v37 = vld [vmem:[%s9092_s1 + $0x188] sm:$0xff] }
  0x7d   :  { %6545 = vmatprep.subr.bf16.mxu0 %v6544_v47  ;;  %v4708_v31 = vld [vmem:[%s9092_s1 + $0x170] sm:$0xff]  ;;  %v4709_v32 = vld [vmem:[%s9092_s1 + $0x178] sm:$0xff]  ;;  %v316_v38 = vld [vmem:[#allocation2 + $0x300] ss:$2 sm:$0xff]  ;;  %v6580_v40 = vpack.c.bf16 %v4711_v37, %v4710_v36 }
  0x7e   :  { %v314_v34 = vld [vmem:[#allocation2 + $0x2d0] ss:$2 sm:$0xff]  ;;  %v6576_v35 = vpack.c.bf16 %v4709_v32, %v4708_v31  ;;  %v4714_v46 = vld [vmem:[%s9092_s1 + $0x1a0] sm:$0xff]  ;;  %v4719_v59 = vld [vmem:[%s9092_s1 + $0x1c8] sm:$0xff] }
  0x7f   :  { %5474 = vmatmul.mubr.f32.gmra.mrb[14].mxu0 %v364_v54  ;;  %v4712_v41 = vld [vmem:[%s9092_s1 + $0x190] sm:$0xff]  ;;  %v4713_v42 = vld [vmem:[%s9092_s1 + $0x198] sm:$0xff]  ;;  %v4718_v58 = vld [vmem:[%s9092_s1 + $0x1c0] sm:$0xff] }
  0x80   :  { %6547 = vmatpush3.bf16.msra.mxu0 %v6544_v47  ;;  %5508 = vmatprep.mubr.f32.mxu0 %v286_v56  ;;  %v675_v43 = vld [vmem:[#allocation2 + $0x32] ss:$2 sm:$0xff]  ;;  %v677_v44 = vld [vmem:[#allocation2 + $0x62] ss:$2 sm:$0xff]  ;;  %v6584_v45 = vpack.c.bf16 %v4713_v42, %v4712_v41  ;;  %v6596_v62 = vpack.c.bf16 %v4719_v59, %v4718_v58  ;;  %v1092_v59 = vld [vmem:[#allocation2 + $0x19] ss:$2 sm:$0xff] }
  0x81   :  { %6549 = vmatprep.subr.bf16.mxu0 %v6548_v57  ;;  %v4715_v47 = vld [vmem:[%s9092_s1 + $0x1a8] sm:$0xff]  ;;  %v679_v48 = vld [vmem:[#allocation2 + $0x92] ss:$2 sm:$0xff] }
  0x82   :  { %v681_v49 = vld [vmem:[#allocation2 + $0xc2] ss:$2 sm:$0xff]  ;;  %v6588_v50 = vpack.c.bf16 %v4715_v47, %v4714_v46  ;;  %v4717_v52 = vld [vmem:[%s9092_s1 + $0x1b8] sm:$0xff] }
  0x83   :  { %5509 = vmatmul.mubr.f32.vlgmr.msra.gmra.mrb[0].mxu0 %v288_v0  ;;  %v4716_v51 = vld [vmem:[%s9092_s1 + $0x1b0] sm:$0xff]  ;;  %v188_v54 = vld [vmem:[%s9091_s0 + $0xf8] sm:$0xff]  ;;  %v4723_v5 = vld [vmem:[%s9092_s1 + $0x1e8] sm:$0xff] }
  0x84   :  { %6551 = vmatpush3.bf16.msra.mxu0 %v6548_v57  ;;  %5511 = vmatprep.mubr.f32.mxu0 %v290_v3  ;;  %v187_v53 = vld [vmem:[%s9091_s0 + $0xf0] sm:$0xff]  ;;  %253 = vst [vmem:[#allocation2 + $0x189] sm:$0xff] %v188_v54  ;;  %v6592_v57 = vpack.c.bf16 %v4717_v52, %v4716_v51  ;;  %v4721_v0 = vld [vmem:[%s9092_s1 + $0x1d8] sm:$0xff]  ;;  %v4726_v16 = vld [vmem:[%s9092_s1 + $0x200] sm:$0xff] }
  0x85   :  { %6553 = vmatprep.subr.bf16.mxu0 %v6552_v4  ;;  %252 = vst [vmem:[#allocation2 + $0x181] sm:$0xff] %v187_v53  ;;  %v683_v55 = vld [vmem:[#allocation2 + $0xf2] ss:$2 sm:$0xff]  ;;  %v685_v56 = vld [vmem:[#allocation2 + $0x122] ss:$2 sm:$0xff] }
  0x86   :  { %v687_v60 = vld [vmem:[#allocation2 + $0x152] ss:$2 sm:$0xff]  ;;  %v691_v1 = vld [vmem:[#allocation2 + $0x1e2] ss:$2 sm:$0xff] }
  0x87   :  { %5512 = vmatmul.mubr.f32.gmra.mrb[2].mxu0 %v292_v8  ;;  %v689_v61 = vld [vmem:[#allocation2 + $0x1b2] ss:$2 sm:$0xff]  ;;  %v695_v6 = vld [vmem:[#allocation2 + $0x242] ss:$2 sm:$0xff] }
  0x88   :  { %6555 = vmatpush3.bf16.msra.mxu0 %v6552_v4  ;;  %5514 = vmatprep.mubr.f32.mxu0 %v294_v9  ;;  %v4720_v63 = vld [vmem:[%s9092_s1 + $0x1d0] sm:$0xff]  ;;  %v4722_v4 = vld [vmem:[%s9092_s1 + $0x1e0] sm:$0xff]  ;;  %v220_v12 = vld [vmem:[%s9091_s0 + $0x1f8] sm:$0xff] }
  0x89   :  { %6557 = vmatprep.subr.bf16.mxu0 %v6556_v10  ;;  %v693_v2 = vld [vmem:[#allocation2 + $0x212] ss:$2 sm:$0xff]  ;;  %v6600_v3 = vpack.c.bf16 %v4721_v0, %v4720_v63  ;;  %v6604_v8 = vpack.c.bf16 %v4723_v5, %v4722_v4  ;;  %285 = vst [vmem:[#allocation2 + $0x339] sm:$0xff] %v220_v12  ;;  %v4727_v17 = vld [vmem:[%s9092_s1 + $0x208] sm:$0xff]  ;;  %v1096_v0 = vld [vmem:[#allocation2 + $0x79] ss:$2 sm:$0xff] }
  0x8a   :  { %v697_v7 = vld [vmem:[#allocation2 + $0x272] ss:$2 sm:$0xff]  ;;  %v4731_v27 = vld [vmem:[%s9092_s1 + $0x228] sm:$0xff]  ;;  %v1100_v5 = vld [vmem:[#allocation2 + $0xd9] ss:$2 sm:$0xff] }
  0x8b   :  { %5515 = vmatmul.mubr.f32.gmra.mrb[4].mxu0 %v296_v13  ;;  %v4724_v9 = vld [vmem:[%s9092_s1 + $0x1f0] sm:$0xff]  ;;  %v4729_v22 = vld [vmem:[%s9092_s1 + $0x218] sm:$0xff]  ;;  %v4730_v26 = vld [vmem:[%s9092_s1 + $0x220] sm:$0xff] }
  0x8c   :  { %6559 = vmatpush3.bf16.msra.mxu0 %v6556_v10  ;;  %5517 = vmatprep.mubr.f32.mxu0 %v298_v14  ;;  %v4725_v10 = vld [vmem:[%s9092_s1 + $0x1f8] sm:$0xff]  ;;  %v219_v11 = vld [vmem:[%s9091_s0 + $0x1f0] sm:$0xff]  ;;  %v4734_v36 = vld [vmem:[%s9092_s1 + $0x240] sm:$0xff] }
  0x8d   :  { %6561 = vmatprep.subr.bf16.mxu0 %v6560_v15  ;;  %284 = vst [vmem:[#allocation2 + $0x331] sm:$0xff] %v219_v11  ;;  %v699_v13 = vld [vmem:[#allocation2 + $0x2a2] ss:$2 sm:$0xff]  ;;  %v701_v14 = vld [vmem:[#allocation2 + $0x2d2] ss:$2 sm:$0xff] }
  0x8e   :  { %v4728_v21 = vld [vmem:[%s9092_s1 + $0x210] sm:$0xff]  ;;  %v4733_v32 = vld [vmem:[%s9092_s1 + $0x238] sm:$0xff]  ;;  %v4735_v37 = vld [vmem:[%s9092_s1 + $0x248] sm:$0xff] }
  0x8f   :  { %5518 = vmatmul.mubr.f32.gmra.mrb[6].mxu0 %v300_v18  ;;  %v703_v18 = vld [vmem:[#allocation2 + $0x302] ss:$2 sm:$0xff]  ;;  %v4737_v42 = vld [vmem:[%s9092_s1 + $0x258] sm:$0xff]  ;;  %v1094_v63 = vld [vmem:[#allocation2 + $0x49] ss:$2 sm:$0xff] }
  0x90   :  { %6563 = vmatpush3.bf16.msra.mxu0 %v6560_v15  ;;  %5520 = vmatprep.mubr.f32.mxu0 %v302_v19  ;;  %v6608_v15 = vpack.c.bf16 %v4725_v10, %v4724_v9  ;;  %v882_v19 = vld [vmem:[#allocation2 + $0x18] ss:$2 sm:$0xff]  ;;  %v4732_v31 = vld [vmem:[%s9092_s1 + $0x230] sm:$0xff]  ;;  %v4739_v47 = vld [vmem:[%s9092_s1 + $0x268] sm:$0xff] }
  0x91   :  { %6565 = vmatprep.subr.bf16.mxu0 %v6564_v20  ;;  %v4736_v41 = vld [vmem:[%s9092_s1 + $0x250] sm:$0xff]  ;;  %v4738_v46 = vld [vmem:[%s9092_s1 + $0x260] sm:$0xff]  ;;  %v4741_v52 = vld [vmem:[%s9092_s1 + $0x278] sm:$0xff] }
  0x92   :  { %v4740_v51 = vld [vmem:[%s9092_s1 + $0x270] sm:$0xff]  ;;  %v908_v53 = vld [vmem:[#allocation2 + $0x2b8] ss:$2 sm:$0xff]  ;;  %v1104_v10 = vld [vmem:[#allocation2 + $0x139] ss:$2 sm:$0xff] }
  0x93   :  { %5521 = vmatmul.mubr.f32.gmra.mrb[8].mxu0 %v304_v23  ;;  %v884_v23 = vld [vmem:[#allocation2 + $0x48] ss:$2 sm:$0xff]  ;;  %v912_v58 = vld [vmem:[#allocation2 + $0x318] ss:$2 sm:$0xff]  ;;  %v1098_v4 = vld [vmem:[#allocation2 + $0xa9] ss:$2 sm:$0xff] }
  0x94   :  { %6567 = vmatpush3.bf16.msra.mxu0 %v6564_v20  ;;  %5523 = vmatprep.mubr.f32.mxu0 %v306_v24  ;;  %v6612_v20 = vpack.c.bf16 %v4727_v17, %v4726_v16  ;;  %v886_v24 = vld [vmem:[#allocation2 + $0x78] ss:$2 sm:$0xff]  ;;  %v910_v54 = vld [vmem:[#allocation2 + $0x2e8] ss:$2 sm:$0xff]  ;;  %v1102_v9 = vld [vmem:[#allocation2 + $0x109] ss:$2 sm:$0xff] }
  0x95   :  { %6569 = vmatprep.subr.bf16.mxu0 %v6568_v25  ;;  %v4750_v12 = vld [vmem:[%s9092_s1 + $0x2c0] sm:$0xff]  ;;  %v4752_v17 = vld [vmem:[%s9092_s1 + $0x2d0] sm:$0xff] }
  0x97   :  { %5524 = vmatmul.mubr.f32.gmra.mrb[10].mxu0 %v308_v28  ;;  %v888_v28 = vld [vmem:[#allocation2 + $0xa8] ss:$2 sm:$0xff] }
  0x98   :  { %6571 = vmatpush3.bf16.msra.mxu0 %v6568_v25  ;;  %5526 = vmatprep.mubr.f32.mxu0 %v310_v29  ;;  %v6616_v25 = vpack.c.bf16 %v4729_v22, %v4728_v21  ;;  %v890_v29 = vld [vmem:[#allocation2 + $0xd8] ss:$2 sm:$0xff] }
  0x99   :  { %6573 = vmatprep.subr.bf16.mxu0 %v6572_v30  ;;  %v4754_v22 = vld [vmem:[%s9092_s1 + $0x2e0] sm:$0xff] }
  0x9b   :  { %5527 = vmatmul.mubr.f32.gmra.mrb[12].mxu0 %v312_v33  ;;  %v892_v33 = vld [vmem:[#allocation2 + $0x108] ss:$2 sm:$0xff] }
  0x9c   :  { %6575 = vmatpush3.bf16.msra.mxu0 %v6572_v30  ;;  %5529 = vmatprep.mubr.f32.mxu0 %v314_v34  ;;  %v6620_v30 = vpack.c.bf16 %v4731_v27, %v4730_v26  ;;  %v894_v34 = vld [vmem:[#allocation2 + $0x138] ss:$2 sm:$0xff]  ;;  %v4756_v27 = vld [vmem:[%s9092_s1 + $0x2f0] sm:$0xff] }
  0x9d   :  { %6577 = vmatprep.subr.bf16.mxu0 %v6576_v35 }
  0x9f   :  { %5530 = vmatmul.mubr.f32.gmra.mrb[14].mxu0 %v316_v38  ;;  %v896_v38 = vld [vmem:[#allocation2 + $0x168] ss:$2 sm:$0xff] }
  0xa0   :  { %6579 = vmatpush3.bf16.msra.mxu0 %v6576_v35  ;;  %5564 = vmatprep.mubr.f32.mxu0 %v673_v39  ;;  %v6624_v35 = vpack.c.bf16 %v4733_v32, %v4732_v31  ;;  %v898_v39 = vld [vmem:[#allocation2 + $0x1c8] ss:$2 sm:$0xff]  ;;  %v4758_v32 = vld [vmem:[%s9092_s1 + $0x300] sm:$0xff] }
  0xa1   :  { %6581 = vmatprep.subr.bf16.mxu0 %v6580_v40 }
  0xa3   :  { %5565 = vmatmul.mubr.f32.vlgmr.msra.gmra.mrb[0].mxu0 %v675_v43  ;;  %v900_v43 = vld [vmem:[#allocation2 + $0x1f8] ss:$2 sm:$0xff] }
  0xa4   :  { %6583 = vmatpush3.bf16.msra.mxu0 %v6580_v40  ;;  %5567 = vmatprep.mubr.f32.mxu0 %v677_v44  ;;  %v6628_v40 = vpack.c.bf16 %v4735_v37, %v4734_v36  ;;  %v902_v44 = vld [vmem:[#allocation2 + $0x228] ss:$2 sm:$0xff] }
  0xa5   :  { %6585 = vmatprep.subr.bf16.mxu0 %v6584_v45  ;;  %v4760_v37 = vld [vmem:[%s9092_s1 + $0x310] sm:$0xff] }
  0xa7   :  { %5568 = vmatmul.mubr.f32.gmra.mrb[2].mxu0 %v679_v48  ;;  %v904_v48 = vld [vmem:[#allocation2 + $0x258] ss:$2 sm:$0xff] }
  0xa8   :  { %6587 = vmatpush3.bf16.msra.mxu0 %v6584_v45  ;;  %5570 = vmatprep.mubr.f32.mxu0 %v681_v49  ;;  %v6632_v45 = vpack.c.bf16 %v4737_v42, %v4736_v41  ;;  %v906_v49 = vld [vmem:[#allocation2 + $0x288] ss:$2 sm:$0xff]  ;;  %v4762_v42 = vld [vmem:[%s9092_s1 + $0x320] sm:$0xff] }
  0xa9   :  { %6589 = vmatprep.subr.bf16.mxu0 %v6588_v50 }
  0xab   :  { %5571 = vmatmul.mubr.f32.gmra.mrb[4].mxu0 %v683_v55  ;;  %v6640_v55 = vpack.c.bf16 %v4741_v52, %v4740_v51  ;;  %v4766_v52 = vld [vmem:[%s9092_s1 + $0x340] sm:$0xff] }
  0xac   :  { %6591 = vmatpush3.bf16.msra.mxu0 %v6588_v50  ;;  %5573 = vmatprep.mubr.f32.mxu0 %v685_v56  ;;  %v6636_v50 = vpack.c.bf16 %v4739_v47, %v4738_v46  ;;  %v4742_v56 = vld [vmem:[%s9092_s1 + $0x280] sm:$0xff]  ;;  %v4764_v47 = vld [vmem:[%s9092_s1 + $0x330] sm:$0xff] }
  0xad   :  { %6593 = vmatprep.subr.bf16.mxu0 %v6592_v57 }
  0xaf   :  { %5574 = vmatmul.mubr.f32.gmra.mrb[6].mxu0 %v687_v60 }
  0xb0   :  { %6595 = vmatpush3.bf16.msra.mxu0 %v6592_v57  ;;  %5576 = vmatprep.mubr.f32.mxu0 %v689_v61  ;;  %v4743_v57 = vld [vmem:[%s9092_s1 + $0x288] sm:$0xff]  ;;  %v4744_v61 = vld [vmem:[%s9092_s1 + $0x290] sm:$0xff] }
  0xb1   :  { %6597 = vmatprep.subr.bf16.mxu0 %v6596_v62  ;;  %v6644_v60 = vpack.c.bf16 %v4743_v57, %v4742_v56  ;;  %v4768_v57 = vld [vmem:[%s9092_s1 + $0x350] sm:$0xff] }
  0xb3   :  { %5577 = vmatmul.mubr.f32.gmra.mrb[8].mxu0 %v691_v1 }
  0xb4   :  { %6599 = vmatpush3.bf16.msra.mxu0 %v6596_v62  ;;  %5579 = vmatprep.mubr.f32.mxu0 %v693_v2  ;;  %v4745_v62 = vld [vmem:[%s9092_s1 + $0x298] sm:$0xff]  ;;  %v4746_v2 = vld [vmem:[%s9092_s1 + $0x2a0] sm:$0xff] }
  0xb5   :  { %6601 = vmatprep.subr.bf16.mxu0 %v6600_v3  ;;  %v6648_v1 = vpack.c.bf16 %v4745_v62, %v4744_v61  ;;  %v4770_v62 = vld [vmem:[%s9092_s1 + $0x360] sm:$0xff] }
  0xb7   :  { %5580 = vmatmul.mubr.f32.gmra.mrb[10].mxu0 %v695_v6 }
  0xb8   :  { %6603 = vmatpush3.bf16.msra.mxu0 %v6600_v3  ;;  %5582 = vmatprep.mubr.f32.mxu0 %v697_v7  ;;  %v4747_v3 = vld [vmem:[%s9092_s1 + $0x2a8] sm:$0xff]  ;;  %v4748_v7 = vld [vmem:[%s9092_s1 + $0x2b0] sm:$0xff] }
  0xb9   :  { %6605 = vmatprep.subr.bf16.mxu0 %v6604_v8  ;;  %v6652_v6 = vpack.c.bf16 %v4747_v3, %v4746_v2  ;;  %v4772_v3 = vld [vmem:[%s9092_s1 + $0x370] sm:$0xff] }
  0xbb   :  { %5583 = vmatmul.mubr.f32.gmra.mrb[12].mxu0 %v699_v13  ;;  %v4751_v13 = vld [vmem:[%s9092_s1 + $0x2c8] sm:$0xff] }
  0xbc   :  { %6607 = vmatpush3.bf16.msra.mxu0 %v6604_v8  ;;  %5585 = vmatprep.mubr.f32.mxu0 %v701_v14  ;;  %v4749_v8 = vld [vmem:[%s9092_s1 + $0x2b8] sm:$0xff]  ;;  %v1106_v14 = vld [vmem:[#allocation2 + $0x169] ss:$2 sm:$0xff]  ;;  %v6660_v16 = vpack.c.bf16 %v4751_v13, %v4750_v12 }
  0xbd   :  { %6609 = vmatprep.subr.bf16.mxu0 %v6608_v15  ;;  %v6656_v11 = vpack.c.bf16 %v4749_v8, %v4748_v7  ;;  %v4774_v8 = vld [vmem:[%s9092_s1 + $0x380] sm:$0xff]  ;;  %v4776_v13 = vld [vmem:[%s9092_s1 + $0x390] sm:$0xff] }
  0xbf   :  { %5586 = vmatmul.mubr.f32.gmra.mrb[14].mxu0 %v703_v18  ;;  %v4753_v18 = vld [vmem:[%s9092_s1 + $0x2d8] sm:$0xff] }
  0xc0   :  { %6611 = vmatpush3.bf16.msra.mxu0 %v6608_v15  ;;  %5620 = vmatprep.mubr.f32.mxu0 %v882_v19  ;;  %v1108_v15 = vld [vmem:[#allocation2 + $0x1c9] ss:$2 sm:$0xff]  ;;  %v1110_v19 = vld [vmem:[#allocation2 + $0x1f9] ss:$2 sm:$0xff]  ;;  %v6664_v21 = vpack.c.bf16 %v4753_v18, %v4752_v17 }
  0xc1   :  { %6613 = vmatprep.subr.bf16.mxu0 %v6612_v20  ;;  %v4778_v18 = vld [vmem:[%s9092_s1 + $0x3a0] sm:$0xff] }
  0xc3   :  { %5621 = vmatmul.mubr.f32.vlgmr.msra.gmra.mrb[0].mxu0 %v884_v23  ;;  %v4755_v23 = vld [vmem:[%s9092_s1 + $0x2e8] sm:$0xff] }
  0xc4   :  { %6615 = vmatpush3.bf16.msra.mxu0 %v6612_v20  ;;  %5623 = vmatprep.mubr.f32.mxu0 %v886_v24  ;;  %v1112_v20 = vld [vmem:[#allocation2 + $0x229] ss:$2 sm:$0xff]  ;;  %v1114_v24 = vld [vmem:[#allocation2 + $0x259] ss:$2 sm:$0xff]  ;;  %v6668_v26 = vpack.c.bf16 %v4755_v23, %v4754_v22 }
  0xc5   :  { %6617 = vmatprep.subr.bf16.mxu0 %v6616_v25  ;;  %v4780_v23 = vld [vmem:[%s9092_s1 + $0x3b0] sm:$0xff] }
  0xc7   :  { %5624 = vmatmul.mubr.f32.gmra.mrb[2].mxu0 %v888_v28  ;;  %v4757_v28 = vld [vmem:[%s9092_s1 + $0x2f8] sm:$0xff] }
  0xc8   :  { %6619 = vmatpush3.bf16.msra.mxu0 %v6616_v25  ;;  %5626 = vmatprep.mubr.f32.mxu0 %v890_v29  ;;  %v1116_v25 = vld [vmem:[#allocation2 + $0x289] ss:$2 sm:$0xff]  ;;  %v1118_v29 = vld [vmem:[#allocation2 + $0x2b9] ss:$2 sm:$0xff]  ;;  %v6672_v31 = vpack.c.bf16 %v4757_v28, %v4756_v27 }
  0xc9   :  { %6621 = vmatprep.subr.bf16.mxu0 %v6620_v30  ;;  %v4782_v28 = vld [vmem:[%s9092_s1 + $0x3c0] sm:$0xff] }
  0xcb   :  { %5627 = vmatmul.mubr.f32.gmra.mrb[4].mxu0 %v892_v33  ;;  %v4759_v33 = vld [vmem:[%s9092_s1 + $0x308] sm:$0xff] }
  0xcc   :  { %6623 = vmatpush3.bf16.msra.mxu0 %v6620_v30  ;;  %5629 = vmatprep.mubr.f32.mxu0 %v894_v34  ;;  %v1120_v30 = vld [vmem:[#allocation2 + $0x2e9] ss:$2 sm:$0xff]  ;;  %v1122_v34 = vld [vmem:[#allocation2 + $0x319] ss:$2 sm:$0xff]  ;;  %v6676_v36 = vpack.c.bf16 %v4759_v33, %v4758_v32 }
  0xcd   :  { %6625 = vmatprep.subr.bf16.mxu0 %v6624_v35  ;;  %v4784_v33 = vld [vmem:[%s9092_s1 + $0x3d0] sm:$0xff] }
  0xcf   :  { %5630 = vmatmul.mubr.f32.gmra.mrb[6].mxu0 %v896_v38  ;;  %v4761_v38 = vld [vmem:[%s9092_s1 + $0x318] sm:$0xff] }
  0xd0   :  { %6627 = vmatpush3.bf16.msra.mxu0 %v6624_v35  ;;  %5632 = vmatprep.mubr.f32.mxu0 %v898_v39  ;;  %v1302_v35 = vld [vmem:[#allocation2 + $0x1a] ss:$2 sm:$0xff]  ;;  %v1304_v39 = vld [vmem:[#allocation2 + $0x4a] ss:$2 sm:$0xff]  ;;  %v6680_v41 = vpack.c.bf16 %v4761_v38, %v4760_v37 }
  0xd1   :  { %6629 = vmatprep.subr.bf16.mxu0 %v6628_v40  ;;  %v4786_v38 = vld [vmem:[%s9092_s1 + $0x3e0] sm:$0xff] }
  0xd3   :  { %5633 = vmatmul.mubr.f32.gmra.mrb[8].mxu0 %v900_v43  ;;  %v4763_v43 = vld [vmem:[%s9092_s1 + $0x328] sm:$0xff] }
  0xd4   :  { %6631 = vmatpush3.bf16.msra.mxu0 %v6628_v40  ;;  %5635 = vmatprep.mubr.f32.mxu0 %v902_v44  ;;  %v1306_v40 = vld [vmem:[#allocation2 + $0x7a] ss:$2 sm:$0xff]  ;;  %v1308_v44 = vld [vmem:[#allocation2 + $0xaa] ss:$2 sm:$0xff]  ;;  %v6684_v46 = vpack.c.bf16 %v4763_v43, %v4762_v42 }
  0xd5   :  { %6633 = vmatprep.subr.bf16.mxu0 %v6632_v45  ;;  %v4788_v43 = vld [vmem:[%s9092_s1 + $0x3f0] sm:$0xff] }
  0xd7   :  { %5636 = vmatmul.mubr.f32.gmra.mrb[10].mxu0 %v904_v48  ;;  %v4765_v48 = vld [vmem:[%s9092_s1 + $0x338] sm:$0xff] }
  0xd8   :  { %6635 = vmatpush3.bf16.msra.mxu0 %v6632_v45  ;;  %5638 = vmatprep.mubr.f32.mxu0 %v906_v49  ;;  %v1310_v45 = vld [vmem:[#allocation2 + $0xda] ss:$2 sm:$0xff]  ;;  %v1312_v49 = vld [vmem:[#allocation2 + $0x10a] ss:$2 sm:$0xff]  ;;  %v6688_v51 = vpack.c.bf16 %v4765_v48, %v4764_v47 }
  0xd9   :  { %6637 = vmatprep.subr.bf16.mxu0 %v6636_v50  ;;  %v4790_v48 = vld [vmem:[%s9092_s1 + $0x400] sm:$0xff] }
  0xdb   :  { %5639 = vmatmul.mubr.f32.gmra.mrb[12].mxu0 %v908_v53  ;;  %v4767_v53 = vld [vmem:[%s9092_s1 + $0x348] sm:$0xff] }
  0xdc   :  { %6639 = vmatpush3.bf16.msra.mxu0 %v6636_v50  ;;  %5641 = vmatprep.mubr.f32.mxu0 %v910_v54  ;;  %v1314_v50 = vld [vmem:[#allocation2 + $0x13a] ss:$2 sm:$0xff]  ;;  %v1316_v54 = vld [vmem:[#allocation2 + $0x16a] ss:$2 sm:$0xff]  ;;  %v6692_v56 = vpack.c.bf16 %v4767_v53, %v4766_v52 }
  0xdd   :  { %6641 = vmatprep.subr.bf16.mxu0 %v6640_v55  ;;  %v4792_v53 = vld [vmem:[%s9092_s1 + $0x410] sm:$0xff] }
  0xdf   :  { %5642 = vmatmul.mubr.f32.gmra.mrb[14].mxu0 %v912_v58  ;;  %v4769_v58 = vld [vmem:[%s9092_s1 + $0x358] sm:$0xff] }
  0xe0   :  { %6643 = vmatpush3.bf16.msra.mxu0 %v6640_v55  ;;  %5676 = vmatprep.mubr.f32.mxu0 %v1092_v59  ;;  %v1318_v55 = vld [vmem:[#allocation2 + $0x1ca] ss:$2 sm:$0xff]  ;;  %v1320_v59 = vld [vmem:[#allocation2 + $0x1fa] ss:$2 sm:$0xff]  ;;  %v6696_v61 = vpack.c.bf16 %v4769_v58, %v4768_v57 }
  0xe1   :  { %6645 = vmatprep.subr.bf16.mxu0 %v6644_v60  ;;  %v4794_v58 = vld [vmem:[%s9092_s1 + $0x420] sm:$0xff] }
  0xe3   :  { %5677 = vmatmul.mubr.f32.vlgmr.msra.gmra.mrb[0].mxu0 %v1094_v63  ;;  %v4771_v63 = vld [vmem:[%s9092_s1 + $0x368] sm:$0xff] }
  0xe4   :  { %6647 = vmatpush3.bf16.msra.mxu0 %v6644_v60  ;;  %5679 = vmatprep.mubr.f32.mxu0 %v1096_v0  ;;  %v1322_v60 = vld [vmem:[#allocation2 + $0x22a] ss:$2 sm:$0xff]  ;;  %v1324_v0 = vld [vmem:[#allocation2 + $0x25a] ss:$2 sm:$0xff]  ;;  %v6700_v2 = vpack.c.bf16 %v4771_v63, %v4770_v62 }
  0xe5   :  { %6649 = vmatprep.subr.bf16.mxu0 %v6648_v1  ;;  %v4796_v63 = vld [vmem:[%s9092_s1 + $0x430] sm:$0xff] }
  0xe7   :  { %5680 = vmatmul.mubr.f32.gmra.mrb[2].mxu0 %v1098_v4  ;;  %v4773_v4 = vld [vmem:[%s9092_s1 + $0x378] sm:$0xff] }
  0xe8   :  { %6651 = vmatpush3.bf16.msra.mxu0 %v6648_v1  ;;  %5682 = vmatprep.mubr.f32.mxu0 %v1100_v5  ;;  %v1326_v1 = vld [vmem:[#allocation2 + $0x28a] ss:$2 sm:$0xff]  ;;  %v1328_v5 = vld [vmem:[#allocation2 + $0x2ba] ss:$2 sm:$0xff]  ;;  %v6704_v7 = vpack.c.bf16 %v4773_v4, %v4772_v3 }
  0xe9   :  { %6653 = vmatprep.subr.bf16.mxu0 %v6652_v6  ;;  %v4798_v4 = vld [vmem:[%s9092_s1 + $0x440] sm:$0xff] }
  0xeb   :  { %5683 = vmatmul.mubr.f32.gmra.mrb[4].mxu0 %v1102_v9  ;;  %v4775_v9 = vld [vmem:[%s9092_s1 + $0x388] sm:$0xff] }
  0xec   :  { %6655 = vmatpush3.bf16.msra.mxu0 %v6652_v6  ;;  %5685 = vmatprep.mubr.f32.mxu0 %v1104_v10  ;;  %v1330_v6 = vld [vmem:[#allocation2 + $0x2ea] ss:$2 sm:$0xff]  ;;  %v1332_v10 = vld [vmem:[#allocation2 + $0x31a] ss:$2 sm:$0xff]  ;;  %v6708_v12 = vpack.c.bf16 %v4775_v9, %v4774_v8 }
  0xed   :  { %6657 = vmatprep.subr.bf16.mxu0 %v6656_v11  ;;  %v4800_v9 = vld [vmem:[%s9092_s1 + $0x450] sm:$0xff] }
  0xef   :  { %5686 = vmatmul.mubr.f32.gmra.mrb[6].mxu0 %v1106_v14  ;;  %v4777_v14 = vld [vmem:[%s9092_s1 + $0x398] sm:$0xff] }
  0xf0   :  { %6659 = vmatpush3.bf16.msra.mxu0 %v6656_v11  ;;  %5688 = vmatprep.mubr.f32.mxu0 %v1108_v15  ;;  %v1512_v11 = vld [vmem:[#allocation2 + $0x30] ss:$2 sm:$0xff]  ;;  %v1514_v15 = vld [vmem:[#allocation2 + $0x60] ss:$2 sm:$0xff]  ;;  %v6712_v17 = vpack.c.bf16 %v4777_v14, %v4776_v13 }
  0xf1   :  { %6661 = vmatprep.subr.bf16.mxu0 %v6660_v16  ;;  %v4802_v14 = vld [vmem:[%s9092_s1 + $0x460] sm:$0xff] }
  0xf3   :  { %5689 = vmatmul.mubr.f32.gmra.mrb[8].mxu0 %v1110_v19  ;;  %v4779_v19 = vld [vmem:[%s9092_s1 + $0x3a8] sm:$0xff] }
  0xf4   :  { %6663 = vmatpush3.bf16.msra.mxu0 %v6660_v16  ;;  %5691 = vmatprep.mubr.f32.mxu0 %v1112_v20  ;;  %v1516_v16 = vld [vmem:[#allocation2 + $0x90] ss:$2 sm:$0xff]  ;;  %v1518_v20 = vld [vmem:[#allocation2 + $0xc0] ss:$2 sm:$0xff]  ;;  %v6716_v22 = vpack.c.bf16 %v4779_v19, %v4778_v18 }
  0xf5   :  { %6665 = vmatprep.subr.bf16.mxu0 %v6664_v21  ;;  %v4804_v19 = vld [vmem:[%s9092_s1 + $0x470] sm:$0xff] }
  0xf7   :  { %5692 = vmatmul.mubr.f32.gmra.mrb[10].mxu0 %v1114_v24  ;;  %v4781_v24 = vld [vmem:[%s9092_s1 + $0x3b8] sm:$0xff] }
  0xf8   :  { %6667 = vmatpush3.bf16.msra.mxu0 %v6664_v21  ;;  %5694 = vmatprep.mubr.f32.mxu0 %v1116_v25  ;;  %v1520_v21 = vld [vmem:[#allocation2 + $0xf0] ss:$2 sm:$0xff]  ;;  %v1522_v25 = vld [vmem:[#allocation2 + $0x120] ss:$2 sm:$0xff]  ;;  %v6720_v27 = vpack.c.bf16 %v4781_v24, %v4780_v23  ;;  %v1752_v24 = vld [vmem:[#allocation2 + $0x331] ss:$2 sm:$0xff] }
  0xf9   :  { %6669 = vmatprep.subr.bf16.mxu0 %v6668_v26 }
  0xfb   :  { %5695 = vmatmul.mubr.f32.gmra.mrb[12].mxu0 %v1118_v29  ;;  %v4783_v29 = vld [vmem:[%s9092_s1 + $0x3c8] sm:$0xff] }
  0xfc   :  { %6671 = vmatpush3.bf16.msra.mxu0 %v6668_v26  ;;  %5697 = vmatprep.mubr.f32.mxu0 %v1120_v30  ;;  %v1524_v26 = vld [vmem:[#allocation2 + $0x150] ss:$2 sm:$0xff]  ;;  %v1526_v30 = vld [vmem:[#allocation2 + $0x180] ss:$2 sm:$0xff]  ;;  %v6724_v32 = vpack.c.bf16 %v4783_v29, %v4782_v28 }
  0xfd   :  { %6673 = vmatprep.subr.bf16.mxu0 %v6672_v31  ;;  %v1938_v28 = vld [vmem:[#allocation2 + $0xc2] ss:$2 sm:$0xff]  ;;  %v1940_v29 = vld [vmem:[#allocation2 + $0xf2] ss:$2 sm:$0xff] }
  0xff   :  { %5698 = vmatmul.mubr.f32.gmra.mrb[14].mxu0 %v1122_v34  ;;  %v4785_v34 = vld [vmem:[%s9092_s1 + $0x3d8] sm:$0xff] }
 0x100   :  { %6675 = vmatpush3.bf16.msra.mxu0 %v6672_v31  ;;  %5732 = vmatprep.mubr.f32.mxu0 %v1302_v35  ;;  %v1528_v31 = vld [vmem:[#allocation2 + $0x1e0] ss:$2 sm:$0xff]  ;;  %v1530_v35 = vld [vmem:[#allocation2 + $0x210] ss:$2 sm:$0xff]  ;;  %v6728_v37 = vpack.c.bf16 %v4785_v34, %v4784_v33 }
 0x101   :  { %6677 = vmatprep.subr.bf16.mxu0 %v6676_v36  ;;  %v1948_v33 = vld [vmem:[#allocation2 + $0x1e2] ss:$2 sm:$0xff]  ;;  %v1950_v34 = vld [vmem:[#allocation2 + $0x212] ss:$2 sm:$0xff] }
 0x103   :  { %5733 = vmatmul.mubr.f32.vlgmr.msra.gmra.mrb[0].mxu0 %v1304_v39  ;;  %v4787_v39 = vld [vmem:[%s9092_s1 + $0x3e8] sm:$0xff] }
 0x104   :  { %6679 = vmatpush3.bf16.msra.mxu0 %v6676_v36  ;;  %5735 = vmatprep.mubr.f32.mxu0 %v1306_v40  ;;  %v1532_v36 = vld [vmem:[#allocation2 + $0x240] ss:$2 sm:$0xff]  ;;  %v1534_v40 = vld [vmem:[#allocation2 + $0x270] ss:$2 sm:$0xff]  ;;  %v6732_v42 = vpack.c.bf16 %v4787_v39, %v4786_v38 }
 0x105   :  { %6681 = vmatprep.subr.bf16.mxu0 %v6680_v41  ;;  %v1958_v38 = vld [vmem:[#allocation2 + $0x2d2] ss:$2 sm:$0xff]  ;;  %v1960_v39 = vld [vmem:[#allocation2 + $0x302] ss:$2 sm:$0xff] }
 0x107   :  { %5736 = vmatmul.mubr.f32.gmra.mrb[2].mxu0 %v1308_v44  ;;  %v4789_v44 = vld [vmem:[%s9092_s1 + $0x3f8] sm:$0xff] }
 0x108   :  { %6683 = vmatpush3.bf16.msra.mxu0 %v6680_v41  ;;  %5738 = vmatprep.mubr.f32.mxu0 %v1310_v45  ;;  %v1536_v41 = vld [vmem:[#allocation2 + $0x2a0] ss:$2 sm:$0xff]  ;;  %v1538_v45 = vld [vmem:[#allocation2 + $0x2d0] ss:$2 sm:$0xff]  ;;  %v6736_v47 = vpack.c.bf16 %v4789_v44, %v4788_v43 }
 0x109   :  { %6685 = vmatprep.subr.bf16.mxu0 %v6684_v46  ;;  %v2407_v44 = vld [vmem:[#allocation4 + $0x90] sm:$0xff] }
 0x10b   :  { %5739 = vmatmul.mubr.f32.gmra.mrb[4].mxu0 %v1312_v49  ;;  %v4791_v49 = vld [vmem:[%s9092_s1 + $0x408] sm:$0xff] }
 0x10c   :  { %6687 = vmatpush3.bf16.msra.mxu0 %v6684_v46  ;;  %5741 = vmatprep.mubr.f32.mxu0 %v1314_v50  ;;  %v1540_v46 = vld [vmem:[#allocation2 + $0x300] ss:$2 sm:$0xff]  ;;  %v1542_v50 = vld [vmem:[#allocation2 + $0x330] ss:$2 sm:$0xff]  ;;  %v6740_v52 = vpack.c.bf16 %v4791_v49, %v4790_v48 }
 0x10d   :  { %6689 = vmatprep.subr.bf16.mxu0 %v6688_v51  ;;  %v2410_v48 = vld [vmem:[#allocation4 + $0xa8] sm:$0xff] }
 0x10f   :  { %5742 = vmatmul.mubr.f32.gmra.mrb[6].mxu0 %v1316_v54  ;;  %v4793_v54 = vld [vmem:[%s9092_s1 + $0x418] sm:$0xff] }
 0x110   :  { %6691 = vmatpush3.bf16.msra.mxu0 %v6688_v51  ;;  %5744 = vmatprep.mubr.f32.mxu0 %v1318_v55  ;;  %v1722_v51 = vld [vmem:[#allocation2 + $0x31] ss:$2 sm:$0xff]  ;;  %v1724_v55 = vld [vmem:[#allocation2 + $0x61] ss:$2 sm:$0xff]  ;;  %v6744_v57 = vpack.c.bf16 %v4793_v54, %v4792_v53 }
 0x111   :  { %6693 = vmatprep.subr.bf16.mxu0 %v6692_v56  ;;  %v2413_v53 = vld [vmem:[#allocation4 + $0xc0] sm:$0xff]  ;;  %v2414_v54 = vld [vmem:[#allocation4 + $0xc8] sm:$0xff] }
 0x113   :  { %5745 = vmatmul.mubr.f32.gmra.mrb[8].mxu0 %v1320_v59  ;;  %v4795_v59 = vld [vmem:[%s9092_s1 + $0x428] sm:$0xff] }
 0x114   :  { %6695 = vmatpush3.bf16.msra.mxu0 %v6692_v56  ;;  %5747 = vmatprep.mubr.f32.mxu0 %v1322_v60  ;;  %v1726_v56 = vld [vmem:[#allocation2 + $0x91] ss:$2 sm:$0xff]  ;;  %v1728_v60 = vld [vmem:[#allocation2 + $0xc1] ss:$2 sm:$0xff]  ;;  %v6748_v62 = vpack.c.bf16 %v4795_v59, %v4794_v58 }
 0x115   :  { %6697 = vmatprep.subr.bf16.mxu0 %v6696_v61  ;;  %v2417_v59 = vld [vmem:[#allocation4 + $0xe0] sm:$0xff] }
 0x117   :  { %5748 = vmatmul.mubr.f32.gmra.mrb[10].mxu0 %v1324_v0  ;;  %v4797_v0 = vld [vmem:[%s9092_s1 + $0x438] sm:$0xff] }
 0x118   :  { %6699 = vmatpush3.bf16.msra.mxu0 %v6696_v61  ;;  %5750 = vmatprep.mubr.f32.mxu0 %v1326_v1  ;;  %v1730_v61 = vld [vmem:[#allocation2 + $0xf1] ss:$2 sm:$0xff]  ;;  %v1732_v1 = vld [vmem:[#allocation2 + $0x121] ss:$2 sm:$0xff]  ;;  %v6752_v3 = vpack.c.bf16 %v4797_v0, %v4796_v63 }
 0x119   :  { %6701 = vmatprep.subr.bf16.mxu0 %v6700_v2  ;;  %v2420_v63 = vld [vmem:[#allocation4 + $0xf8] sm:$0xff] }
 0x11b   :  { %5751 = vmatmul.mubr.f32.gmra.mrb[12].mxu0 %v1328_v5  ;;  %v4799_v5 = vld [vmem:[%s9092_s1 + $0x448] sm:$0xff] }
 0x11c   :  { %6703 = vmatpush3.bf16.msra.mxu0 %v6700_v2  ;;  %5753 = vmatprep.mubr.f32.mxu0 %v1330_v6  ;;  %v1734_v2 = vld [vmem:[#allocation2 + $0x151] ss:$2 sm:$0xff]  ;;  %v1736_v6 = vld [vmem:[#allocation2 + $0x181] ss:$2 sm:$0xff]  ;;  %v6756_v8 = vpack.c.bf16 %v4799_v5, %v4798_v4 }
 0x11d   :  { %6705 = vmatprep.subr.bf16.mxu0 %v6704_v7 }
 0x11f   :  { %5754 = vmatmul.mubr.f32.gmra.mrb[14].mxu0 %v1332_v10  ;;  %v4801_v10 = vld [vmem:[%s9092_s1 + $0x458] sm:$0xff] }
 0x120   :  { %6707 = vmatpush3.bf16.msra.mxu0 %v6704_v7  ;;  %5788 = vmatprep.mubr.f32.mxu0 %v1512_v11  ;;  %v1738_v7 = vld [vmem:[#allocation2 + $0x1e1] ss:$2 sm:$0xff]  ;;  %v1740_v11 = vld [vmem:[#allocation2 + $0x211] ss:$2 sm:$0xff]  ;;  %v6760_v13 = vpack.c.bf16 %v4801_v10, %v4800_v9 }
 0x121   :  { %6709 = vmatprep.subr.bf16.mxu0 %v6708_v12 }
 0x123   :  { %5789 = vmatmul.mubr.f32.vlgmr.msra.gmra.mrb[0].mxu0 %v1514_v15  ;;  %v4803_v15 = vld [vmem:[%s9092_s1 + $0x468] sm:$0xff] }
 0x124   :  { %6711 = vmatpush3.bf16.msra.mxu0 %v6708_v12  ;;  %5791 = vmatprep.mubr.f32.mxu0 %v1516_v16  ;;  %v1742_v12 = vld [vmem:[#allocation2 + $0x241] ss:$2 sm:$0xff]  ;;  %v1744_v16 = vld [vmem:[#allocation2 + $0x271] ss:$2 sm:$0xff]  ;;  %v6764_v18 = vpack.c.bf16 %v4803_v15, %v4802_v14 }
 0x125   :  { %6713 = vmatprep.subr.bf16.mxu0 %v6712_v17 }
 0x127   :  { %5792 = vmatmul.mubr.f32.gmra.mrb[2].mxu0 %v1518_v20  ;;  %v4805_v20 = vld [vmem:[%s9092_s1 + $0x478] sm:$0xff] }
 0x128   :  { %6715 = vmatpush3.bf16.msra.mxu0 %v6712_v17  ;;  %5794 = vmatprep.mubr.f32.mxu0 %v1520_v21  ;;  %v1746_v17 = vld [vmem:[#allocation2 + $0x2a1] ss:$2 sm:$0xff]  ;;  %v1748_v21 = vld [vmem:[#allocation2 + $0x2d1] ss:$2 sm:$0xff]  ;;  %v6768_v23 = vpack.c.bf16 %v4805_v20, %v4804_v19 }
 0x129   :  { %6717 = vmatprep.subr.bf16.mxu0 %v6716_v22 }
 0x12b   :  { %5795 = vmatmul.mubr.f32.gmra.mrb[4].mxu0 %v1522_v25  ;;  %v1932_v25 = vld [vmem:[#allocation2 + $0x32] ss:$2 sm:$0xff] }
 0x12c   :  { %6719 = vmatpush3.bf16.msra.mxu0 %v6716_v22  ;;  %5797 = vmatprep.mubr.f32.mxu0 %v1524_v26  ;;  %v1750_v22 = vld [vmem:[#allocation2 + $0x301] ss:$2 sm:$0xff]  ;;  %v1934_v26 = vld [vmem:[#allocation2 + $0x62] ss:$2 sm:$0xff] }
 0x12d   :  { %6721 = vmatprep.subr.bf16.mxu0 %v6720_v27 }
 0x12f   :  { %5798 = vmatmul.mubr.f32.gmra.mrb[6].mxu0 %v1526_v30  ;;  %v1942_v30 = vld [vmem:[#allocation2 + $0x122] ss:$2 sm:$0xff] }
 0x130   :  { %6723 = vmatpush3.bf16.msra.mxu0 %v6720_v27  ;;  %5800 = vmatprep.mubr.f32.mxu0 %v1528_v31  ;;  %v1936_v27 = vld [vmem:[#allocation2 + $0x92] ss:$2 sm:$0xff] }
 0x131   :  { %6725 = vmatprep.subr.bf16.mxu0 %v6724_v32  ;;  %v1944_v31 = vld [vmem:[#allocation2 + $0x152] ss:$2 sm:$0xff] }
 0x133   :  { %5801 = vmatmul.mubr.f32.gmra.mrb[8].mxu0 %v1530_v35  ;;  %v1952_v35 = vld [vmem:[#allocation2 + $0x242] ss:$2 sm:$0xff] }
 0x134   :  { %6727 = vmatpush3.bf16.msra.mxu0 %v6724_v32  ;;  %5803 = vmatprep.mubr.f32.mxu0 %v1532_v36  ;;  %v1946_v32 = vld [vmem:[#allocation2 + $0x182] ss:$2 sm:$0xff]  ;;  %v1954_v36 = vld [vmem:[#allocation2 + $0x272] ss:$2 sm:$0xff] }
 0x135   :  { %6729 = vmatprep.subr.bf16.mxu0 %v6728_v37 }
 0x137   :  { %5804 = vmatmul.mubr.f32.gmra.mrb[10].mxu0 %v1534_v40  ;;  %v1962_v40 = vld [vmem:[#allocation2 + $0x332] ss:$2 sm:$0xff] }
 0x138   :  { %6731 = vmatpush3.bf16.msra.mxu0 %v6728_v37  ;;  %5806 = vmatprep.mubr.f32.mxu0 %v1536_v41  ;;  %v1956_v37 = vld [vmem:[#allocation2 + $0x2a2] ss:$2 sm:$0xff] }
 0x139   :  { %6733 = vmatprep.subr.bf16.mxu0 %v6732_v42  ;;  %v2405_v41 = vld [vmem:[#allocation4 + $0x80] sm:$0xff] }
 0x13b   :  { %5807 = vmatmul.mubr.f32.gmra.mrb[12].mxu0 %v1538_v45  ;;  %v2408_v45 = vld [vmem:[#allocation4 + $0x98] sm:$0xff] }
 0x13c   :  { %6735 = vmatpush3.bf16.msra.mxu0 %v6732_v42  ;;  %5809 = vmatprep.mubr.f32.mxu0 %v1540_v46  ;;  %v2406_v42 = vld [vmem:[#allocation4 + $0x88] sm:$0xff]  ;;  %v6776_v46 = vpack.c.bf16 %v2408_v45, %v2407_v44 }
 0x13d   :  { %6737 = vmatprep.subr.bf16.mxu0 %v6736_v47  ;;  %v6772_v43 = vpack.c.bf16 %v2406_v42, %v2405_v41 }
 0x13f   :  { %5810 = vmatmul.mubr.f32.gmra.mrb[14].mxu0 %v1542_v50  ;;  %6773 = vmatprep.subr.bf16.mxu1 %v6772_v43  ;;  %v2411_v50 = vld [vmem:[#allocation4 + $0xb0] sm:$0xff] }
 0x140   :  { %6739 = vmatpush3.bf16.msra.mxu0 %v6736_v47  ;;  %5844 = vmatprep.mubr.f32.mxu0 %v1722_v51  ;;  %v2409_v47 = vld [vmem:[#allocation4 + $0xa0] sm:$0xff]  ;;  %v2412_v51 = vld [vmem:[#allocation4 + $0xb8] sm:$0xff] }
 0x141   :  { %6741 = vmatprep.subr.bf16.mxu0 %v6740_v52  ;;  %6775 = vmatpush3.bf16.msra.mxu1 %v6772_v43  ;;  %v6780_v49 = vpack.c.bf16 %v2410_v48, %v2409_v47 }
 0x142   :  { %6777 = vmatprep.subr.bf16.mxu1 %v6776_v46 }
 0x143   :  { %5845 = vmatmul.mubr.f32.vlgmr.msra.gmra.mrb[0].mxu0 %v1724_v55  ;;  %v6788_v55 = vpack.c.bf16 %v2414_v54, %v2413_v53 }
 0x144   :  { %6743 = vmatpush3.bf16.msra.mxu0 %v6740_v52  ;;  %5847 = vmatprep.mubr.f32.mxu0 %v1726_v56  ;;  %v6784_v52 = vpack.c.bf16 %v2412_v51, %v2411_v50  ;;  %v2415_v56 = vld [vmem:[#allocation4 + $0xd0] sm:$0xff] }
 0x145   :  { %6745 = vmatprep.subr.bf16.mxu0 %v6744_v57  ;;  %6779 = vmatpush3.bf16.msra.mxu1 %v6776_v46 }
 0x146   :  { %6781 = vmatprep.subr.bf16.mxu1 %v6780_v49 }
 0x147   :  { %5848 = vmatmul.mubr.f32.gmra.mrb[2].mxu0 %v1728_v60  ;;  %v2418_v60 = vld [vmem:[#allocation4 + $0xe8] sm:$0xff] }
 0x148   :  { %6747 = vmatpush3.bf16.msra.mxu0 %v6744_v57  ;;  %5850 = vmatprep.mubr.f32.mxu0 %v1730_v61  ;;  %v2416_v57 = vld [vmem:[#allocation4 + $0xd8] sm:$0xff]  ;;  %v6796_v61 = vpack.c.bf16 %v2418_v60, %v2417_v59 }
 0x149   :  { %6749 = vmatprep.subr.bf16.mxu0 %v6748_v62  ;;  %6783 = vmatpush3.bf16.msra.mxu1 %v6780_v49  ;;  %v6792_v58 = vpack.c.bf16 %v2416_v57, %v2415_v56 }
 0x14a   :  { %6785 = vmatprep.subr.bf16.mxu1 %v6784_v52 }
 0x14b   :  { %5851 = vmatmul.mubr.f32.gmra.mrb[4].mxu0 %v1732_v1  ;;  %v2372_v1 = vld [vmem:[#allocation4] sm:$0xff] }
 0x14c   :  { %6751 = vmatpush3.bf16.msra.mxu0 %v6748_v62  ;;  %5853 = vmatprep.mubr.f32.mxu0 %v1734_v2  ;;  %v2419_v62 = vld [vmem:[#allocation4 + $0xf0] sm:$0xff]  ;;  %v2373_v2 = vld [vmem:[#allocation4 + $0x8] sm:$0xff] }
 0x14d   :  { %6753 = vmatprep.subr.bf16.mxu0 %v6752_v3  ;;  %6787 = vmatpush3.bf16.msra.mxu1 %v6784_v52  ;;  %v6800_v0 = vpack.c.bf16 %v2420_v63, %v2419_v62  ;;  %v8237_v4 = vpack.c.bf16 %v2373_v2, %v2372_v1 }
 0x14e   :  { %6789 = vmatprep.subr.bf16.mxu1 %v6788_v55 }
 0x14f   :  { %5854 = vmatmul.mubr.f32.gmra.mrb[6].mxu0 %v1736_v6 }
 0x150   :  { %6755 = vmatpush3.bf16.msra.mxu0 %v6752_v3  ;;  %5856 = vmatprep.mubr.f32.mxu0 %v1738_v7  ;;  %v2388_v3 = vld [vmem:[#allocation3 + $0x1] sm:$0xff] }
 0x151   :  { %6757 = vmatprep.subr.bf16.mxu0 %v6756_v8  ;;  %6791 = vmatpush3.bf16.msra.mxu1 %v6788_v55 }
 0x152   :  { %6793 = vmatprep.subr.bf16.mxu1 %v6792_v58  ;;  %5956 = vmatprep.mubr.f32.mxu1 %v2388_v3 }
 0x153   :  { %5857 = vmatmul.mubr.f32.gmra.mrb[8].mxu0 %v1740_v11 }
 0x154   :  { %6759 = vmatpush3.bf16.msra.mxu0 %v6756_v8  ;;  %5859 = vmatprep.mubr.f32.mxu0 %v1742_v12 }
 0x155   :  { %6761 = vmatprep.subr.bf16.mxu0 %v6760_v13  ;;  %6795 = vmatpush3.bf16.msra.mxu1 %v6792_v58 }
 0x156   :  { %6797 = vmatprep.subr.bf16.mxu1 %v6796_v61 }
 0x157   :  { %5860 = vmatmul.mubr.f32.gmra.mrb[10].mxu0 %v1744_v16 }
 0x158   :  { %6763 = vmatpush3.bf16.msra.mxu0 %v6760_v13  ;;  %5862 = vmatprep.mubr.f32.mxu0 %v1746_v17 }
 0x159   :  { %6765 = vmatprep.subr.bf16.mxu0 %v6764_v18  ;;  %6799 = vmatpush3.bf16.msra.mxu1 %v6796_v61 }
 0x15a   :  { %6801 = vmatprep.subr.bf16.mxu1 %v6800_v0 }
 0x15b   :  { %5863 = vmatmul.mubr.f32.gmra.mrb[12].mxu0 %v1748_v21 }
 0x15c   :  { %6767 = vmatpush3.bf16.msra.mxu0 %v6764_v18  ;;  %5865 = vmatprep.mubr.f32.mxu0 %v1750_v22 }
 0x15d   :  { %6769 = vmatprep.subr.bf16.mxu0 %v6768_v23  ;;  %6803 = vmatpush3.bf16.msra.mxu1 %v6800_v0 }
 0x15e   :  { %6805 = vmatprep.subr.bf16.mxu1 %v8237_v4 }
 0x15f   :  { %5866 = vmatmul.mubr.f32.gmra.mrb[14].mxu0 %v1752_v24 }
 0x160   :  { %6771 = vmatpush3.bf16.msra.mxu0 %v6768_v23  ;;  %5900 = vmatprep.mubr.f32.mxu0 %v1932_v25 }
 0x163   :  { %5901 = vmatmul.mubr.f32.vlgmr.msra.gmra.mrb[0].mxu0 %v1934_v26 }
 0x164   :  { %5903 = vmatprep.mubr.f32.mxu0 %v1936_v27 }
 0x167   :  { %5904 = vmatmul.mubr.f32.gmra.mrb[2].mxu0 %v1938_v28 }
 0x168   :  { %5906 = vmatprep.mubr.f32.mxu0 %v1940_v29 }
 0x16b   :  { %5907 = vmatmul.mubr.f32.gmra.mrb[4].mxu0 %v1942_v30 }
 0x16c   :  { %5909 = vmatprep.mubr.f32.mxu0 %v1944_v31 }
 0x16f   :  { %5910 = vmatmul.mubr.f32.gmra.mrb[6].mxu0 %v1946_v32 }
 0x170   :  { %5912 = vmatprep.mubr.f32.mxu0 %v1948_v33 }
 0x173   :  { %5913 = vmatmul.mubr.f32.gmra.mrb[8].mxu0 %v1950_v34 }
 0x174   :  { %5915 = vmatprep.mubr.f32.mxu0 %v1952_v35 }
 0x177   :  { %5916 = vmatmul.mubr.f32.gmra.mrb[10].mxu0 %v1954_v36 }
 0x178   :  { %5918 = vmatprep.mubr.f32.mxu0 %v1956_v37 }
 0x17b   :  { %5919 = vmatmul.mubr.f32.gmra.mrb[12].mxu0 %v1958_v38 }
 0x17c   :  { %5921 = vmatprep.mubr.f32.mxu0 %v1960_v39 }
 0x17f   :  { %5922 = vmatmul.mubr.f32.gmra.mrb[14].mxu0 %v1962_v40 }
 0x236   :  { %v8240_v5 = vpop.f32.mrb[0].mxu0 }
 0x237   :  { %v2166_v6 = vmul.f32 %v8240_v5, %v8240_v5  ;;  %v8244_v7 = vpop.f32.mrb[1].mxu0 }
 0x238   :  { %v2143_v8 = vadd.f32 %v8240_v5, %v8244_v7  ;;  %v2165_v9 = vmul.f32 %v8244_v7, %v8244_v7 }
 0x23a   :  { %v2181_v10 = vadd.f32 %v2166_v6, %v2165_v9  ;;  %v8250_v11 = vpop.f32.mrb[2].mxu0 }
 0x23b   :  { %v8252_v12 = vpop.f32.mrb[3].mxu0  ;;  %v2168_v15 = vmul.f32 %v8250_v11, %v8250_v11 }
 0x23c   :  { %v2144_v13 = vadd.f32 %v2143_v8, %v8252_v12  ;;  %v2167_v14 = vmul.f32 %v8252_v12, %v8252_v12 }
 0x23e   :  { %v2182_v16 = vadd.f32 %v2181_v10, %v2167_v14  ;;  %v8259_v17 = vpop.f32.mrb[4].mxu0  ;;  %v2145_v18 = vadd.f32 %v8250_v11, %v2144_v13 }
 0x23f   :  { %v8262_v19 = vpop.f32.mrb[5].mxu0  ;;  %v2170_v23 = vmul.f32 %v8259_v17, %v8259_v17 }
 0x240   :  { %v2146_v20 = vadd.f32 %v2145_v18, %v8262_v19  ;;  %v2169_v21 = vmul.f32 %v8262_v19, %v8262_v19  ;;  %v2183_v22 = vadd.f32 %v2182_v16, %v2168_v15 }
 0x242   :  { %v2184_v24 = vadd.f32 %v2183_v22, %v2169_v21  ;;  %v8269_v25 = vpop.f32.mrb[6].mxu0  ;;  %v2147_v26 = vadd.f32 %v8259_v17, %v2146_v20 }
 0x243   :  { %v8272_v27 = vpop.f32.mrb[7].mxu0  ;;  %v2172_v31 = vmul.f32 %v8269_v25, %v8269_v25 }
 0x244   :  { %v2148_v28 = vadd.f32 %v2147_v26, %v8272_v27  ;;  %v2171_v29 = vmul.f32 %v8272_v27, %v8272_v27  ;;  %v2185_v30 = vadd.f32 %v2184_v24, %v2170_v23 }
 0x246   :  { %v2186_v32 = vadd.f32 %v2185_v30, %v2171_v29  ;;  %v8279_v33 = vpop.f32.mrb[8].mxu0  ;;  %v2149_v34 = vadd.f32 %v8269_v25, %v2148_v28 }
 0x247   :  { %v8282_v35 = vpop.f32.mrb[9].mxu0  ;;  %v2174_v39 = vmul.f32 %v8279_v33, %v8279_v33 }
 0x248   :  { %v2150_v36 = vadd.f32 %v2149_v34, %v8282_v35  ;;  %v2173_v37 = vmul.f32 %v8282_v35, %v8282_v35  ;;  %v2187_v38 = vadd.f32 %v2186_v32, %v2172_v31 }
 0x24a   :  { %v2188_v40 = vadd.f32 %v2187_v38, %v2173_v37  ;;  %v8289_v41 = vpop.f32.mrb[10].mxu0  ;;  %v2151_v42 = vadd.f32 %v8279_v33, %v2150_v36 }
 0x24b   :  { %v8292_v43 = vpop.f32.mrb[11].mxu0  ;;  %v2176_v47 = vmul.f32 %v8289_v41, %v8289_v41 }
 0x24c   :  { %v2152_v44 = vadd.f32 %v2151_v42, %v8292_v43  ;;  %v2175_v45 = vmul.f32 %v8292_v43, %v8292_v43  ;;  %v2189_v46 = vadd.f32 %v2188_v40, %v2174_v39  ;;  %v2375_v39 = vld [vmem:[#allocation4 + $0x18] sm:$0xff]  ;;  %v2376_v40 = vld [vmem:[#allocation4 + $0x20] sm:$0xff]  ;;  %v2377_v42 = vld [vmem:[#allocation4 + $0x28] sm:$0xff] }
 0x24e   :  { %v2190_v48 = vadd.f32 %v2189_v46, %v2175_v45  ;;  %v8299_v49 = vpop.f32.mrb[12].mxu0  ;;  %v2153_v50 = vadd.f32 %v8289_v41, %v2152_v44  ;;  %v8359_v45 = vpack.c.bf16 %v2377_v42, %v2376_v40 }
 0x24f   :  { %v8302_v51 = vpop.f32.mrb[13].mxu0  ;;  %v2178_v55 = vmul.f32 %v8299_v49, %v8299_v49 }
 0x250   :  { %v2154_v52 = vadd.f32 %v2153_v50, %v8302_v51  ;;  %v2177_v53 = vmul.f32 %v8302_v51, %v8302_v51  ;;  %v2191_v54 = vadd.f32 %v2190_v48, %v2176_v47 }
 0x252   :  { %v2192_v56 = vadd.f32 %v2191_v54, %v2177_v53  ;;  %v8309_v57 = vpop.f32.mrb[14].mxu0  ;;  %v2155_v58 = vadd.f32 %v8299_v49, %v2154_v52  ;;  %v8368_v52 = vld [vmem:[%s9094_s3] ss:$0 sm:$0xff] }
 0x253   :  { %v2116_v59 = vpop.f32.mrb[15].mxu0  ;;  %v2180_v63 = vmul.f32 %v8309_v57, %v8309_v57 }
 0x254   :  { %v2156_v60 = vadd.f32 %v2155_v58, %v2116_v59  ;;  %v2179_v61 = vmul.f32 %v2116_v59, %v2116_v59  ;;  %v2193_v62 = vadd.f32 %v2192_v56, %v2178_v55 }
 0x256   :  { %v2157_v0 = vadd.f32 %v8309_v57, %v2156_v60  ;;  %v2194_v1 = vadd.f32 %v2193_v62, %v2179_v61 }
 0x258   :  { %v2158_v2 = vrot.slane %v2157_v0, 4  ;;  %v2195_v3 = vadd.f32 %v2194_v1, %v2180_v63 }
 0x25a   :  { %v2159_v6 = vadd.f32 %v2158_v2, %v2157_v0  ;;  %v2196_v8 = vrot.slane %v2195_v3, 4 }
 0x25c   :  { %v2160_v9 = vrot.slane %v2159_v6, 2  ;;  %v2197_v10 = vadd.f32 %v2196_v8, %v2195_v3 }
 0x25e   :  { %v2161_v13 = vadd.f32 %v2160_v9, %v2159_v6  ;;  %v2198_v14 = vrot.slane %v2197_v10, 2 }
 0x260   :  { %v2162_v15 = vrot.slane %v2161_v13, 1  ;;  %v2199_v16 = vadd.f32 %v2198_v14, %v2197_v10 }
 0x262   :  { %v2163_v18 = vadd.f32 %v2162_v15, %v2161_v13  ;;  %v2200_v20 = vrot.slane %v2199_v16, 1 }
 0x264   :  { %v8315_v21 = vmul.f32 0.0078125, %v2163_v18  ;;  %v2201_v22 = vadd.f32 %v2200_v20, %v2199_v16 }
 0x266   :  { %v2202_v23 = vmul.f32 0.0078125, %v2201_v22  ;;  %v2203_v24 = vmul.f32 %v8315_v21, %v8315_v21  ;;  %v2219_v26 = vsub.f32 %v2116_v59, %v8315_v21  ;;  %v2205_v28 = vsub.f32 %v8244_v7, %v8315_v21 }
 0x267   :  { %v2206_v29 = vsub.f32 %v8240_v5, %v8315_v21  ;;  %v2207_v30 = vsub.f32 %v8252_v12, %v8315_v21  ;;  %v2208_v31 = vsub.f32 %v8250_v11, %v8315_v21  ;;  %v2209_v32 = vsub.f32 %v8262_v19, %v8315_v21 }
 0x268   :  { %v2204_v34 = vsub.f32 %v2202_v23, %v2203_v24  ;;  %v2210_v36 = vsub.f32 %v8259_v17, %v8315_v21  ;;  %v2211_v37 = vsub.f32 %v8272_v27, %v8315_v21  ;;  %v2213_v7 = vsub.f32 %v8282_v35, %v8315_v21 }
 0x269   :  { %v2214_v5 = vsub.f32 %v8279_v33, %v8315_v21  ;;  %v2215_v12 = vsub.f32 %v8292_v43, %v8315_v21  ;;  %v2216_v11 = vsub.f32 %v8289_v41, %v8315_v21  ;;  %v2217_v19 = vsub.f32 %v8302_v51, %v8315_v21  ;;  %v2374_v33 = vld [vmem:[#allocation4 + $0x10] sm:$0xff]  ;;  %v8355_v41 = vld [vmem:[%s9093_s2] ss:$0 sm:$0xff] }
 0x26a   :  { %v2221_v38 = vadd.f32 1e-05, %v2204_v34  ;;  %v2218_v17 = vsub.f32 %v8299_v49, %v8315_v21  ;;  %v2212_v27 = vsub.f32 %v8269_v25, %v8315_v21  ;;  %v2220_v35 = vsub.f32 %v8309_v57, %v8315_v21  ;;  %v2396_v21 = vld [vmem:[#allocation3 + $0xa1] sm:$0xff] }
 0x26b   :  { %v8357_v44 = vpack.c.bf16 %v2375_v39, %v2374_v33 }
 0x26c   :  { %7368 = vrsqrt.f32 %v2221_v38 }
 0x276   :  { %v8350_v43 = vpop.eup %7368 }
 0x277   :  { %v2237_v46 = vmul.f32 %v8350_v43, %v2219_v26  ;;  %v2223_v47 = vmul.f32 %v8350_v43, %v2205_v28  ;;  %v2224_v48 = vmul.f32 %v8350_v43, %v2206_v29  ;;  %v2225_v50 = vmul.f32 %v8350_v43, %v2207_v30  ;;  %v2378_v28 = vld [vmem:[#allocation4 + $0x30] sm:$0xff]  ;;  %v2379_v29 = vld [vmem:[#allocation4 + $0x38] sm:$0xff] }
 0x278   :  { %v2226_v53 = vmul.f32 %v8350_v43, %v2208_v31  ;;  %v2227_v54 = vmul.f32 %v8350_v43, %v2209_v32  ;;  %v2228_v55 = vmul.f32 %v8350_v43, %v2210_v36  ;;  %v2229_v56 = vmul.f32 %v8350_v43, %v2211_v37 }
 0x279   :  { %v2259_v58 = vmul.f32 %v8355_v41, %v2237_v46  ;;  %v2245_v59 = vmul.f32 %v8355_v41, %v2223_v47  ;;  %v2246_v60 = vmul.f32 %v8355_v41, %v2224_v48  ;;  %v2247_v61 = vmul.f32 %v8355_v41, %v2225_v50 }
 0x27a   :  { %v2248_v62 = vmul.f32 %v8355_v41, %v2226_v53  ;;  %v2249_v63 = vmul.f32 %v8355_v41, %v2227_v54  ;;  %v2250_v0 = vmul.f32 %v8355_v41, %v2228_v55  ;;  %v2251_v1 = vmul.f32 %v8355_v41, %v2229_v56  ;;  %v2380_v53 = vld [vmem:[#allocation4 + $0x40] sm:$0xff]  ;;  %v2381_v54 = vld [vmem:[#allocation4 + $0x48] sm:$0xff] }
 0x27b   :  { %v2281_v2 = vadd.f32 %v8368_v52, %v2259_v58  ;;  %v2267_v3 = vadd.f32 %v8368_v52, %v2245_v59  ;;  %v2268_v6 = vadd.f32 %v8368_v52, %v2246_v60  ;;  %v2269_v8 = vadd.f32 %v8368_v52, %v2247_v61  ;;  %v2383_v59 = vld [vmem:[#allocation4 + $0x58] sm:$0xff] }
 0x27c   :  { %v2270_v9 = vadd.f32 %v8368_v52, %v2248_v62  ;;  %v2271_v10 = vadd.f32 %v8368_v52, %v2249_v63  ;;  %v2272_v13 = vadd.f32 %v8368_v52, %v2250_v0  ;;  %v2273_v14 = vadd.f32 %v8368_v52, %v2251_v1  ;;  %v2384_v62 = vld [vmem:[#allocation4 + $0x60] sm:$0xff]  ;;  %v2385_v63 = vld [vmem:[#allocation4 + $0x68] sm:$0xff]  ;;  %v2387_v0 = vld [vmem:[#allocation4 + $0x78] sm:$0xff] }
 0x27d   :  { %v8390_v15 = vmax.f32 %v2281_v2, 0.0  ;;  %v8392_v16 = vmax.f32 %v2267_v3, 0.0  ;;  %v8394_v18 = vmax.f32 %v2268_v6, 0.0  ;;  %v8396_v20 = vmax.f32 %v2269_v8, 0.0  ;;  %v2728_v2 = vld [vmem:[#allocation4 + $0x100] sm:$0xff]  ;;  %v2729_v3 = vld [vmem:[#allocation4 + $0x108] sm:$0xff] }
 0x27e   :  { %v8398_v22 = vmax.f32 %v2270_v9, 0.0  ;;  %v8400_v23 = vmax.f32 %v2271_v10, 0.0  ;;  %v8402_v24 = vmax.f32 %v2272_v13, 0.0  ;;  %v8404_v26 = vmax.f32 %v2273_v14, 0.0  ;;  %v2730_v8 = vld [vmem:[#allocation4 + $0x110] sm:$0xff]  ;;  %v2731_v9 = vld [vmem:[#allocation4 + $0x118] sm:$0xff] }
 0x27f   :  { %2354 = vst [vmem:[#allocation3 + $0x111] sm:$0xff] %v8390_v15  ;;  %2340 = vst [vmem:[#allocation3 + $0x11] sm:$0xff] %v8392_v16  ;;  %5957 = vmatmul.mubr.f32.vlgmr.msra.gmra.mrb[0].mxu1 %v8392_v16  ;;  %v2231_v30 = vmul.f32 %v8350_v43, %v2213_v7  ;;  %v2232_v31 = vmul.f32 %v8350_v43, %v2214_v5  ;;  %v2233_v32 = vmul.f32 %v8350_v43, %v2215_v12  ;;  %v8493_v10 = vld [vmem:[#allocation2 + $0x198] sm:$0xff] }
 0x280   :  { %2341 = vst [vmem:[#allocation3 + $0x21] sm:$0xff] %v8394_v18  ;;  %2342 = vst [vmem:[#allocation3 + $0x31] sm:$0xff] %v8396_v20  ;;  %v2234_v34 = vmul.f32 %v8350_v43, %v2216_v11  ;;  %5959 = vmatprep.mubr.f32.mxu1 %v8394_v18  ;;  %6807 = vmatpush3.bf16.msra.mxu1 %v8237_v4  ;;  %v2235_v36 = vmul.f32 %v8350_v43, %v2217_v19 }
 0x281   :  { %2343 = vst [vmem:[#allocation3 + $0x41] sm:$0xff] %v8398_v22  ;;  %2344 = vst [vmem:[#allocation3 + $0x51] sm:$0xff] %v8400_v23  ;;  %v2236_v37 = vmul.f32 %v8350_v43, %v2218_v17  ;;  %v2230_v4 = vmul.f32 %v8350_v43, %v2212_v27  ;;  %6809 = vmatprep.subr.bf16.mxu1 %v8357_v44  ;;  %v2253_v7 = vmul.f32 %v8355_v41, %v2231_v30 }
 0x282   :  { %2345 = vst [vmem:[#allocation3 + $0x61] sm:$0xff] %v8402_v24  ;;  %2346 = vst [vmem:[#allocation3 + $0x71] sm:$0xff] %v8404_v26  ;;  %v2254_v5 = vmul.f32 %v8355_v41, %v2232_v31  ;;  %v2255_v51 = vmul.f32 %v8355_v41, %v2233_v32  ;;  %v2256_v12 = vmul.f32 %v8355_v41, %v2234_v34  ;;  %v2734_v34 = vld [vmem:[#allocation4 + $0x130] sm:$0xff] }
 0x283   :  { %v6816_v11 = vpack.c.bf16 %v2379_v29, %v2378_v28  ;;  %v2257_v49 = vmul.f32 %v8355_v41, %v2235_v36  ;;  %v2258_v19 = vmul.f32 %v8355_v41, %v2236_v37  ;;  %v2252_v38 = vmul.f32 %v8355_v41, %v2230_v4  ;;  %5960 = vmatmul.mubr.f32.gmra.mrb[2].mxu1 %v8396_v20  ;;  %v2732_v28 = vld [vmem:[#allocation4 + $0x120] sm:$0xff]  ;;  %v2733_v29 = vld [vmem:[#allocation4 + $0x128] sm:$0xff]  ;;  %v2735_v36 = vld [vmem:[#allocation4 + $0x138] sm:$0xff] }
 0x284   :  { %v2275_v25 = vadd.f32 %v8368_v52, %v2253_v7  ;;  %v2276_v17 = vadd.f32 %v8368_v52, %v2254_v5  ;;  %v2277_v27 = vadd.f32 %v8368_v52, %v2255_v51  ;;  %v2278_v33 = vadd.f32 %v8368_v52, %v2256_v12  ;;  %5962 = vmatprep.mubr.f32.mxu1 %v8398_v22  ;;  %v2736_v5 = vld [vmem:[#allocation4 + $0x140] sm:$0xff]  ;;  %v2737_v51 = vld [vmem:[#allocation4 + $0x148] sm:$0xff] }
 0x285   :  { %6811 = vmatpush3.bf16.msra.mxu1 %v8357_v44  ;;  %v2279_v39 = vadd.f32 %v8368_v52, %v2257_v49  ;;  %v2280_v40 = vadd.f32 %v8368_v52, %v2258_v19  ;;  %v2274_v42 = vadd.f32 %v8368_v52, %v2252_v38  ;;  %v2238_v58 = vmul.f32 %v8350_v43, %v2220_v35  ;;  %v2382_v43 = vld [vmem:[#allocation4 + $0x50] sm:$0xff]  ;;  %v2739_v38 = vld [vmem:[#allocation4 + $0x158] sm:$0xff] }
 0x286   :  { %6813 = vmatprep.subr.bf16.mxu1 %v8359_v45  ;;  %v8452_v46 = vmax.f32 %v2275_v25, 0.0  ;;  %v8454_v47 = vmax.f32 %v2276_v17, 0.0  ;;  %v8456_v48 = vmax.f32 %v2277_v27, 0.0  ;;  %v8458_v50 = vmax.f32 %v2278_v33, 0.0  ;;  %v8496_v14 = vld [vmem:[#allocation3 + $0x10] sm:$0xff]  ;;  %v2740_v27 = vld [vmem:[#allocation4 + $0x160] sm:$0xff] }
 0x287   :  { %v8460_v55 = vmax.f32 %v2279_v39, 0.0  ;;  %v8462_v44 = vmax.f32 %v2280_v40, 0.0  ;;  %v8464_v56 = vmax.f32 %v2274_v42, 0.0  ;;  %5963 = vmatmul.mubr.f32.gmra.mrb[4].mxu1 %v8400_v23  ;;  %v2260_v57 = vmul.f32 %v8355_v41, %v2238_v58  ;;  %v8499_v30 = vld [vmem:[#allocation3 + $0x20] sm:$0xff]  ;;  %v8502_v32 = vld [vmem:[#allocation3 + $0x30] sm:$0xff]  ;;  %v2741_v33 = vld [vmem:[#allocation4 + $0x168] sm:$0xff] }
 0x288   :  { %2348 = vst [vmem:[#allocation3 + $0xb1] sm:$0xff] %v8452_v46  ;;  %2349 = vst [vmem:[#allocation3 + $0xc1] sm:$0xff] %v8454_v47  ;;  %5965 = vmatprep.mubr.f32.mxu1 %v8402_v24  ;;  %v6820_v35 = vpack.c.bf16 %v2381_v54, %v2380_v53  ;;  %v6824_v61 = vpack.c.bf16 %v2383_v59, %v2382_v43  ;;  %v6828_v41 = vpack.c.bf16 %v2385_v63, %v2384_v62  ;;  %v8505_v37 = vld [vmem:[#allocation3 + $0x40] sm:$0xff]  ;;  %v8508_v7 = vld [vmem:[#allocation3 + $0x50] sm:$0xff] }
 0x289   :  { %2350 = vst [vmem:[#allocation3 + $0xd1] sm:$0xff] %v8456_v48  ;;  %2351 = vst [vmem:[#allocation3 + $0xe1] sm:$0xff] %v8458_v50  ;;  %6815 = vmatpush3.bf16.msra.mxu1 %v8359_v45  ;;  %v2282_v60 = vadd.f32 %v8368_v52, %v2260_v57  ;;  %v2386_v52 = vld [vmem:[#allocation4 + $0x70] sm:$0xff]  ;;  %v6836_v6 = vpack.c.bf16 %v2729_v3, %v2728_v2  ;;  %v6840_v13 = vpack.c.bf16 %v2731_v9, %v2730_v8  ;;  %v8511_v12 = vld [vmem:[#allocation3 + $0x60] sm:$0xff] }
 0x28a   :  { %2352 = vst [vmem:[#allocation3 + $0xf1] sm:$0xff] %v8460_v55  ;;  %2353 = vst [vmem:[#allocation3 + $0x101] sm:$0xff] %v8462_v44  ;;  %6817 = vmatprep.subr.bf16.mxu1 %v6816_v11  ;;  %v6832_v1 = vpack.c.bf16 %v2387_v0, %v2386_v52  ;;  %v6844_v31 = vpack.c.bf16 %v2733_v29, %v2732_v28  ;;  %v6848_v4 = vpack.c.bf16 %v2735_v36, %v2734_v34  ;;  %v8514_v49 = vld [vmem:[#allocation3 + $0x70] sm:$0xff]  ;;  %v2743_v54 = vld [vmem:[#allocation4 + $0x178] sm:$0xff] }
 0x28b   :  { %2347 = vst [vmem:[#allocation3 + $0x81] sm:$0xff] %v8464_v56  ;;  %5966 = vmatmul.mubr.f32.gmra.mrb[6].mxu1 %v8404_v26  ;;  %v8483_v45 = vmax.f32 %v2282_v60, 0.0  ;;  %v2738_v19 = vld [vmem:[#allocation4 + $0x150] sm:$0xff]  ;;  %v6860_v40 = vpack.c.bf16 %v2741_v33, %v2740_v27  ;;  %v2923_v43 = vld [vmem:[#allocation4 + $0x188] sm:$0xff]  ;;  %v2930_v34 = vld [vmem:[#allocation4 + $0x1c0] sm:$0xff] }
 0x28c   :  { %5968 = vmatprep.mubr.f32.mxu1 %v2396_v21  ;;  %v6856_v25 = vpack.c.bf16 %v2739_v38, %v2738_v19  ;;  %v2742_v53 = vld [vmem:[#allocation4 + $0x170] sm:$0xff]  ;;  %v2711_v60 = vld [vmem:[#allocation3 + $0x2] sm:$0xff]  ;;  %v2933_v38 = vld [vmem:[#allocation4 + $0x1d8] sm:$0xff] }
 0x28d   :  { %6819 = vmatpush3.bf16.msra.mxu1 %v6816_v11  ;;  %2355 = vst [vmem:[#allocation3 + $0x121] sm:$0xff] %v8483_v45  ;;  %v6852_v11 = vpack.c.bf16 %v2737_v51, %v2736_v5  ;;  %v6864_v57 = vpack.c.bf16 %v2743_v54, %v2742_v53  ;;  %v8536_v62 = vld [vmem:[#allocation3 + $0x110] sm:$0xff]  ;;  %v2927_v2 = vld [vmem:[#allocation4 + $0x1a8] sm:$0xff]  ;;  %v2934_v33 = vld [vmem:[#allocation4 + $0x1e0] sm:$0xff] }
 0x28e   :  { %6821 = vmatprep.subr.bf16.mxu1 %v6820_v35  ;;  %v2924_v63 = vld [vmem:[#allocation4 + $0x190] sm:$0xff]  ;;  %v8542_v3 = vld [vmem:[#allocation3 + $0x22] sm:$0xff] }
 0x28f   :  { %5969 = vmatmul.mubr.f32.gmra.mrb[8].mxu1 %v8452_v46  ;;  %v8518_v17 = vld [vmem:[#allocation3 + $0xb0] sm:$0xff]  ;;  %v8521_v39 = vld [vmem:[#allocation3 + $0xc0] sm:$0xff]  ;;  %v2931_v36 = vld [vmem:[#allocation4 + $0x1c8] sm:$0xff] }
 0x290   :  { %5971 = vmatprep.mubr.f32.mxu1 %v8454_v47  ;;  %v8524_v42 = vld [vmem:[#allocation3 + $0xd0] sm:$0xff]  ;;  %v8527_v58 = vld [vmem:[#allocation3 + $0xe0] sm:$0xff]  ;;  %v6884_v51 = vpack.c.bf16 %v2931_v36, %v2930_v34  ;;  %v3121_v36 = vld [vmem:[#allocation4 + $0x228] sm:$0xff] }
 0x291   :  { %6823 = vmatpush3.bf16.msra.mxu1 %v6820_v35  ;;  %v8530_v21 = vld [vmem:[#allocation3 + $0xf0] sm:$0xff]  ;;  %v2922_v35 = vld [vmem:[#allocation4 + $0x180] sm:$0xff] }
 0x292   :  { %6825 = vmatprep.subr.bf16.mxu1 %v6824_v61  ;;  %v8533_v59 = vld [vmem:[#allocation3 + $0x100] sm:$0xff]  ;;  %v8539_v0 = vld [vmem:[#allocation3 + $0x12] sm:$0xff] }
 0x293   :  { %5972 = vmatmul.mubr.f32.gmra.mrb[10].mxu1 %v8456_v48  ;;  %v8545_v8 = vld [vmem:[#allocation3 + $0x32] sm:$0xff]  ;;  %v8548_v28 = vld [vmem:[#allocation3 + $0x42] sm:$0xff] }
 0x294   :  { %5974 = vmatprep.mubr.f32.mxu1 %v8458_v50  ;;  %v2928_v9 = vld [vmem:[#allocation4 + $0x1b0] sm:$0xff]  ;;  %v2719_v5 = vld [vmem:[#allocation3 + $0xa2] sm:$0xff] }
 0x295   :  { %6827 = vmatpush3.bf16.msra.mxu1 %v6824_v61  ;;  %v6868_v61 = vpack.c.bf16 %v2923_v43, %v2922_v35  ;;  %v2932_v19 = vld [vmem:[#allocation4 + $0x1d0] sm:$0xff]  ;;  %v8563_v53 = vld [vmem:[#allocation3 + $0xc2] sm:$0xff]  ;;  %v2937_v43 = vld [vmem:[#allocation4 + $0x1f8] sm:$0xff] }
 0x296   :  { %6829 = vmatprep.subr.bf16.mxu1 %v6828_v41  ;;  %v8560_v27 = vld [vmem:[#allocation3 + $0xb2] sm:$0xff]  ;;  %v3120_v34 = vld [vmem:[#allocation4 + $0x220] sm:$0xff] }
 0x297   :  { %5975 = vmatmul.mubr.f32.gmra.mrb[12].mxu1 %v8460_v55  ;;  %v2936_v35 = vld [vmem:[#allocation4 + $0x1f0] sm:$0xff] }
 0x298   :  { %5977 = vmatprep.mubr.f32.mxu1 %v8462_v44 }
 0x299   :  { %6831 = vmatpush3.bf16.msra.mxu1 %v6828_v41  ;;  %v2925_v41 = vld [vmem:[#allocation4 + $0x198] sm:$0xff] }
 0x29a   :  { %6833 = vmatprep.subr.bf16.mxu1 %v6832_v1  ;;  %v6872_v52 = vpack.c.bf16 %v2925_v41, %v2924_v63  ;;  %v8572_v63 = vld [vmem:[#allocation3 + $0xf2] sm:$0xff]  ;;  %v3116_v41 = vld [vmem:[#allocation4 + $0x200] sm:$0xff] }
 0x29b   :  { %5978 = vmatmul.mubr.f32.gmra.mrb[14].mxu1 %v8390_v15 }
 0x29c   :  { %6012 = vmatprep.mubr.f32.mxu1 %v8493_v10 }
 0x29d   :  { %6835 = vmatpush3.bf16.msra.mxu1 %v6832_v1  ;;  %v2926_v1 = vld [vmem:[#allocation4 + $0x1a0] sm:$0xff] }
 0x29e   :  { %6837 = vmatprep.subr.bf16.mxu1 %v6836_v6 }
 0x2a0   :  { %6013 = vmatmul.mubr.f32.vlgmr.msra.gmra.mrb[0].mxu1 %v8496_v14 }
 0x2a1   :  { %6015 = vmatprep.mubr.f32.mxu1 %v8499_v30  ;;  %6839 = vmatpush3.bf16.msra.mxu1 %v6836_v6  ;;  %v6876_v6 = vpack.c.bf16 %v2927_v2, %v2926_v1  ;;  %v8575_v1 = vld [vmem:[#allocation3 + $0x102] sm:$0xff] }
 0x2a2   :  { %6841 = vmatprep.subr.bf16.mxu1 %v6840_v13 }
 0x2a4   :  { %6016 = vmatmul.mubr.f32.gmra.mrb[2].mxu1 %v8502_v32 }
 0x2a5   :  { %6018 = vmatprep.mubr.f32.mxu1 %v8505_v37  ;;  %6843 = vmatpush3.bf16.msra.mxu1 %v6840_v13  ;;  %v2929_v13 = vld [vmem:[#allocation4 + $0x1b8] sm:$0xff] }
 0x2a6   :  { %6845 = vmatprep.subr.bf16.mxu1 %v6844_v31  ;;  %v6880_v29 = vpack.c.bf16 %v2929_v13, %v2928_v9  ;;  %v3118_v9 = vld [vmem:[#allocation4 + $0x210] sm:$0xff]  ;;  %v3119_v13 = vld [vmem:[#allocation4 + $0x218] sm:$0xff] }
 0x2a8   :  { %6019 = vmatmul.mubr.f32.gmra.mrb[4].mxu1 %v8508_v7 }
 0x2a9   :  { %6021 = vmatprep.mubr.f32.mxu1 %v8511_v12  ;;  %6847 = vmatpush3.bf16.msra.mxu1 %v6844_v31  ;;  %v8551_v31 = vld [vmem:[#allocation3 + $0x52] sm:$0xff] }
 0x2aa   :  { %6849 = vmatprep.subr.bf16.mxu1 %v6848_v4 }
 0x2ac   :  { %6022 = vmatmul.mubr.f32.gmra.mrb[6].mxu1 %v8514_v49 }
 0x2ad   :  { %6851 = vmatpush3.bf16.msra.mxu1 %v6848_v4  ;;  %6024 = vmatprep.mubr.f32.mxu1 %v8493_v10  ;;  %v8554_v4 = vld [vmem:[#allocation3 + $0x62] sm:$0xff] }
 0x2ae   :  { %6853 = vmatprep.subr.bf16.mxu1 %v6852_v11 }
 0x2b0   :  { %6025 = vmatmul.mubr.f32.gmra.mrb[8].mxu1 %v8518_v17 }
 0x2b1   :  { %6027 = vmatprep.mubr.f32.mxu1 %v8521_v39  ;;  %6855 = vmatpush3.bf16.msra.mxu1 %v6852_v11  ;;  %v8557_v11 = vld [vmem:[#allocation3 + $0x72] sm:$0xff] }
 0x2b2   :  { %6857 = vmatprep.subr.bf16.mxu1 %v6856_v25 }
 0x2b4   :  { %6028 = vmatmul.mubr.f32.gmra.mrb[10].mxu1 %v8524_v42 }
 0x2b5   :  { %6030 = vmatprep.mubr.f32.mxu1 %v8527_v58  ;;  %6859 = vmatpush3.bf16.msra.mxu1 %v6856_v25  ;;  %v6888_v25 = vpack.c.bf16 %v2933_v38, %v2932_v19  ;;  %v3123_v19 = vld [vmem:[#allocation4 + $0x238] sm:$0xff]  ;;  %v3124_v38 = vld [vmem:[#allocation4 + $0x240] sm:$0xff] }
 0x2b6   :  { %6861 = vmatprep.subr.bf16.mxu1 %v6860_v40 }
 0x2b8   :  { %6031 = vmatmul.mubr.f32.gmra.mrb[12].mxu1 %v8530_v21 }
 0x2b9   :  { %6033 = vmatprep.mubr.f32.mxu1 %v8533_v59  ;;  %6863 = vmatpush3.bf16.msra.mxu1 %v6860_v40  ;;  %v2935_v40 = vld [vmem:[#allocation4 + $0x1e8] sm:$0xff] }
 0x2ba   :  { %6865 = vmatprep.subr.bf16.mxu1 %v6864_v57  ;;  %v6892_v54 = vpack.c.bf16 %v2935_v40, %v2934_v33  ;;  %v8588_v40 = vld [vmem:[#allocation3 + $0x80] sm:$0xff] }
 0x2bc   :  { %6034 = vmatmul.mubr.f32.gmra.mrb[14].mxu1 %v8536_v62 }
 0x2bd   :  { %6867 = vmatpush3.bf16.msra.mxu1 %v6864_v57  ;;  %6068 = vmatprep.mubr.f32.mxu1 %v2711_v60  ;;  %v8566_v57 = vld [vmem:[#allocation3 + $0xd2] sm:$0xff]  ;;  %v8569_v60 = vld [vmem:[#allocation3 + $0xe2] sm:$0xff] }
 0x2be   :  { %6869 = vmatprep.subr.bf16.mxu1 %v6868_v61 }
 0x2c0   :  { %6069 = vmatmul.mubr.f32.vlgmr.msra.gmra.mrb[0].mxu1 %v8539_v0 }
 0x2c1   :  { %6071 = vmatprep.mubr.f32.mxu1 %v8542_v3  ;;  %6871 = vmatpush3.bf16.msra.mxu1 %v6868_v61  ;;  %v6896_v61 = vpack.c.bf16 %v2937_v43, %v2936_v35  ;;  %v3127_v35 = vld [vmem:[#allocation4 + $0x258] sm:$0xff]  ;;  %v4228_v43 = vld [vmem:[%s9098_s7] sm:$0xff] }
 0x2c2   :  { %6873 = vmatprep.subr.bf16.mxu1 %v6872_v52 }
 0x2c4   :  { %6072 = vmatmul.mubr.f32.gmra.mrb[2].mxu1 %v8545_v8 }
 0x2c5   :  { %6074 = vmatprep.mubr.f32.mxu1 %v8548_v28  ;;  %6875 = vmatpush3.bf16.msra.mxu1 %v6872_v52  ;;  %v3117_v52 = vld [vmem:[#allocation4 + $0x208] sm:$0xff] }
 0x2c6   :  { %6877 = vmatprep.subr.bf16.mxu1 %v6876_v6  ;;  %v6900_v2 = vpack.c.bf16 %v3117_v52, %v3116_v41 }
 0x2c8   :  { %6075 = vmatmul.mubr.f32.gmra.mrb[4].mxu1 %v8551_v31 }
 0x2c9   :  { %6077 = vmatprep.mubr.f32.mxu1 %v8554_v4  ;;  %6879 = vmatpush3.bf16.msra.mxu1 %v6876_v6  ;;  %v8578_v6 = vld [vmem:[#allocation3 + $0x112] sm:$0xff] }
 0x2ca   :  { %6881 = vmatprep.subr.bf16.mxu1 %v6880_v29 }
 0x2cc   :  { %6078 = vmatmul.mubr.f32.gmra.mrb[6].mxu1 %v8557_v11 }
 0x2cd   :  { %6883 = vmatpush3.bf16.msra.mxu1 %v6880_v29  ;;  %6080 = vmatprep.mubr.f32.mxu1 %v2719_v5  ;;  %v6904_v29 = vpack.c.bf16 %v3119_v13, %v3118_v9  ;;  %v6908_v5 = vpack.c.bf16 %v3121_v36, %v3120_v34  ;;  %v3129_v9 = vld [vmem:[#allocation4 + $0x268] sm:$0xff]  ;;  %v4231_v13 = vld [vmem:[%s9098_s7 + $0x18] sm:$0xff]  ;;  %v3130_v36 = vld [vmem:[#allocation4 + $0x270] sm:$0xff] }
 0x2ce   :  { %6885 = vmatprep.subr.bf16.mxu1 %v6884_v51 }
 0x2d0   :  { %6081 = vmatmul.mubr.f32.gmra.mrb[8].mxu1 %v8560_v27 }
 0x2d1   :  { %6083 = vmatprep.mubr.f32.mxu1 %v8563_v53  ;;  %6887 = vmatpush3.bf16.msra.mxu1 %v6884_v51  ;;  %v3122_v51 = vld [vmem:[#allocation4 + $0x230] sm:$0xff] }
 0x2d2   :  { %6889 = vmatprep.subr.bf16.mxu1 %v6888_v25 }
 0x2d4   :  { %6084 = vmatmul.mubr.f32.gmra.mrb[10].mxu1 %v8566_v57 }
 0x2d5   :  { %6086 = vmatprep.mubr.f32.mxu1 %v8569_v60  ;;  %6891 = vmatpush3.bf16.msra.mxu1 %v6888_v25  ;;  %v3125_v25 = vld [vmem:[#allocation4 + $0x248] sm:$0xff] }
 0x2d6   :  { %6893 = vmatprep.subr.bf16.mxu1 %v6892_v54  ;;  %v6916_v33 = vpack.c.bf16 %v3125_v25, %v3124_v38  ;;  %v3310_v25 = vld [vmem:[#allocation4 + $0x280] sm:$0xff] }
 0x2d8   :  { %6087 = vmatmul.mubr.f32.gmra.mrb[12].mxu1 %v8572_v63 }
 0x2d9   :  { %6089 = vmatprep.mubr.f32.mxu1 %v8575_v1  ;;  %6895 = vmatpush3.bf16.msra.mxu1 %v6892_v54  ;;  %v3126_v54 = vld [vmem:[#allocation4 + $0x250] sm:$0xff] }
 0x2da   :  { %6897 = vmatprep.subr.bf16.mxu1 %v6896_v61  ;;  %v6920_v41 = vpack.c.bf16 %v3127_v35, %v3126_v54  ;;  %v4234_v54 = vld [vmem:[%s9098_s7 + $0x30] sm:$0xff]  ;;  %v4235_v35 = vld [vmem:[%s9098_s7 + $0x38] sm:$0xff] }
 0x2dc   :  { %6090 = vmatmul.mubr.f32.gmra.mrb[14].mxu1 %v8578_v6 }
 0x2dd   :  { %6899 = vmatpush3.bf16.msra.mxu1 %v6896_v61  ;;  %6124 = vmatprep.mubr.f32.mxu1 %v8496_v14  ;;  %v6912_v14 = vpack.c.bf16 %v3123_v19, %v3122_v51  ;;  %v4229_v61 = vld [vmem:[%s9098_s7 + $0x8] sm:$0xff]  ;;  %v4232_v51 = vld [vmem:[%s9098_s7 + $0x20] sm:$0xff] }
 0x2de   :  { %6901 = vmatprep.subr.bf16.mxu1 %v6900_v2  ;;  %v8598_v52 = vpack.c.bf16 %v4229_v61, %v4228_v43  ;;  %v4233_v19 = vld [vmem:[%s9098_s7 + $0x28] sm:$0xff]  ;;  %v8634_v61 = vpack.c.bf16 %v4235_v35, %v4234_v54 }
 0x2df   :  { %v8622_v38 = vpack.c.bf16 %v4233_v19, %v4232_v51  ;;  %v3315_v51 = vld [vmem:[#allocation4 + $0x2a8] sm:$0xff]  ;;  %v4239_v19 = vld [vmem:[%s9098_s7 + $0x58] sm:$0xff] }
 0x2e0   :  { %6125 = vmatmul.mubr.f32.vlgmr.msra.gmra.mrb[0].mxu1 %v8499_v30  ;;  %7061 = vmatprep.subr.bf16.mxu0 %v8598_v52  ;;  %v4241_v54 = vld [vmem:[%s9098_s7 + $0x68] sm:$0xff] }
 0x2e1   :  { %6127 = vmatprep.mubr.f32.mxu1 %v8502_v32  ;;  %6903 = vmatpush3.bf16.msra.mxu1 %v6900_v2  ;;  %v3128_v2 = vld [vmem:[#allocation4 + $0x260] sm:$0xff] }
 0x2e2   :  { %6905 = vmatprep.subr.bf16.mxu1 %v6904_v29  ;;  %7063 = vmatpush3.bf16.msra.mxu0 %v8598_v52 }
 0x2e4   :  { %6128 = vmatmul.mubr.f32.gmra.mrb[2].mxu1 %v8505_v37 }
 0x2e5   :  { %6130 = vmatprep.mubr.f32.mxu1 %v8508_v7  ;;  %6907 = vmatpush3.bf16.msra.mxu1 %v6904_v29  ;;  %v6924_v29 = vpack.c.bf16 %v3129_v9, %v3128_v2  ;;  %v3312_v2 = vld [vmem:[#allocation4 + $0x290] sm:$0xff]  ;;  %v3313_v9 = vld [vmem:[#allocation4 + $0x298] sm:$0xff] }
 0x2e6   :  { %6909 = vmatprep.subr.bf16.mxu1 %v6908_v5 }
 0x2e8   :  { %6131 = vmatmul.mubr.f32.gmra.mrb[4].mxu1 %v8511_v12 }
 0x2e9   :  { %6133 = vmatprep.mubr.f32.mxu1 %v8514_v49  ;;  %6911 = vmatpush3.bf16.msra.mxu1 %v6908_v5  ;;  %v3131_v5 = vld [vmem:[#allocation4 + $0x278] sm:$0xff] }
 0x2ea   :  { %6913 = vmatprep.subr.bf16.mxu1 %v6912_v14 }
 0x2ec   :  { %6134 = vmatmul.mubr.f32.gmra.mrb[6].mxu1 %v8588_v40 }
 0x2ed   :  { %6136 = vmatprep.mubr.f32.mxu1 %v8518_v17  ;;  %6915 = vmatpush3.bf16.msra.mxu1 %v6912_v14  ;;  %v4230_v17 = vld [vmem:[%s9098_s7 + $0x10] sm:$0xff]  ;;  %v6928_v14 = vpack.c.bf16 %v3131_v5, %v3130_v36  ;;  %v3314_v5 = vld [vmem:[#allocation4 + $0x2a0] sm:$0xff] }
 0x2ee   :  { %6917 = vmatprep.subr.bf16.mxu1 %v6916_v33  ;;  %v8610_v34 = vpack.c.bf16 %v4231_v13, %v4230_v17  ;;  %v4236_v17 = vld [vmem:[%s9098_s7 + $0x40] sm:$0xff]  ;;  %v4237_v13 = vld [vmem:[%s9098_s7 + $0x48] sm:$0xff] }
 0x2ef   :  { %v8648_v36 = vpack.c.bf16 %v4237_v13, %v4236_v17 }
 0x2f0   :  { %6137 = vmatmul.mubr.f32.gmra.mrb[8].mxu1 %v8521_v39  ;;  %7065 = vmatprep.subr.bf16.mxu0 %v8610_v34 }
 0x2f1   :  { %6139 = vmatprep.mubr.f32.mxu1 %v8524_v42  ;;  %6919 = vmatpush3.bf16.msra.mxu1 %v6916_v33  ;;  %v3311_v33 = vld [vmem:[#allocation4 + $0x288] sm:$0xff] }
 0x2f2   :  { %6921 = vmatprep.subr.bf16.mxu1 %v6920_v41  ;;  %7067 = vmatpush3.bf16.msra.mxu0 %v8610_v34  ;;  %v6932_v43 = vpack.c.bf16 %v3311_v33, %v3310_v25  ;;  %v3317_v33 = vld [vmem:[#allocation4 + $0x2b8] sm:$0xff] }
 0x2f3   :  { %7069 = vmatprep.subr.bf16.mxu0 %v8622_v38 }
 0x2f4   :  { %6140 = vmatmul.mubr.f32.gmra.mrb[10].mxu1 %v8527_v58 }
 0x2f5   :  { %6142 = vmatprep.mubr.f32.mxu1 %v8530_v21  ;;  %6923 = vmatpush3.bf16.msra.mxu1 %v6920_v41  ;;  %v8636_v41 = vld [vmem:[#allocation3 + $0x120] sm:$0xff] }
 0x2f6   :  { %6925 = vmatprep.subr.bf16.mxu1 %v6924_v29  ;;  %7071 = vmatpush3.bf16.msra.mxu0 %v8622_v38 }
 0x2f7   :  { %7073 = vmatprep.subr.bf16.mxu0 %v8634_v61 }
 0x2f8   :  { %6143 = vmatmul.mubr.f32.gmra.mrb[12].mxu1 %v8533_v59 }
 0x2f9   :  { %6145 = vmatprep.mubr.f32.mxu1 %v8536_v62  ;;  %6927 = vmatpush3.bf16.msra.mxu1 %v6924_v29  ;;  %v6936_v29 = vpack.c.bf16 %v3313_v9, %v3312_v2  ;;  %v3319_v2 = vld [vmem:[#allocation4 + $0x2c8] sm:$0xff]  ;;  %v4243_v9 = vld [vmem:[%s9098_s7 + $0x78] sm:$0xff] }
 0x2fa   :  { %6929 = vmatprep.subr.bf16.mxu1 %v6928_v14  ;;  %7075 = vmatpush3.bf16.msra.mxu0 %v8634_v61 }
 0x2fb   :  { %7077 = vmatprep.subr.bf16.mxu0 %v8648_v36 }
 0x2fc   :  { %6146 = vmatmul.mubr.f32.gmra.mrb[14].mxu1 %v8636_v41 }
 0x2fd   :  { %6931 = vmatpush3.bf16.msra.mxu1 %v6928_v14  ;;  %6180 = vmatprep.mubr.f32.mxu1 %v8392_v16  ;;  %v4238_v16 = vld [vmem:[%s9098_s7 + $0x50] sm:$0xff]  ;;  %v6940_v14 = vpack.c.bf16 %v3315_v51, %v3314_v5  ;;  %v3322_v51 = vld [vmem:[#allocation4 + $0x2e0] sm:$0xff] }
 0x2fe   :  { %6933 = vmatprep.subr.bf16.mxu1 %v6932_v43  ;;  %7079 = vmatpush3.bf16.msra.mxu0 %v8648_v36  ;;  %v8660_v25 = vpack.c.bf16 %v4239_v19, %v4238_v16  ;;  %v3323_v16 = vld [vmem:[#allocation4 + $0x2e8] sm:$0xff] }
 0x2ff   :  { %v4213_v19 = vld [vmem:[#allocation2 + $0x49] ss:$2 sm:$0xff] }
 0x300   :  { %6181 = vmatmul.mubr.f32.vlgmr.msra.gmra.mrb[0].mxu1 %v8394_v18  ;;  %v3316_v18 = vld [vmem:[#allocation4 + $0x2b0] sm:$0xff]  ;;  %7081 = vmatprep.subr.bf16.mxu0 %v8660_v25 }
 0x301   :  { %6183 = vmatprep.mubr.f32.mxu1 %v8396_v20  ;;  %6935 = vmatpush3.bf16.msra.mxu1 %v6932_v43  ;;  %v4240_v20 = vld [vmem:[%s9098_s7 + $0x60] sm:$0xff]  ;;  %v6944_v35 = vpack.c.bf16 %v3317_v33, %v3316_v18  ;;  %v6956_v18 = vpack.c.bf16 %v3323_v16, %v3322_v51  ;;  %v3325_v33 = vld [vmem:[#allocation4 + $0x2f8] sm:$0xff]  ;;  %v3514_v51 = vld [vmem:[#allocation4 + $0x348] sm:$0xff] }
 0x302   :  { %6937 = vmatprep.subr.bf16.mxu1 %v6936_v29  ;;  %7083 = vmatpush3.bf16.msra.mxu0 %v8660_v25  ;;  %v8672_v43 = vpack.c.bf16 %v4241_v54, %v4240_v20  ;;  %v4215_v20 = vld [vmem:[#allocation2 + $0xa9] ss:$2 sm:$0xff]  ;;  %v4216_v54 = vld [vmem:[#allocation2 + $0xd9] ss:$2 sm:$0xff] }
 0x304   :  { %6184 = vmatmul.mubr.f32.gmra.mrb[2].mxu1 %v8398_v22  ;;  %v3318_v22 = vld [vmem:[#allocation4 + $0x2c0] sm:$0xff]  ;;  %7085 = vmatprep.subr.bf16.mxu0 %v8672_v43 }
 0x305   :  { %6186 = vmatprep.mubr.f32.mxu1 %v8400_v23  ;;  %6939 = vmatpush3.bf16.msra.mxu1 %v6936_v29  ;;  %v4242_v23 = vld [vmem:[%s9098_s7 + $0x70] sm:$0xff]  ;;  %v6948_v17 = vpack.c.bf16 %v3319_v2, %v3318_v22  ;;  %v3321_v29 = vld [vmem:[#allocation4 + $0x2d8] sm:$0xff] }
 0x306   :  { %6941 = vmatprep.subr.bf16.mxu1 %v6940_v14  ;;  %7087 = vmatpush3.bf16.msra.mxu0 %v8672_v43  ;;  %v8684_v13 = vpack.c.bf16 %v4243_v9, %v4242_v23  ;;  %v4217_v22 = vld [vmem:[#allocation2 + $0x109] ss:$2 sm:$0xff]  ;;  %v4218_v2 = vld [vmem:[#allocation2 + $0x139] ss:$2 sm:$0xff] }
 0x307   :  { %v4219_v9 = vld [vmem:[#allocation2 + $0x169] ss:$2 sm:$0xff] }
 0x308   :  { %6187 = vmatmul.mubr.f32.gmra.mrb[4].mxu1 %v8402_v24  ;;  %v3320_v24 = vld [vmem:[#allocation4 + $0x2d0] sm:$0xff]  ;;  %7089 = vmatprep.subr.bf16.mxu0 %v8684_v13 }
 0x309   :  { %6189 = vmatprep.mubr.f32.mxu1 %v8404_v26  ;;  %6943 = vmatpush3.bf16.msra.mxu1 %v6940_v14  ;;  %v4212_v26 = vld [vmem:[#allocation2 + $0x19] ss:$2 sm:$0xff]  ;;  %v6952_v5 = vpack.c.bf16 %v3321_v29, %v3320_v24  ;;  %v3510_v24 = vld [vmem:[#allocation4 + $0x328] sm:$0xff]  ;;  %v3511_v29 = vld [vmem:[#allocation4 + $0x330] sm:$0xff] }
 0x30a   :  { %6945 = vmatprep.subr.bf16.mxu1 %v6944_v35  ;;  %7091 = vmatpush3.bf16.msra.mxu0 %v8684_v13  ;;  %v4214_v14 = vld [vmem:[#allocation2 + $0x79] ss:$2 sm:$0xff] }
 0x30b   :  { %6460 = vmatprep.mubr.f32.mxu0 %v4212_v26  ;;  %v3512_v26 = vld [vmem:[#allocation4 + $0x338] sm:$0xff] }
 0x30c   :  { %6190 = vmatmul.mubr.f32.gmra.mrb[6].mxu1 %v8464_v56 }
 0x30d   :  { %6192 = vmatprep.mubr.f32.mxu1 %v8452_v46  ;;  %6947 = vmatpush3.bf16.msra.mxu1 %v6944_v35  ;;  %v3324_v46 = vld [vmem:[#allocation4 + $0x2f0] sm:$0xff] }
 0x30e   :  { %6949 = vmatprep.subr.bf16.mxu1 %v6948_v17  ;;  %6461 = vmatmul.mubr.f32.vlgmr.msra.gmra.mrb[16].mxu0 %v4213_v19  ;;  %v6960_v35 = vpack.c.bf16 %v3325_v33, %v3324_v46  ;;  %v8704_v19 = vld [vmem:[#allocation3 + $0x82] sm:$0xff] }
 0x30f   :  { %6463 = vmatprep.mubr.f32.mxu0 %v4214_v14  ;;  %v3515_v14 = vld [vmem:[#allocation4 + $0x350] sm:$0xff]  ;;  %v3517_v33 = vld [vmem:[#allocation4 + $0x360] sm:$0xff] }
 0x310   :  { %6193 = vmatmul.mubr.f32.gmra.mrb[8].mxu1 %v8454_v47  ;;  %v3505_v47 = vld [vmem:[#allocation4 + $0x300] sm:$0xff] }
 0x311   :  { %6195 = vmatprep.mubr.f32.mxu1 %v8456_v48  ;;  %6951 = vmatpush3.bf16.msra.mxu1 %v6948_v17  ;;  %v3506_v48 = vld [vmem:[#allocation4 + $0x308] sm:$0xff] }
 0x312   :  { %6953 = vmatprep.subr.bf16.mxu1 %v6952_v5  ;;  %6464 = vmatmul.mubr.f32.gmra.mrb[18].mxu0 %v4215_v20  ;;  %v6964_v23 = vpack.c.bf16 %v3506_v48, %v3505_v47  ;;  %v3518_v20 = vld [vmem:[#allocation4 + $0x368] sm:$0xff]  ;;  %v3520_v47 = vld [vmem:[#allocation4 + $0x378] sm:$0xff]  ;;  %v3699_v48 = vld [vmem:[#allocation4 + $0x380] sm:$0xff] }
 0x313   :  { %6466 = vmatprep.mubr.f32.mxu0 %v4216_v54  ;;  %v6988_v54 = vpack.c.bf16 %v3518_v20, %v3517_v33  ;;  %v3682_v33 = vld [vmem:[#allocation3 + $0x21] sm:$0xff] }
 0x314   :  { %6196 = vmatmul.mubr.f32.gmra.mrb[10].mxu1 %v8458_v50  ;;  %v3507_v50 = vld [vmem:[#allocation4 + $0x310] sm:$0xff]  ;;  %v3897_v20 = vld [vmem:[#allocation4 + $0x420] sm:$0xff] }
 0x315   :  { %6198 = vmatprep.mubr.f32.mxu1 %v8460_v55  ;;  %6955 = vmatpush3.bf16.msra.mxu1 %v6952_v5  ;;  %v3508_v55 = vld [vmem:[#allocation4 + $0x318] sm:$0xff]  ;;  %v3513_v5 = vld [vmem:[#allocation4 + $0x340] sm:$0xff] }
 0x316   :  { %6957 = vmatprep.subr.bf16.mxu1 %v6956_v18  ;;  %6467 = vmatmul.mubr.f32.gmra.mrb[20].mxu0 %v4217_v22  ;;  %v6968_v17 = vpack.c.bf16 %v3508_v55, %v3507_v50  ;;  %v6980_v16 = vpack.c.bf16 %v3514_v51, %v3513_v5  ;;  %v3700_v22 = vld [vmem:[#allocation4 + $0x388] sm:$0xff]  ;;  %v3701_v50 = vld [vmem:[#allocation4 + $0x390] sm:$0xff]  ;;  %v3702_v55 = vld [vmem:[#allocation4 + $0x398] sm:$0xff] }
 0x317   :  { %6469 = vmatprep.mubr.f32.mxu0 %v4218_v2  ;;  %v6996_v2 = vpack.c.bf16 %v3700_v22, %v3699_v48  ;;  %v3710_v5 = vld [vmem:[#allocation4 + $0x3d8] sm:$0xff]  ;;  %v3712_v51 = vld [vmem:[#allocation4 + $0x3e8] sm:$0xff] }
 0x318   :  { %6199 = vmatmul.mubr.f32.gmra.mrb[12].mxu1 %v8462_v44  ;;  %v3509_v44 = vld [vmem:[#allocation4 + $0x320] sm:$0xff]  ;;  %v3687_v22 = vld [vmem:[#allocation3 + $0x71] sm:$0xff] }
 0x319   :  { %6201 = vmatprep.mubr.f32.mxu1 %v8390_v15  ;;  %6959 = vmatpush3.bf16.msra.mxu1 %v6956_v18  ;;  %v6972_v15 = vpack.c.bf16 %v3510_v24, %v3509_v44  ;;  %v3516_v18 = vld [vmem:[#allocation4 + $0x358] sm:$0xff]  ;;  %v3704_v44 = vld [vmem:[#allocation4 + $0x3a8] sm:$0xff] }
 0x31a   :  { %6961 = vmatprep.subr.bf16.mxu1 %v6960_v35  ;;  %6470 = vmatmul.mubr.f32.gmra.mrb[22].mxu0 %v4219_v9  ;;  %v6984_v46 = vpack.c.bf16 %v3516_v18, %v3515_v14  ;;  %v7000_v9 = vpack.c.bf16 %v3702_v55, %v3701_v50  ;;  %v3893_v14 = vld [vmem:[#allocation4 + $0x400] sm:$0xff]  ;;  %v3894_v18 = vld [vmem:[#allocation4 + $0x408] sm:$0xff]  ;;  %v3689_v55 = vld [vmem:[#allocation3 + $0x91] sm:$0xff] }
 0x31b   :  { %v3686_v48 = vld [vmem:[#allocation3 + $0x61] sm:$0xff] }
 0x31c   :  { %6202 = vmatmul.mubr.f32.gmra.mrb[14].mxu1 %v8483_v45  ;;  %v3902_v50 = vld [vmem:[#allocation4 + $0x448] sm:$0xff] }
 0x31d   :  { %6963 = vmatpush3.bf16.msra.mxu1 %v6960_v35  ;;  %6236 = vmatprep.mubr.f32.mxu1 %v8539_v0  ;;  %v6976_v0 = vpack.c.bf16 %v3512_v26, %v3511_v29  ;;  %v3519_v35 = vld [vmem:[#allocation4 + $0x370] sm:$0xff]  ;;  %v3706_v29 = vld [vmem:[#allocation4 + $0x3b8] sm:$0xff]  ;;  %v3707_v26 = vld [vmem:[#allocation4 + $0x3c0] sm:$0xff] }
 0x31e   :  { %6965 = vmatprep.subr.bf16.mxu1 %v6964_v23 }
 0x320   :  { %6237 = vmatmul.mubr.f32.vlgmr.msra.gmra.mrb[0].mxu1 %v8542_v3 }
 0x321   :  { %6239 = vmatprep.mubr.f32.mxu1 %v8545_v8  ;;  %6967 = vmatpush3.bf16.msra.mxu1 %v6964_v23  ;;  %v8714_v23 = vld [vmem:[#allocation3 + $0x122] sm:$0xff] }
 0x322   :  { %6969 = vmatprep.subr.bf16.mxu1 %v6968_v17 }
 0x324   :  { %6240 = vmatmul.mubr.f32.gmra.mrb[2].mxu1 %v8548_v28 }
 0x325   :  { %6242 = vmatprep.mubr.f32.mxu1 %v8551_v31  ;;  %6971 = vmatpush3.bf16.msra.mxu1 %v6968_v17  ;;  %v3703_v17 = vld [vmem:[#allocation4 + $0x3a0] sm:$0xff] }
 0x326   :  { %6973 = vmatprep.subr.bf16.mxu1 %v6972_v15  ;;  %v7004_v24 = vpack.c.bf16 %v3704_v44, %v3703_v17  ;;  %v3903_v17 = vld [vmem:[#allocation4 + $0x450] sm:$0xff]  ;;  %v3904_v44 = vld [vmem:[#allocation4 + $0x458] sm:$0xff] }
 0x328   :  { %6243 = vmatmul.mubr.f32.gmra.mrb[4].mxu1 %v8554_v4 }
 0x329   :  { %6245 = vmatprep.mubr.f32.mxu1 %v8557_v11  ;;  %6975 = vmatpush3.bf16.msra.mxu1 %v6972_v15  ;;  %v3705_v15 = vld [vmem:[#allocation4 + $0x3b0] sm:$0xff] }
 0x32a   :  { %6977 = vmatprep.subr.bf16.mxu1 %v6976_v0 }
 0x32c   :  { %6246 = vmatmul.mubr.f32.gmra.mrb[6].mxu1 %v8704_v19 }
 0x32d   :  { %6248 = vmatprep.mubr.f32.mxu1 %v8560_v27  ;;  %6979 = vmatpush3.bf16.msra.mxu1 %v6976_v0  ;;  %v6992_v27 = vpack.c.bf16 %v3520_v47, %v3519_v35  ;;  %v3708_v0 = vld [vmem:[#allocation4 + $0x3c8] sm:$0xff]  ;;  %v3899_v47 = vld [vmem:[#allocation4 + $0x430] sm:$0xff] }
 0x32e   :  { %6981 = vmatprep.subr.bf16.mxu1 %v6980_v16  ;;  %v3684_v35 = vld [vmem:[#allocation3 + $0x41] sm:$0xff] }
 0x330   :  { %6249 = vmatmul.mubr.f32.gmra.mrb[8].mxu1 %v8563_v53 }
 0x331   :  { %6251 = vmatprep.mubr.f32.mxu1 %v8566_v57  ;;  %6983 = vmatpush3.bf16.msra.mxu1 %v6980_v16  ;;  %v3714_v16 = vld [vmem:[#allocation4 + $0x3f8] sm:$0xff] }
 0x332   :  { %6985 = vmatprep.subr.bf16.mxu1 %v6984_v46 }
 0x334   :  { %6252 = vmatmul.mubr.f32.gmra.mrb[10].mxu1 %v8569_v60 }
 0x335   :  { %6254 = vmatprep.mubr.f32.mxu1 %v8572_v63  ;;  %6987 = vmatpush3.bf16.msra.mxu1 %v6984_v46  ;;  %v3896_v46 = vld [vmem:[#allocation4 + $0x418] sm:$0xff] }
 0x336   :  { %6989 = vmatprep.subr.bf16.mxu1 %v6988_v54 }
 0x338   :  { %6255 = vmatmul.mubr.f32.gmra.mrb[12].mxu1 %v8575_v1 }
 0x339   :  { %6257 = vmatprep.mubr.f32.mxu1 %v8578_v6  ;;  %6991 = vmatpush3.bf16.msra.mxu1 %v6988_v54  ;;  %v3898_v54 = vld [vmem:[#allocation4 + $0x428] sm:$0xff] }
 0x33a   :  { %6993 = vmatprep.subr.bf16.mxu1 %v6992_v27 }
 0x33c   :  { %6258 = vmatmul.mubr.f32.gmra.mrb[14].mxu1 %v8714_v23 }
 0x33d   :  { %6995 = vmatpush3.bf16.msra.mxu1 %v6992_v27  ;;  %6292 = vmatprep.mubr.f32.mxu1 %v8499_v30  ;;  %v7008_v30 = vpack.c.bf16 %v3706_v29, %v3705_v15  ;;  %v3900_v27 = vld [vmem:[#allocation4 + $0x438] sm:$0xff]  ;;  %v7048_v15 = vpack.c.bf16 %v3904_v44, %v3903_v17 }
 0x33e   :  { %6997 = vmatprep.subr.bf16.mxu1 %v6996_v2  ;;  %v3691_v29 = vld [vmem:[#allocation3 + $0xd1] sm:$0xff] }
 0x340   :  { %6293 = vmatmul.mubr.f32.vlgmr.msra.gmra.mrb[0].mxu1 %v8502_v32  ;;  %v7012_v32 = vpack.c.bf16 %v3708_v0, %v3707_v26  ;;  %v3906_v26 = vld [vmem:[#allocation4 + $0x468] sm:$0xff] }
 0x341   :  { %6295 = vmatprep.mubr.f32.mxu1 %v8505_v37  ;;  %6999 = vmatpush3.bf16.msra.mxu1 %v6996_v2  ;;  %v3709_v37 = vld [vmem:[#allocation4 + $0x3d0] sm:$0xff]  ;;  %v3901_v2 = vld [vmem:[#allocation4 + $0x440] sm:$0xff] }
 0x342   :  { %7001 = vmatprep.subr.bf16.mxu1 %v7000_v9  ;;  %v3692_v0 = vld [vmem:[#allocation3 + $0xe1] sm:$0xff] }
 0x344   :  { %6296 = vmatmul.mubr.f32.gmra.mrb[2].mxu1 %v8508_v7  ;;  %v7016_v7 = vpack.c.bf16 %v3710_v5, %v3709_v37  ;;  %v3907_v37 = vld [vmem:[#allocation4 + $0x470] sm:$0xff]  ;;  %v3908_v5 = vld [vmem:[#allocation4 + $0x478] sm:$0xff] }
 0x345   :  { %6298 = vmatprep.mubr.f32.mxu1 %v8511_v12  ;;  %7003 = vmatpush3.bf16.msra.mxu1 %v7000_v9  ;;  %v3711_v12 = vld [vmem:[#allocation4 + $0x3e0] sm:$0xff]  ;;  %v7044_v9 = vpack.c.bf16 %v3902_v50, %v3901_v2 }
 0x346   :  { %7005 = vmatprep.subr.bf16.mxu1 %v7004_v24 }
 0x348   :  { %6299 = vmatmul.mubr.f32.gmra.mrb[4].mxu1 %v8514_v49  ;;  %v7020_v49 = vpack.c.bf16 %v3712_v51, %v3711_v12  ;;  %v7056_v12 = vpack.c.bf16 %v3908_v5, %v3907_v37  ;;  %v3695_v51 = vld [vmem:[#allocation3 + $0x111] sm:$0xff] }
 0x349   :  { %6301 = vmatprep.mubr.f32.mxu1 %v8588_v40  ;;  %7007 = vmatpush3.bf16.msra.mxu1 %v7004_v24  ;;  %v3713_v40 = vld [vmem:[#allocation4 + $0x3f0] sm:$0xff]  ;;  %v3690_v24 = vld [vmem:[#allocation3 + $0xc1] sm:$0xff] }
 0x34a   :  { %7009 = vmatprep.subr.bf16.mxu1 %v7008_v30 }
 0x34c   :  { %6302 = vmatmul.mubr.f32.gmra.mrb[6].mxu1 %v8493_v10 }
 0x34d   :  { %6304 = vmatprep.mubr.f32.mxu1 %v8521_v39  ;;  %7011 = vmatpush3.bf16.msra.mxu1 %v7008_v30  ;;  %v7024_v39 = vpack.c.bf16 %v3714_v16, %v3713_v40  ;;  %v3905_v30 = vld [vmem:[#allocation4 + $0x460] sm:$0xff] }
 0x34e   :  { %7013 = vmatprep.subr.bf16.mxu1 %v7012_v32 }
 0x350   :  { %6305 = vmatmul.mubr.f32.gmra.mrb[8].mxu1 %v8524_v42  ;;  %v7028_v42 = vpack.c.bf16 %v3894_v18, %v3893_v14 }
 0x351   :  { %6307 = vmatprep.mubr.f32.mxu1 %v8527_v58  ;;  %7015 = vmatpush3.bf16.msra.mxu1 %v7012_v32  ;;  %v3895_v58 = vld [vmem:[#allocation4 + $0x410] sm:$0xff] }
 0x352   :  { %7017 = vmatprep.subr.bf16.mxu1 %v7016_v7  ;;  %v3693_v32 = vld [vmem:[#allocation3 + $0xf1] sm:$0xff] }
 0x354   :  { %6308 = vmatmul.mubr.f32.gmra.mrb[10].mxu1 %v8530_v21  ;;  %v7032_v21 = vpack.c.bf16 %v3896_v46, %v3895_v58 }
 0x355   :  { %6310 = vmatprep.mubr.f32.mxu1 %v8533_v59  ;;  %7019 = vmatpush3.bf16.msra.mxu1 %v7016_v7  ;;  %v3683_v59 = vld [vmem:[#allocation3 + $0x31] sm:$0xff]  ;;  %v3694_v7 = vld [vmem:[#allocation3 + $0x101] sm:$0xff] }
 0x356   :  { %7021 = vmatprep.subr.bf16.mxu1 %v7020_v49 }
 0x358   :  { %6311 = vmatmul.mubr.f32.gmra.mrb[12].mxu1 %v8536_v62  ;;  %v7036_v62 = vpack.c.bf16 %v3898_v54, %v3897_v20 }
 0x359   :  { %6313 = vmatprep.mubr.f32.mxu1 %v8636_v41  ;;  %7023 = vmatpush3.bf16.msra.mxu1 %v7020_v49  ;;  %v3685_v41 = vld [vmem:[#allocation3 + $0x51] sm:$0xff] }
 0x35a   :  { %7025 = vmatprep.subr.bf16.mxu1 %v7024_v39  ;;  %v3697_v49 = vld [vmem:[#allocation3 + $0x131] sm:$0xff] }
 0x35c   :  { %6314 = vmatmul.mubr.f32.gmra.mrb[14].mxu1 %v8493_v10  ;;  %v7040_v10 = vpack.c.bf16 %v3900_v27, %v3899_v47 }
 0x35d   :  { %7027 = vmatpush3.bf16.msra.mxu1 %v7024_v39  ;;  %6348 = vmatprep.mubr.f32.mxu1 %v3682_v33 }
 0x35e   :  { %7029 = vmatprep.subr.bf16.mxu1 %v7028_v42 }
 0x360   :  { %6349 = vmatmul.mubr.f32.vlgmr.msra.gmra.mrb[0].mxu1 %v3683_v59 }
 0x361   :  { %6351 = vmatprep.mubr.f32.mxu1 %v3684_v35  ;;  %7031 = vmatpush3.bf16.msra.mxu1 %v7028_v42 }
 0x362   :  { %7033 = vmatprep.subr.bf16.mxu1 %v7032_v21 }
 0x364   :  { %6352 = vmatmul.mubr.f32.gmra.mrb[2].mxu1 %v3685_v41 }
 0x365   :  { %6354 = vmatprep.mubr.f32.mxu1 %v3686_v48  ;;  %7035 = vmatpush3.bf16.msra.mxu1 %v7032_v21 }
 0x366   :  { %7037 = vmatprep.subr.bf16.mxu1 %v7036_v62 }
 0x368   :  { %6355 = vmatmul.mubr.f32.gmra.mrb[4].mxu1 %v3687_v22 }
 0x369   :  { %6357 = vmatprep.mubr.f32.mxu1 %v8464_v56  ;;  %7039 = vmatpush3.bf16.msra.mxu1 %v7036_v62  ;;  %v7052_v56 = vpack.c.bf16 %v3906_v26, %v3905_v30 }
 0x36a   :  { %7041 = vmatprep.subr.bf16.mxu1 %v7040_v10 }
 0x36c   :  { %6358 = vmatmul.mubr.f32.gmra.mrb[6].mxu1 %v3689_v55 }
 0x36d   :  { %6360 = vmatprep.mubr.f32.mxu1 %v3690_v24  ;;  %7043 = vmatpush3.bf16.msra.mxu1 %v7040_v10 }
 0x36e   :  { %7045 = vmatprep.subr.bf16.mxu1 %v7044_v9 }
 0x370   :  { %6361 = vmatmul.mubr.f32.gmra.mrb[8].mxu1 %v3691_v29 }
 0x371   :  { %6363 = vmatprep.mubr.f32.mxu1 %v3692_v0  ;;  %7047 = vmatpush3.bf16.msra.mxu1 %v7044_v9 }
 0x372   :  { %7049 = vmatprep.subr.bf16.mxu1 %v7048_v15 }
 0x374   :  { %6364 = vmatmul.mubr.f32.gmra.mrb[10].mxu1 %v3693_v32 }
 0x375   :  { %6366 = vmatprep.mubr.f32.mxu1 %v3694_v7  ;;  %7051 = vmatpush3.bf16.msra.mxu1 %v7048_v15 }
 0x376   :  { %7053 = vmatprep.subr.bf16.mxu1 %v7052_v56 }
 0x378   :  { %6367 = vmatmul.mubr.f32.gmra.mrb[12].mxu1 %v3695_v51 }
 0x379   :  { %6369 = vmatprep.mubr.f32.mxu1 %v8483_v45  ;;  %7055 = vmatpush3.bf16.msra.mxu1 %v7052_v56  ;;  %v3883_v45 = vld [vmem:[#allocation3 + $0x92] sm:$0xff] }
 0x37a   :  { %7057 = vmatprep.subr.bf16.mxu1 %v7056_v12 }
 0x37c   :  { %6370 = vmatmul.mubr.f32.gmra.mrb[14].mxu1 %v3697_v49 }
 0x37d   :  { %7059 = vmatpush3.bf16.msra.mxu1 %v7056_v12  ;;  %6404 = vmatprep.mubr.f32.mxu1 %v8542_v3  ;;  %v3891_v3 = vld [vmem:[#allocation3 + $0x132] sm:$0xff] }
 0x37e   :  { %7092 = vmatprep.subr.bf16.mxu1 %v8598_v52 }
 0x380   :  { %6405 = vmatmul.mubr.f32.vlgmr.msra.gmra.mrb[0].mxu1 %v8545_v8  ;;  %v4220_v8 = vld [vmem:[#allocation2 + $0x1c9] ss:$2 sm:$0xff] }
 0x381   :  { %6407 = vmatprep.mubr.f32.mxu1 %v8548_v28  ;;  %7100 = vmatpush3.bf16.msra.mxu1 %v8598_v52  ;;  %v4221_v28 = vld [vmem:[#allocation2 + $0x1f9] ss:$2 sm:$0xff] }
 0x382   :  { %7093 = vmatprep.subr.bf16.mxu1 %v8610_v34 }
 0x384   :  { %6408 = vmatmul.mubr.f32.gmra.mrb[2].mxu1 %v8551_v31  ;;  %v4222_v31 = vld [vmem:[#allocation2 + $0x229] ss:$2 sm:$0xff] }
 0x385   :  { %6410 = vmatprep.mubr.f32.mxu1 %v8554_v4  ;;  %7101 = vmatpush3.bf16.msra.mxu1 %v8610_v34  ;;  %v4223_v4 = vld [vmem:[#allocation2 + $0x259] ss:$2 sm:$0xff] }
 0x386   :  { %7094 = vmatprep.subr.bf16.mxu1 %v8622_v38 }
 0x388   :  { %6411 = vmatmul.mubr.f32.gmra.mrb[4].mxu1 %v8557_v11  ;;  %v4224_v11 = vld [vmem:[#allocation2 + $0x289] ss:$2 sm:$0xff] }
 0x389   :  { %6413 = vmatprep.mubr.f32.mxu1 %v8704_v19  ;;  %7102 = vmatpush3.bf16.msra.mxu1 %v8622_v38 }
 0x38a   :  { %7095 = vmatprep.subr.bf16.mxu1 %v8634_v61 }
 0x38c   :  { %6414 = vmatmul.mubr.f32.gmra.mrb[6].mxu1 %v3883_v45 }
 0x38d   :  { %6416 = vmatprep.mubr.f32.mxu1 %v8563_v53  ;;  %7103 = vmatpush3.bf16.msra.mxu1 %v8634_v61  ;;  %v4225_v53 = vld [vmem:[#allocation2 + $0x2b9] ss:$2 sm:$0xff] }
 0x38e   :  { %7096 = vmatprep.subr.bf16.mxu1 %v8648_v36 }
 0x390   :  { %6417 = vmatmul.mubr.f32.gmra.mrb[8].mxu1 %v8566_v57  ;;  %v4226_v57 = vld [vmem:[#allocation2 + $0x2e9] ss:$2 sm:$0xff] }
 0x391   :  { %6419 = vmatprep.mubr.f32.mxu1 %v8569_v60  ;;  %7104 = vmatpush3.bf16.msra.mxu1 %v8648_v36  ;;  %v4227_v60 = vld [vmem:[#allocation2 + $0x319] ss:$2 sm:$0xff] }
 0x392   :  { %7097 = vmatprep.subr.bf16.mxu1 %v8660_v25 }
 0x394   :  { %6420 = vmatmul.mubr.f32.gmra.mrb[10].mxu1 %v8572_v63 }
 0x395   :  { %6422 = vmatprep.mubr.f32.mxu1 %v8575_v1  ;;  %7105 = vmatpush3.bf16.msra.mxu1 %v8660_v25 }
 0x396   :  { %7098 = vmatprep.subr.bf16.mxu1 %v8672_v43 }
 0x398   :  { %6423 = vmatmul.mubr.f32.gmra.mrb[12].mxu1 %v8578_v6 }
 0x399   :  { %6425 = vmatprep.mubr.f32.mxu1 %v8714_v23  ;;  %7106 = vmatpush3.bf16.msra.mxu1 %v8672_v43 }
 0x39a   :  { %7099 = vmatprep.subr.bf16.mxu1 %v8684_v13 }
 0x39c   :  { %6426 = vmatmul.mubr.f32.gmra.mrb[14].mxu1 %v3891_v3 }
 0x39d   :  { %7107 = vmatpush3.bf16.msra.mxu1 %v8684_v13  ;;  %6472 = vmatprep.mubr.f32.mxu1 %v4220_v8 }
 0x3a0   :  { %6473 = vmatmul.mubr.f32.vlgmr.msra.gmra.mrb[16].mxu1 %v4221_v28 }
 0x3a1   :  { %6475 = vmatprep.mubr.f32.mxu1 %v4222_v31 }
 0x3a4   :  { %6476 = vmatmul.mubr.f32.gmra.mrb[18].mxu1 %v4223_v4 }
 0x3a5   :  { %6478 = vmatprep.mubr.f32.mxu1 %v4224_v11 }
 0x3a8   :  { %6479 = vmatmul.mubr.f32.gmra.mrb[20].mxu1 %v4225_v53 }
 0x3a9   :  { %6481 = vmatprep.mubr.f32.mxu1 %v4226_v57 }
 0x3ac   :  { %6482 = vmatmul.mubr.f32.gmra.mrb[22].mxu1 %v4227_v60 }
 0x3e1   :  { %v8765_v63 = vpop.f32.mrb[16].mxu0 }
 0x3e2   :  { %v4414_v1 = vmul.f32 %v8765_v63, %v8765_v63  ;;  %v8769_v6 = vpop.f32.mrb[17].mxu0 }
 0x3e3   :  { %v4391_v52 = vadd.f32 %v8765_v63, %v8769_v6  ;;  %v4413_v34 = vmul.f32 %v8769_v6, %v8769_v6 }
 0x3e5   :  { %v8775_v38 = vpop.f32.mrb[18].mxu0  ;;  %v4429_v61 = vadd.f32 %v4414_v1, %v4413_v34 }
 0x3e6   :  { %v8777_v36 = vpop.f32.mrb[19].mxu0  ;;  %v4416_v25 = vmul.f32 %v8775_v38, %v8775_v38 }
 0x3e7   :  { %v4392_v43 = vadd.f32 %v4391_v52, %v8777_v36  ;;  %v4415_v13 = vmul.f32 %v8777_v36, %v8777_v36 }
 0x3e9   :  { %v4430_v19 = vadd.f32 %v4429_v61, %v4415_v13  ;;  %v8784_v23 = vpop.f32.mrb[20].mxu0  ;;  %v4393_v40 = vadd.f32 %v8775_v38, %v4392_v43 }
 0x3ea   :  { %v8787_v16 = vpop.f32.mrb[21].mxu0  ;;  %v4418_v39 = vmul.f32 %v8784_v23, %v8784_v23 }
 0x3eb   :  { %v4394_v14 = vadd.f32 %v4393_v40, %v8787_v16  ;;  %v4417_v18 = vmul.f32 %v8787_v16, %v8787_v16  ;;  %v4431_v42 = vadd.f32 %v4430_v19, %v4416_v25 }
 0x3ed   :  { %v4432_v58 = vadd.f32 %v4431_v42, %v4417_v18  ;;  %v8794_v46 = vpop.f32.mrb[22].mxu0  ;;  %v4395_v33 = vadd.f32 %v8784_v23, %v4394_v14 }
 0x3ee   :  { %v8797_v21 = vpop.f32.mrb[23].mxu0  ;;  %v4420_v59 = vmul.f32 %v8794_v46, %v8794_v46 }
 0x3ef   :  { %v4396_v20 = vadd.f32 %v4395_v33, %v8797_v21  ;;  %v4419_v54 = vmul.f32 %v8797_v21, %v8797_v21  ;;  %v4433_v35 = vadd.f32 %v4432_v58, %v4418_v39 }
 0x3f1   :  { %v8805_v62 = vadd.f32 %v8794_v46, %v4396_v20  ;;  %v4434_v41 = vadd.f32 %v4433_v35, %v4419_v54 }
 0x3f3   :  { %v8807_v47 = vadd.f32 %v4434_v41, %v4420_v59 }
 0x453   :  { %v8809_v27 = vpop.f32.mrb[0].mxu1 }
 0x454   :  { %v4095_v48 = vmul.f32 %v8809_v27, %v8809_v27  ;;  %v8813_v10 = vpop.f32.mrb[1].mxu1 }
 0x455   :  { %v4072_v22 = vadd.f32 %v8809_v27, %v8813_v10  ;;  %v4094_v2 = vmul.f32 %v8813_v10, %v8813_v10 }
 0x457   :  { %v4110_v50 = vadd.f32 %v4095_v48, %v4094_v2  ;;  %v8819_v55 = vpop.f32.mrb[2].mxu1 }
 0x458   :  { %v8821_v9 = vpop.f32.mrb[3].mxu1  ;;  %v4097_v24 = vmul.f32 %v8819_v55, %v8819_v55 }
 0x459   :  { %v4073_v17 = vadd.f32 %v4072_v22, %v8821_v9  ;;  %v4096_v44 = vmul.f32 %v8821_v9, %v8821_v9 }
 0x45b   :  { %v4111_v15 = vadd.f32 %v4110_v50, %v4096_v44  ;;  %v8828_v29 = vpop.f32.mrb[4].mxu1  ;;  %v4074_v30 = vadd.f32 %v8819_v55, %v4073_v17 }
 0x45c   :  { %v8831_v26 = vpop.f32.mrb[5].mxu1  ;;  %v4099_v37 = vmul.f32 %v8828_v29, %v8828_v29 }
 0x45d   :  { %v4075_v0 = vadd.f32 %v4074_v30, %v8831_v26  ;;  %v4098_v56 = vmul.f32 %v8831_v26, %v8831_v26  ;;  %v4112_v32 = vadd.f32 %v4111_v15, %v4097_v24 }
 0x45f   :  { %v4113_v5 = vadd.f32 %v4112_v32, %v4098_v56  ;;  %v8838_v7 = vpop.f32.mrb[6].mxu1  ;;  %v4076_v12 = vadd.f32 %v8828_v29, %v4075_v0 }
 0x460   :  { %v8841_v51 = vpop.f32.mrb[7].mxu1  ;;  %v4101_v8 = vmul.f32 %v8838_v7, %v8838_v7 }
 0x461   :  { %v4077_v49 = vadd.f32 %v4076_v12, %v8841_v51  ;;  %v4100_v45 = vmul.f32 %v8841_v51, %v8841_v51  ;;  %v4114_v3 = vadd.f32 %v4113_v5, %v4099_v37 }
 0x463   :  { %v4115_v28 = vadd.f32 %v4114_v3, %v4100_v45  ;;  %v8848_v31 = vpop.f32.mrb[8].mxu1  ;;  %v4078_v4 = vadd.f32 %v8838_v7, %v4077_v49 }
 0x464   :  { %v8851_v11 = vpop.f32.mrb[9].mxu1  ;;  %v4103_v1 = vmul.f32 %v8848_v31, %v8848_v31 }
 0x465   :  { %v4079_v53 = vadd.f32 %v4078_v4, %v8851_v11  ;;  %v4102_v57 = vmul.f32 %v8851_v11, %v8851_v11  ;;  %v4116_v60 = vadd.f32 %v4115_v28, %v4101_v8 }
 0x467   :  { %v4117_v52 = vadd.f32 %v4116_v60, %v4102_v57  ;;  %v8858_v34 = vpop.f32.mrb[10].mxu1  ;;  %v4080_v61 = vadd.f32 %v8848_v31, %v4079_v53 }
 0x468   :  { %v8861_v25 = vpop.f32.mrb[11].mxu1  ;;  %v4105_v40 = vmul.f32 %v8858_v34, %v8858_v34 }
 0x469   :  { %v4081_v43 = vadd.f32 %v4080_v61, %v8861_v25  ;;  %v4104_v13 = vmul.f32 %v8861_v25, %v8861_v25  ;;  %v4118_v19 = vadd.f32 %v4117_v52, %v4103_v1 }
 0x46b   :  { %v4119_v39 = vadd.f32 %v4118_v19, %v4104_v13  ;;  %v8868_v14 = vpop.f32.mrb[12].mxu1  ;;  %v4082_v18 = vadd.f32 %v8858_v34, %v4081_v43 }
 0x46c   :  { %v8871_v42 = vpop.f32.mrb[13].mxu1  ;;  %v4107_v20 = vmul.f32 %v8868_v14, %v8868_v14 }
 0x46d   :  { %v4083_v58 = vadd.f32 %v4082_v18, %v8871_v42  ;;  %v4106_v33 = vmul.f32 %v8871_v42, %v8871_v42  ;;  %v4120_v59 = vadd.f32 %v4119_v39, %v4105_v40 }
 0x46f   :  { %v4121_v54 = vadd.f32 %v4120_v59, %v4106_v33  ;;  %v8878_v35 = vpop.f32.mrb[14].mxu1  ;;  %v4084_v41 = vadd.f32 %v8868_v14, %v4083_v58 }
 0x470   :  { %v8881_v48 = vpop.f32.mrb[15].mxu1  ;;  %v4109_v17 = vmul.f32 %v8878_v35, %v8878_v35 }
 0x471   :  { %v4085_v22 = vadd.f32 %v4084_v41, %v8881_v48  ;;  %v4108_v2 = vmul.f32 %v8881_v48, %v8881_v48  ;;  %v4122_v50 = vadd.f32 %v4121_v54, %v4107_v20 }
 0x473   :  { %v4086_v44 = vadd.f32 %v8878_v35, %v4085_v22  ;;  %v4123_v24 = vadd.f32 %v4122_v50, %v4108_v2  ;;  %v8889_v15 = vpop.f32.mrb[16].mxu1 }
 0x474   :  { %v8891_v30 = vpop.f32.mrb[17].mxu1  ;;  %v4422_v8 = vmul.f32 %v8889_v15, %v8889_v15 }
 0x475   :  { %v4087_v0 = vrot.slane %v4086_v44, 4  ;;  %v4124_v56 = vadd.f32 %v4123_v24, %v4109_v17  ;;  %v4398_v32 = vadd.f32 %v8805_v62, %v8891_v30  ;;  %v4421_v37 = vmul.f32 %v8891_v30, %v8891_v30 }
 0x477   :  { %v4088_v5 = vadd.f32 %v4087_v0, %v4086_v44  ;;  %v4125_v12 = vrot.slane %v4124_v56, 4  ;;  %v4436_v49 = vadd.f32 %v8807_v47, %v4421_v37  ;;  %v8898_v45 = vpop.f32.mrb[18].mxu1  ;;  %v4399_v3 = vadd.f32 %v8889_v15, %v4398_v32 }
 0x478   :  { %v8903_v28 = vpop.f32.mrb[19].mxu1  ;;  %v4424_v43 = vmul.f32 %v8898_v45, %v8898_v45 }
 0x479   :  { %v4089_v4 = vrot.slane %v4088_v5, 2  ;;  %v4126_v53 = vadd.f32 %v4125_v12, %v4124_v56  ;;  %v4400_v62 = vadd.f32 %v4399_v3, %v8903_v28  ;;  %v4423_v57 = vmul.f32 %v8903_v28, %v8903_v28 }
 0x47a   :  { %v4437_v60 = vadd.f32 %v4436_v49, %v4422_v8 }
 0x47b   :  { %v4090_v1 = vadd.f32 %v4089_v4, %v4088_v5  ;;  %v4127_v52 = vrot.slane %v4126_v53, 2  ;;  %v8908_v47 = vpop.f32.mrb[20].mxu1  ;;  %v4401_v61 = vadd.f32 %v8898_v45, %v4400_v62 }
 0x47c   :  { %v4438_v13 = vadd.f32 %v4437_v60, %v4423_v57  ;;  %v8913_v19 = vpop.f32.mrb[21].mxu1  ;;  %v4426_v22 = vmul.f32 %v8908_v47, %v8908_v47 }
 0x47d   :  { %v4091_v40 = vrot.slane %v4090_v1, 1  ;;  %v4128_v39 = vadd.f32 %v4127_v52, %v4126_v53  ;;  %v4402_v18 = vadd.f32 %v4401_v61, %v8913_v19  ;;  %v4425_v58 = vmul.f32 %v8913_v19, %v8913_v19 }
 0x47e   :  { %v4439_v33 = vadd.f32 %v4438_v13, %v4424_v43 }
 0x47f   :  { %v4092_v59 = vadd.f32 %v4091_v40, %v4090_v1  ;;  %v4129_v20 = vrot.slane %v4128_v39, 1  ;;  %v8918_v54 = vpop.f32.mrb[22].mxu1  ;;  %v4403_v41 = vadd.f32 %v8908_v47, %v4402_v18 }
 0x480   :  { %v4440_v2 = vadd.f32 %v4439_v33, %v4425_v58  ;;  %v8923_v50 = vpop.f32.mrb[23].mxu1 }
 0x481   :  { %v4093_v17 = vmul.f32 0.0078125, %v4092_v59  ;;  %v4130_v44 = vadd.f32 %v4129_v20, %v4128_v39  ;;  %v4404_v24 = vadd.f32 %v4403_v41, %v8923_v50  ;;  %v4427_v0 = vmul.f32 %v8923_v50, %v8923_v50 }
 0x482   :  { %v4441_v56 = vadd.f32 %v4440_v2, %v4426_v22 }
 0x483   :  { %v4131_v32 = vmul.f32 0.0078125, %v4130_v44  ;;  %v4132_v37 = vmul.f32 %v4093_v17, %v4093_v17  ;;  %v4134_v5 = vsub.f32 %v8813_v10, %v4093_v17  ;;  %v4135_v12 = vsub.f32 %v8809_v27, %v4093_v17 }
 0x484   :  { %v4136_v49 = vsub.f32 %v8821_v9, %v4093_v17  ;;  %v4137_v3 = vsub.f32 %v8819_v55, %v4093_v17  ;;  %v4138_v8 = vsub.f32 %v8831_v26, %v4093_v17  ;;  %v4139_v4 = vsub.f32 %v8828_v29, %v4093_v17 }
 0x485   :  { %v4133_v53 = vsub.f32 %v4131_v32, %v4132_v37  ;;  %v4140_v62 = vsub.f32 %v8841_v51, %v4093_v17  ;;  %v4141_v57 = vsub.f32 %v8838_v7, %v4093_v17  ;;  %v4142_v60 = vsub.f32 %v8851_v11, %v4093_v17 }
 0x486   :  { %v4143_v1 = vsub.f32 %v8848_v31, %v4093_v17  ;;  %v4144_v10 = vsub.f32 %v8861_v25, %v4093_v17  ;;  %v4145_v27 = vsub.f32 %v8858_v34, %v4093_v17  ;;  %v4146_v9 = vsub.f32 %v8871_v42, %v4093_v17 }
 0x487   :  { %v4147_v55 = vsub.f32 %v8868_v14, %v4093_v17  ;;  %v4148_v26 = vsub.f32 %v8881_v48, %v4093_v17  ;;  %v4149_v29 = vsub.f32 %v8878_v35, %v4093_v17  ;;  %v4150_v52 = vadd.f32 1e-05, %v4133_v53 }
 0x488   :  { %v4428_v7 = vmul.f32 %v8918_v54, %v8918_v54  ;;  %v4405_v51 = vadd.f32 %v8918_v54, %v4404_v24  ;;  %v4442_v11 = vadd.f32 %v4441_v56, %v4427_v0 }
 0x489   :  { %7370 = vrsqrt.f32 %v4150_v52 }
 0x48a   :  { %v4443_v31 = vadd.f32 %v4442_v11, %v4428_v7  ;;  %v4406_v25 = vrot.slane %v4405_v51, 4 }
 0x48c   :  { %v4407_v61 = vadd.f32 %v4406_v25, %v4405_v51  ;;  %v4444_v34 = vrot.slane %v4443_v31, 4 }
 0x48e   :  { %v4408_v42 = vrot.slane %v4407_v61, 2  ;;  %v4445_v13 = vadd.f32 %v4444_v34, %v4443_v31 }
 0x490   :  { %v4409_v0 = vadd.f32 %v4408_v42, %v4407_v61  ;;  %v4446_v56 = vrot.slane %v4445_v13, 2 }
 0x492   :  { %v4410_v32 = vrot.slane %v4409_v0, 1  ;;  %v4447_v37 = vadd.f32 %v4446_v56, %v4445_v13 }
 0x493   :  { %v7371_v43 = vpop.eup %7370 }
 0x494   :  { %v4152_v14 = vmul.f32 %v7371_v43, %v4134_v5  ;;  %v4153_v40 = vmul.f32 %v7371_v43, %v4135_v12  ;;  %v4154_v48 = vmul.f32 %v7371_v43, %v4136_v49  ;;  %v4155_v39 = vmul.f32 %v7371_v43, %v4137_v3 }
 0x495   :  { %v4156_v35 = vmul.f32 %v7371_v43, %v4138_v8  ;;  %v4157_v18 = vmul.f32 %v7371_v43, %v4139_v4  ;;  %v4158_v58 = vmul.f32 %v7371_v43, %v4140_v62  ;;  %v4159_v33 = vmul.f32 %v7371_v43, %v4141_v57 }
 0x496   :  { %v4160_v59 = vmul.f32 %v7371_v43, %v4142_v60  ;;  %v4161_v20 = vmul.f32 %v7371_v43, %v4143_v1  ;;  %v4162_v41 = vmul.f32 %v7371_v43, %v4144_v10  ;;  %v4163_v22 = vmul.f32 %v7371_v43, %v4145_v27 }
 0x497   :  { %v4164_v2 = vmul.f32 %v7371_v43, %v4146_v9  ;;  %v4165_v17 = vmul.f32 %v7371_v43, %v4147_v55  ;;  %v4166_v44 = vmul.f32 %v7371_v43, %v4148_v26  ;;  %v4167_v24 = vmul.f32 %v7371_v43, %v4149_v29 }
 0x498   :  { %v4411_v5 = vadd.f32 %v4410_v32, %v4409_v0  ;;  %v4448_v12 = vrot.slane %v4447_v37, 1 }
 0x49a   :  { %v8947_v49 = vmul.f32 0.0078125, %v4411_v5  ;;  %v4449_v3 = vadd.f32 %v4448_v12, %v4447_v37  ;;  %v4810_v37 = vld [vmem:[%s9099_s8] ss:$0 sm:$0xff] }
 0x49c   :  { %v4450_v8 = vmul.f32 0.0078125, %v4449_v3  ;;  %v4451_v4 = vmul.f32 %v8947_v49, %v8947_v49  ;;  %v4453_v53 = vsub.f32 %v8769_v6, %v8947_v49  ;;  %v4454_v62 = vsub.f32 %v8765_v63, %v8947_v49 }
 0x49d   :  { %v4455_v57 = vsub.f32 %v8777_v36, %v8947_v49  ;;  %v4456_v60 = vsub.f32 %v8775_v38, %v8947_v49  ;;  %v4457_v1 = vsub.f32 %v8787_v16, %v8947_v49  ;;  %v4458_v10 = vsub.f32 %v8784_v23, %v8947_v49 }
 0x49e   :  { %v4452_v27 = vsub.f32 %v4450_v8, %v4451_v4  ;;  %v4459_v9 = vsub.f32 %v8797_v21, %v8947_v49  ;;  %v4460_v6 = vsub.f32 %v8794_v46, %v8947_v49  ;;  %v4461_v63 = vsub.f32 %v8891_v30, %v8947_v49 }
 0x49f   :  { %v4462_v36 = vsub.f32 %v8889_v15, %v8947_v49  ;;  %v4463_v38 = vsub.f32 %v8903_v28, %v8947_v49  ;;  %v4464_v16 = vsub.f32 %v8898_v45, %v8947_v49  ;;  %v4465_v23 = vsub.f32 %v8913_v19, %v8947_v49  ;;  %v4808_v15 = vld [vmem:[%s9096_s5] ss:$0 sm:$0xff] }
 0x4a0   :  { %v4466_v21 = vsub.f32 %v8908_v47, %v8947_v49  ;;  %v4467_v46 = vsub.f32 %v8923_v50, %v8947_v49  ;;  %v4468_v30 = vsub.f32 %v8918_v54, %v8947_v49  ;;  %v4469_v55 = vadd.f32 1e-05, %v4452_v27  ;;  %v4809_v47 = vld [vmem:[%s9097_s6] ss:$0 sm:$0xff] }
 0x4a1   :  { %v4174_v28 = vmul.f32 %v4808_v15, %v4152_v14  ;;  %v4175_v45 = vmul.f32 %v4808_v15, %v4153_v40  ;;  %v4176_v26 = vmul.f32 %v4808_v15, %v4154_v48  ;;  %v4177_v29 = vmul.f32 %v4808_v15, %v4155_v39 }
 0x4a2   :  { %7372 = vrsqrt.f32 %v4469_v55  ;;  %v4178_v19 = vmul.f32 %v4808_v15, %v4156_v35  ;;  %v4179_v52 = vmul.f32 %v4808_v15, %v4157_v18  ;;  %v4180_v50 = vmul.f32 %v4808_v15, %v4158_v58 }
 0x4a3   :  { %v4181_v7 = vmul.f32 %v4808_v15, %v4159_v33  ;;  %v4182_v51 = vmul.f32 %v4808_v15, %v4160_v59  ;;  %v4183_v54 = vmul.f32 %v4808_v15, %v4161_v20  ;;  %v4184_v11 = vmul.f32 %v4808_v15, %v4162_v41 }
 0x4a4   :  { %v4185_v31 = vmul.f32 %v4808_v15, %v4163_v22  ;;  %v4186_v25 = vmul.f32 %v4808_v15, %v4164_v2  ;;  %v4187_v61 = vmul.f32 %v4808_v15, %v4165_v17  ;;  %v4188_v34 = vmul.f32 %v4808_v15, %v4166_v44 }
 0x4a5   :  { %v4189_v43 = vmul.f32 %v4808_v15, %v4167_v24  ;;  %v8989_v42 = vadd.f32 %v4809_v47, %v4174_v28  ;;  %v8991_v13 = vadd.f32 %v4809_v47, %v4175_v45  ;;  %v8993_v14 = vadd.f32 %v4809_v47, %v4176_v26 }
 0x4a6   :  { %v8995_v40 = vadd.f32 %v4809_v47, %v4177_v29  ;;  %v8997_v48 = vadd.f32 %v4809_v47, %v4178_v19  ;;  %v8999_v39 = vadd.f32 %v4809_v47, %v4179_v52  ;;  %v9001_v35 = vadd.f32 %v4809_v47, %v4180_v50  ;;  %v4811_v29 = vld [vmem:[%s9100_s9] ss:$0 sm:$0xff] }
 0x4a7   :  { %v9003_v18 = vadd.f32 %v4809_v47, %v4181_v7  ;;  %v9005_v58 = vadd.f32 %v4809_v47, %v4182_v51  ;;  %v9007_v33 = vadd.f32 %v4809_v47, %v4183_v54  ;;  %v9009_v59 = vadd.f32 %v4809_v47, %v4184_v11 }
 0x4a8   :  { %v9011_v20 = vadd.f32 %v4809_v47, %v4185_v31  ;;  %v9013_v22 = vadd.f32 %v4809_v47, %v4186_v25  ;;  %v9015_v2 = vadd.f32 %v4809_v47, %v4187_v61  ;;  %v9017_v17 = vadd.f32 %v4809_v47, %v4188_v34 }
 0x4a9   :  { %v9019_v44 = vadd.f32 %v4809_v47, %v4189_v43 }
 0x4ac   :  { %v7373_v41 = vpop.eup %7372 }
 0x4ad   :  { %v4471_v24 = vmul.f32 %v7373_v41, %v4453_v53  ;;  %v4472_v0 = vmul.f32 %v7373_v41, %v4454_v62  ;;  %v4473_v56 = vmul.f32 %v7373_v41, %v4455_v57  ;;  %v4474_v32 = vmul.f32 %v7373_v41, %v4456_v60 }
 0x4ae   :  { %v4475_v5 = vmul.f32 %v7373_v41, %v4457_v1  ;;  %v4476_v12 = vmul.f32 %v7373_v41, %v4458_v10  ;;  %v4477_v49 = vmul.f32 %v7373_v41, %v4459_v9  ;;  %v4478_v3 = vmul.f32 %v7373_v41, %v4460_v6 }
 0x4af   :  { %v4479_v8 = vmul.f32 %v7373_v41, %v4461_v63  ;;  %v4480_v4 = vmul.f32 %v7373_v41, %v4462_v36  ;;  %v4481_v27 = vmul.f32 %v7373_v41, %v4463_v38  ;;  %v4482_v55 = vmul.f32 %v7373_v41, %v4464_v16 }
 0x4b0   :  { %v4483_v15 = vmul.f32 %v7373_v41, %v4465_v23  ;;  %v4484_v28 = vmul.f32 %v7373_v41, %v4466_v21  ;;  %v4485_v45 = vmul.f32 %v7373_v41, %v4467_v46  ;;  %v4486_v26 = vmul.f32 %v7373_v41, %v4468_v30 }
 0x4b1   :  { %v4493_v53 = vmul.f32 %v4810_v37, %v4471_v24  ;;  %v4494_v62 = vmul.f32 %v4810_v37, %v4472_v0  ;;  %v4495_v57 = vmul.f32 %v4810_v37, %v4473_v56  ;;  %v4496_v60 = vmul.f32 %v4810_v37, %v4474_v32 }
 0x4b2   :  { %v4497_v1 = vmul.f32 %v4810_v37, %v4475_v5  ;;  %v4498_v10 = vmul.f32 %v4810_v37, %v4476_v12  ;;  %v4499_v9 = vmul.f32 %v4810_v37, %v4477_v49  ;;  %v4500_v6 = vmul.f32 %v4810_v37, %v4478_v3 }
 0x4b3   :  { %v4501_v63 = vmul.f32 %v4810_v37, %v4479_v8  ;;  %v4502_v36 = vmul.f32 %v4810_v37, %v4480_v4  ;;  %v4503_v38 = vmul.f32 %v4810_v37, %v4481_v27  ;;  %v4504_v16 = vmul.f32 %v4810_v37, %v4482_v55 }
 0x4b4   :  { %v4505_v23 = vmul.f32 %v4810_v37, %v4483_v15  ;;  %v4506_v21 = vmul.f32 %v4810_v37, %v4484_v28  ;;  %v4507_v46 = vmul.f32 %v4810_v37, %v4485_v45  ;;  %v4508_v30 = vmul.f32 %v4810_v37, %v4486_v26 }
 0x4b5   :  { %v4515_v47 = vadd.f32 %v4811_v29, %v4493_v53  ;;  %v4516_v19 = vadd.f32 %v4811_v29, %v4494_v62  ;;  %v4517_v52 = vadd.f32 %v4811_v29, %v4495_v57  ;;  %v4518_v50 = vadd.f32 %v4811_v29, %v4496_v60 }
 0x4b6   :  { %v4519_v7 = vadd.f32 %v4811_v29, %v4497_v1  ;;  %v4520_v51 = vadd.f32 %v4811_v29, %v4498_v10  ;;  %v4521_v54 = vadd.f32 %v4811_v29, %v4499_v9  ;;  %v4522_v11 = vadd.f32 %v4811_v29, %v4500_v6 }
 0x4b7   :  { %v4523_v31 = vadd.f32 %v4811_v29, %v4501_v63  ;;  %v4524_v25 = vadd.f32 %v4811_v29, %v4502_v36  ;;  %v4525_v61 = vadd.f32 %v4811_v29, %v4503_v38  ;;  %v4526_v34 = vadd.f32 %v4811_v29, %v4504_v16 }
 0x4b8   :  { %v4527_v43 = vadd.f32 %v4811_v29, %v4505_v23  ;;  %v4528_v41 = vadd.f32 %v4811_v29, %v4506_v21  ;;  %v4529_v24 = vadd.f32 %v4811_v29, %v4507_v46  ;;  %v4530_v0 = vadd.f32 %v4811_v29, %v4508_v30 }
 0x4b9   :  { %v4531_v56 = vadd.f32 %v4515_v47, %v8989_v42  ;;  %v4532_v32 = vadd.f32 %v4516_v19, %v8991_v13  ;;  %v4533_v37 = vadd.f32 %v4517_v52, %v8993_v14  ;;  %v4534_v5 = vadd.f32 %v4518_v50, %v8995_v40 }
 0x4ba   :  { %v4535_v12 = vadd.f32 %v4519_v7, %v8997_v48  ;;  %v4536_v49 = vadd.f32 %v4520_v51, %v8999_v39  ;;  %v4537_v3 = vadd.f32 %v4521_v54, %v9001_v35  ;;  %v4538_v8 = vadd.f32 %v4522_v11, %v9003_v18 }
 0x4bb   :  { %v4539_v4 = vadd.f32 %v4523_v31, %v9005_v58  ;;  %v4540_v27 = vadd.f32 %v4524_v25, %v9007_v33  ;;  %v4541_v42 = vadd.f32 %v4525_v61, %v9009_v59  ;;  %v4542_v13 = vadd.f32 %v4526_v34, %v9011_v20 }
 0x4bc   :  { %v4543_v14 = vadd.f32 %v4527_v43, %v9013_v22  ;;  %v4544_v40 = vadd.f32 %v4528_v41, %v9015_v2  ;;  %v4545_v48 = vadd.f32 %v4529_v24, %v9017_v17  ;;  %v4546_v39 = vadd.f32 %v4530_v0, %v9019_v44 }
 0x4bd   :  { %v4547_v55 = vmax.f32 %v4531_v56, 0.0  ;;  %v4548_v35 = vmax.f32 %v4532_v32, 0.0  ;;  %v4549_v15 = vmax.f32 %v4533_v37, 0.0  ;;  %v4550_v18 = vmax.f32 %v4534_v5, 0.0 }
 0x4be   :  { %v4551_v28 = vmax.f32 %v4535_v12, 0.0  ;;  %v4552_v58 = vmax.f32 %v4536_v49, 0.0  ;;  %v4553_v45 = vmax.f32 %v4537_v3, 0.0  ;;  %v4554_v33 = vmax.f32 %v4538_v8, 0.0 }
 0x4bf   :  { %v4555_v26 = vmax.f32 %v4539_v4, 0.0  ;;  %v4556_v59 = vmax.f32 %v4540_v27, 0.0  ;;  %v4557_v53 = vmax.f32 %v4541_v42, 0.0  ;;  %v4558_v20 = vmax.f32 %v4542_v13, 0.0  ;;  %4563 = vst [vmem:[%s9101_s10] sm:$0xff] %v4547_v55  ;;  %4564 = vst [vmem:[%s9101_s10 + $0x8] sm:$0xff] %v4548_v35 }
 0x4c0   :  { %4565 = vst [vmem:[%s9101_s10 + $0x10] sm:$0xff] %v4549_v15  ;;  %4566 = vst [vmem:[%s9101_s10 + $0x18] sm:$0xff] %v4550_v18  ;;  %v4559_v22 = vmax.f32 %v4543_v14, 0.0  ;;  %v4560_v2 = vmax.f32 %v4544_v40, 0.0  ;;  %v4561_v17 = vmax.f32 %v4545_v48, 0.0  ;;  %v4562_v44 = vmax.f32 %v4546_v39, 0.0 }
 0x4c1   :  { %4567 = vst [vmem:[%s9101_s10 + $0x20] sm:$0xff] %v4551_v28  ;;  %4568 = vst [vmem:[%s9101_s10 + $0x28] sm:$0xff] %v4552_v58 }
 0x4c2   :  { %4569 = vst [vmem:[%s9101_s10 + $0x30] sm:$0xff] %v4553_v45  ;;  %4570 = vst [vmem:[%s9101_s10 + $0x38] sm:$0xff] %v4554_v33 }
 0x4c3   :  { %4571 = vst [vmem:[%s9101_s10 + $0x40] sm:$0xff] %v4555_v26  ;;  %4572 = vst [vmem:[%s9101_s10 + $0x48] sm:$0xff] %v4556_v59 }
 0x4c4   :  { %4573 = vst [vmem:[%s9101_s10 + $0x50] sm:$0xff] %v4557_v53  ;;  %4574 = vst [vmem:[%s9101_s10 + $0x58] sm:$0xff] %v4558_v20 }
 0x4c5   :  { %4575 = vst [vmem:[%s9101_s10 + $0x60] sm:$0xff] %v4559_v22  ;;  %4576 = vst [vmem:[%s9101_s10 + $0x68] sm:$0xff] %v4560_v2 }
 0x4c6   :  { %4577 = vst [vmem:[%s9101_s10 + $0x70] sm:$0xff] %v4561_v17  ;;  %4578 = vst [vmem:[%s9101_s10 + $0x78] sm:$0xff] %v4562_v44 }
 0x4c7   :  { %4583 = vsyncpa [#allocation5], 1 }

</bundles_post_ra>
